<compile_context>
chip_gen: v6e
topology: v6e:2x2x1
jax: 0.10.0
libtpu: 0.0.40
codegen_flags: <defaults>
</compile_context>

<pallas_src>
import functools

import numpy as np
import jax
import jax.numpy as jnp
from jax.experimental import pallas as pl
from jax.experimental.pallas import tpu as pltpu

NEG_SLOPE = 0.2            # GATv2Conv default negative_slope
LN_EPS = 1e-5              # nn.LayerNorm default eps
VMEM_LIMIT_BYTES = 32 * 1024 * 1024


# ---------------------------------------------------------------------------
# Fused GATv2 layer kernel: one (row-tile, head) grid step
# ---------------------------------------------------------------------------
def _gat_layer_kernel(x_full_ref, x_tile_ref, adjb_ref, e_ref,
                      wl_ref, bl_ref, wr_ref, br_ref, we_ref, att_ref,
                      bias_ref, o_ref, *, apply_relu):
    # x_full_ref : [N, F]     all (source) nodes -- constant block index, fetched once
    # x_tile_ref : [T, F]     target-node row tile
    # adjb_ref   : [T, N]     additive mask: 0 where edge j->i exists, -1e30 otherwise
    # e_ref      : [T, N, E]  raw dense edge attributes for this row tile
    # wl/wr      : [1, F, C]  per-head lin_l / lin_r weights ; bl/br : [1, 1, C]
    # we_ref     : [1, E, C]  per-head lin_edge weight (bias=False)
    # att_ref    : [1, 1, C]  per-head attention vector ; bias_ref : [1, 1, C]
    # o_ref      : [1, T, C]
    xl = jnp.dot(x_full_ref[...], wl_ref[0],
                 preferred_element_type=jnp.float32) + bl_ref[0]        # [N, C]
    xr = jnp.dot(x_tile_ref[...], wr_ref[0],
                 preferred_element_type=jnp.float32) + br_ref[0]        # [T, C]

    # project raw edge attrs on the fly as ONE 2D MXU matmul (no [N,N,H*C] in HBM,
    # no broadcast of the weight across the tile axis)
    t, n, e = e_ref.shape
    c = xl.shape[-1]
    e_prj = jnp.dot(e_ref[...].reshape(t * n, e), we_ref[0],
                    preferred_element_type=jnp.float32).reshape(t, n, c)  # [T, N, C]

    # GATv2 scores
    s = e_prj + xr[:, None, :] + xl[None, :, :]                          # [T, N, C]
    s = jnp.where(s > 0, s, NEG_SLOPE * s)                               # leaky_relu
    logits = jnp.sum(s * att_ref[...], axis=-1) + adjb_ref[...]          # [T, N]

    # masked softmax over source nodes (self loops keep every row finite)
    m = jnp.max(logits, axis=-1, keepdims=True)
    p = jnp.exp(logits - m)                                              # masked -> 0
    alpha = p * pl.reciprocal(jnp.sum(p, axis=-1, keepdims=True), approx=True)

    out = jnp.dot(alpha, xl, preferred_element_type=jnp.float32) + bias_ref[0]
    if apply_relu:
        out = jnp.maximum(out, 0.0)
    o_ref[0] = out


def gatv2_conv_fused(x, adj_bias, e_dense, conv_params, *,
                     heads, out_channels, apply_relu, tile_i):
    n_pad, f = x.shape
    e_dim = e_dense.shape[-1]
    h_, c_ = heads, out_channels
    assert n_pad % tile_i == 0 and tile_i % 8 == 0

    # head-major parameter layout: one head per leading-dim block
    wl = conv_params["wl"].reshape(f, h_, c_).transpose(1, 0, 2)         # [H, F, C]
    wr = conv_params["wr"].reshape(f, h_, c_).transpose(1, 0, 2)         # [H, F, C]
    we = conv_params["we"].reshape(e_dim, h_, c_).transpose(1, 0, 2)     # [H, E, C]
    bl = conv_params["bl"].reshape(h_, 1, c_)
    br = conv_params["br"].reshape(h_, 1, c_)
    att = conv_params["att"].reshape(h_, 1, c_)
    bias = conv_params["bias"].reshape(h_, 1, c_)

    grid = (n_pad // tile_i, h_)   # rows outer (parallel), heads inner (tile reuse)
    out = pl.pallas_call(
        functools.partial(_gat_layer_kernel, apply_relu=apply_relu),
        grid=grid,
        in_specs=[
            pl.BlockSpec((n_pad, f), lambda i, h: (0, 0)),               # x (all nodes)
            pl.BlockSpec((tile_i, f), lambda i, h: (i, 0)),              # x (row tile)
            pl.BlockSpec((tile_i, n_pad), lambda i, h: (i, 0)),          # adj mask rows
            pl.BlockSpec((tile_i, n_pad, e_dim), lambda i, h: (i, 0, 0)),# raw edge attrs
            pl.BlockSpec((1, f, c_), lambda i, h: (h, 0, 0)),            # wl[h]
            pl.BlockSpec((1, 1, c_), lambda i, h: (h, 0, 0)),            # bl[h]
            pl.BlockSpec((1, f, c_), lambda i, h: (h, 0, 0)),            # wr[h]
            pl.BlockSpec((1, 1, c_), lambda i, h: (h, 0, 0)),            # br[h]
            pl.BlockSpec((1, e_dim, c_), lambda i, h: (h, 0, 0)),        # we[h]
            pl.BlockSpec((1, 1, c_), lambda i, h: (h, 0, 0)),            # att[h]
            pl.BlockSpec((1, 1, c_), lambda i, h: (h, 0, 0)),            # bias[h]
        ],
        out_specs=pl.BlockSpec((1, tile_i, c_), lambda i, h: (h, i, 0)),
        out_shape=jax.ShapeDtypeStruct((h_, n_pad, c_), jnp.float32),
        compiler_params=pltpu.CompilerParams(
            dimension_semantics=("parallel", "arbitrary"),
            vmem_limit_bytes=VMEM_LIMIT_BYTES),
    )(x, x, adj_bias, e_dense, wl, bl, wr, br, we, att, bias)
    # tiny [H, N, C] -> [N, H*C] concat of heads (node-sized, not O(N^2))
    return out.transpose(1, 0, 2).reshape(n_pad, h_ * c_)


# ---------------------------------------------------------------------------
# Fused epilogue: node_linear+node_norm per tile, graph pool accumulated in
# VMEM scratch, graph_linear+graph_norm finalized on the last tile.
# ---------------------------------------------------------------------------
def _encoder_head_kernel(x_ref, poolt_ref, wn_ref, bn_ref, gn_ref, btn_ref,
                         wg_ref, bg_ref, gg_ref, btg_ref,
                         local_ref, global_ref, pooled_acc):
    i = pl.program_id(0)

    @pl.when(i == 0)
    def _():
        pooled_acc[...] = jnp.zeros_like(pooled_acc)

    x_tile = x_ref[...]                                                  # [T, HC]

    # node head: linear + layernorm
    y = jnp.dot(x_tile, wn_ref[...], preferred_element_type=jnp.float32) + bn_ref[...]
    mu = jnp.mean(y, axis=-1, keepdims=True)
    var = jnp.mean(jnp.square(y - mu), axis=-1, keepdims=True)
    local_ref[...] = (y - mu) * jax.lax.rsqrt(var + LN_EPS) * gn_ref[...] + btn_ref[...]

    # accumulate the mean-pool contribution of this row tile: [B, HC]
    pooled_acc[...] += jax.lax.dot_general(
        poolt_ref[...], x_tile,
        dimension_numbers=(((0,), (0,)), ((), ())),
        preferred_element_type=jnp.float32)

    @pl.when(i == pl.num_programs(0) - 1)
    def _():
        g = jnp.dot(pooled_acc[...], wg_ref[...],
                    preferred_element_type=jnp.float32) + bg_ref[...]
        mug = jnp.mean(g, axis=-1, keepdims=True)
        varg = jnp.mean(jnp.square(g - mug), axis=-1, keepdims=True)
        global_ref[...] = (g - mug) * jax.lax.rsqrt(varg + LN_EPS) * gg_ref[...] + btg_ref[...]


def encoder_heads(x, pool_t, node_lin, node_norm, graph_lin, graph_norm, *, tile_i):
    n_pad, hc = x.shape
    bsz = pool_t.shape[1]
    wn, bn = node_lin
    gn, btn = node_norm
    wg, bg = graph_lin
    gg, btg = graph_norm
    c = wn.shape[1]
    local, global_ = pl.pallas_call(
        _encoder_head_kernel,
        grid=(n_pad // tile_i,),
        in_specs=[
            pl.BlockSpec((tile_i, hc), lambda i: (i, 0)),                # conv output tile
            pl.BlockSpec((tile_i, bsz), lambda i: (i, 0)),               # pool^T rows
            pl.BlockSpec((hc, c), lambda i: (0, 0)),                     # node_linear W
            pl.BlockSpec((1, c), lambda i: (0, 0)),                      # node_linear b
            pl.BlockSpec((1, c), lambda i: (0, 0)),                      # node_norm gamma
            pl.BlockSpec((1, c), lambda i: (0, 0)),                      # node_norm beta
            pl.BlockSpec((hc, c), lambda i: (0, 0)),                     # graph_linear W
            pl.BlockSpec((1, c), lambda i: (0, 0)),                      # graph_linear b
            pl.BlockSpec((1, c), lambda i: (0, 0)),                      # graph_norm gamma
            pl.BlockSpec((1, c), lambda i: (0, 0)),                      # graph_norm beta
        ],
        out_specs=[
            pl.BlockSpec((tile_i, c), lambda i: (i, 0)),                 # local features
            pl.BlockSpec((bsz, c), lambda i: (0, 0)),                    # global features
        ],
        out_shape=(jax.ShapeDtypeStruct((n_pad, c), jnp.float32),
                   jax.ShapeDtypeStruct((bsz, c), jnp.float32)),
        scratch_shapes=[pltpu.VMEM((bsz, hc), jnp.float32)],
        compiler_params=pltpu.CompilerParams(
            dimension_semantics=("arbitrary",),
            vmem_limit_bytes=VMEM_LIMIT_BYTES),
    )(x, pool_t, wn, bn.reshape(1, -1), gn.reshape(1, -1), btn.reshape(1, -1),
      wg, bg.reshape(1, -1), gg.reshape(1, -1), btg.reshape(1, -1))
    return local, global_


# ---------------------------------------------------------------------------
# Glue: graph densification (with padding), parameter init, full forward
# ---------------------------------------------------------------------------
def build_dense_graph(edge_index, edge_attr, n_pad):
    # Duplicate edges overwrite (not accumulate); nodes with no incoming edges
    # get a zero self-loop attribute -- matches PyG for simple graphs.
    src, tgt = edge_index[0], edge_index[1]
    e_dim = edge_attr.shape[1]
    adj = jnp.zeros((n_pad, n_pad), jnp.float32).at[tgt, src].set(1.0)
    e_dense = jnp.zeros((n_pad, n_pad, e_dim), jnp.float32).at[tgt, src].set(edge_attr)
    # PyG add_self_loops(fill_value='mean'): self-loop attr = mean of incoming
    sums = jax.ops.segment_sum(edge_attr, tgt, num_segments=n_pad)
    counts = jax.ops.segment_sum(jnp.ones((src.shape[0],), jnp.float32), tgt,
                                 num_segments=n_pad)
    loop_attr = sums / jnp.maximum(counts, 1.0)[:, None]
    idx = jnp.arange(n_pad)
    adj = adj.at[idx, idx].set(1.0)            # self loops (incl. padded rows)
    e_dense = e_dense.at[idx, idx].set(loop_attr)
    adj_bias = jnp.where(adj > 0, 0.0, -1e30).astype(jnp.float32)
    return adj_bias, e_dense


def init_params(key, in_dim, node_dim, edge_dim, head, num_layers):
    H, C = head, node_dim
    dims = [in_dim] + [H * C] * (num_layers - 1)
    params = {"convs": []}
    for layer in range(num_layers):
        key, k0, k1, k2, k3, k4, k5, k6 = jax.random.split(key, 8)
        d = dims[layer]
        params["convs"].append({
            "wl": 0.1 * jax.random.normal(k0, (d, H * C), jnp.float32),
            "bl": 0.05 * jax.random.normal(k1, (H * C,), jnp.float32),
            "wr": 0.1 * jax.random.normal(k2, (d, H * C), jnp.float32),
            "br": 0.05 * jax.random.normal(k3, (H * C,), jnp.float32),
            "we": 0.1 * jax.random.normal(k4, (edge_dim, H * C), jnp.float32),
            "att": 0.1 * jax.random.normal(k5, (H, C), jnp.float32),
            "bias": 0.05 * jax.random.normal(k6, (H * C,), jnp.float32),
        })
    key, k1, k2, k3, k4 = jax.random.split(key, 5)
    params["node_linear"] = (0.1 * jax.random.normal(k1, (H * C, C), jnp.float32),
                             0.05 * jax.random.normal(k2, (C,), jnp.float32))
    params["graph_linear"] = (0.1 * jax.random.normal(k3, (H * C, C), jnp.float32),
                              0.05 * jax.random.normal(k4, (C,), jnp.float32))
    params["node_norm"] = (jnp.ones((C,), jnp.float32), jnp.zeros((C,), jnp.float32))
    params["graph_norm"] = (jnp.ones((C,), jnp.float32), jnp.zeros((C,), jnp.float32))
    return params


def graph_encoder_gat_forward(params, x, adj_bias, e_dense, pool_t, *,
                              node_dim, head, num_layers, tile_i):
    for layer in range(num_layers):
        x = gatv2_conv_fused(x, adj_bias, e_dense, params["convs"][layer],
                             heads=head, out_channels=node_dim,
                             apply_relu=(layer < num_layers - 1), tile_i=tile_i)
    local_feature, global_feature = encoder_heads(
        x, pool_t, params["node_linear"], params["node_norm"],
        params["graph_linear"], params["graph_norm"], tile_i=tile_i)
    return local_feature, global_feature


# ---------------------------------------------------------------------------
if __name__ == "__main__":
    node_dim, edge_dim, head, num_layers = 8, 4, 2, 2
    in_feat = 10
    nodes_per_graph = [6, 6]
    N = sum(nodes_per_graph)
    B = len(nodes_per_graph)
    TILE = 8                             # grow toward the VMEM budget on real graphs
    n_pad = -(-N // TILE) * TILE         # pad node count to a multiple of the row tile

    key = jax.random.PRNGKey(0)
    k_x, k_e, k_p = jax.random.split(key, 3)

    node_feature = jax.random.normal(k_x, (N, in_feat), jnp.float32)

    # deterministic directed edge list (ring both ways + one chord per node)
    src_list, tgt_list = [], []
    offset = 0
    for n in nodes_per_graph:
        for i in range(n):
            j = (i + 1) % n
            src_list += [offset + i, offset + j]
            tgt_list += [offset + j, offset + i]
            c = (i + 2) % n
            src_list.append(offset + i)
            tgt_list.append(offset + c)
        offset += n
    edge_index = jnp.asarray(np.array([src_list, tgt_list], dtype=np.int32))
    num_edges = edge_index.shape[1]
    edge_feature = jax.random.normal(k_e, (num_edges, edge_dim), jnp.float32)

    batch = np.array([0] * nodes_per_graph[0] + [1] * nodes_per_graph[1])
    # mean-pool matrix stored transposed [n_pad, B] (lane dim = B, full-dim block)
    pool_t = np.zeros((n_pad, B), np.float32)      # padded rows stay zero
    for b in range(B):
        idx = np.where(batch == b)[0]
        pool_t[idx, b] = 1.0 / len(idx)
    pool_t = jnp.asarray(pool_t)

    x_pad = jnp.zeros((n_pad, in_feat), jnp.float32).at[:N].set(node_feature)
    adj_bias, e_dense = build_dense_graph(edge_index, edge_feature, n_pad)
    params = init_params(k_p, in_feat, node_dim, edge_dim, head, num_layers)

    fwd = jax.jit(functools.partial(graph_encoder_gat_forward,
                                    node_dim=node_dim, head=head,
                                    num_layers=num_layers, tile_i=TILE))
    local_all, global_feature = fwd(params, x_pad, adj_bias, e_dense, pool_t)
    local_feature = local_all[:N]

    jax.block_until_ready((local_feature, global_feature))
    assert local_feature.shape == (N, node_dim)
    assert global_feature.shape == (B, node_dim)
    assert bool(jnp.all(jnp.isfinite(local_feature)))
    assert bool(jnp.all(jnp.isfinite(global_feature)))
    print("KERNEL_OK")
</pallas_src>

<mosaic_0001>
module attributes {stable_mosaic.version = 11 : i64} {
  func.func @_encoder_head_kernel(%arg0: i32, %arg1: memref<8x16xf32, #tpu.memory_space<vmem>>, %arg2: memref<8x2xf32, #tpu.memory_space<vmem>>, %arg3: memref<16x8xf32, #tpu.memory_space<vmem>>, %arg4: memref<1x8xf32, #tpu.memory_space<vmem>>, %arg5: memref<1x8xf32, #tpu.memory_space<vmem>>, %arg6: memref<1x8xf32, #tpu.memory_space<vmem>>, %arg7: memref<16x8xf32, #tpu.memory_space<vmem>>, %arg8: memref<1x8xf32, #tpu.memory_space<vmem>>, %arg9: memref<1x8xf32, #tpu.memory_space<vmem>>, %arg10: memref<1x8xf32, #tpu.memory_space<vmem>>, %arg11: memref<8x8xf32, #tpu.memory_space<vmem>>, %arg12: memref<2x8xf32, #tpu.memory_space<vmem>>, %arg13: memref<2x16xf32, #tpu.memory_space<vmem>>) attributes {dimension_semantics = [#tpu.dimension_semantics<arbitrary>], iteration_bounds = array<i64: 2>, scalar_prefetch = 0 : i64, scratch_operands = 1 : i64, tpu.core_type = #tpu.core_type<tc>, window_params = [{transform_indices = @transform_0, window_bounds = array<i64: 8, 16>}, {transform_indices = @transform_1, window_bounds = array<i64: 8, 2>}, {pipeline_mode = #tpu.pipeline_mode<synchronous>, transform_indices = @transform_2, window_bounds = array<i64: 16, 8>}, {pipeline_mode = #tpu.pipeline_mode<synchronous>, transform_indices = @transform_3, window_bounds = array<i64: 1, 8>}, {pipeline_mode = #tpu.pipeline_mode<synchronous>, transform_indices = @transform_4, window_bounds = array<i64: 1, 8>}, {pipeline_mode = #tpu.pipeline_mode<synchronous>, transform_indices = @transform_5, window_bounds = array<i64: 1, 8>}, {pipeline_mode = #tpu.pipeline_mode<synchronous>, transform_indices = @transform_6, window_bounds = array<i64: 16, 8>}, {pipeline_mode = #tpu.pipeline_mode<synchronous>, transform_indices = @transform_7, window_bounds = array<i64: 1, 8>}, {pipeline_mode = #tpu.pipeline_mode<synchronous>, transform_indices = @transform_8, window_bounds = array<i64: 1, 8>}, {pipeline_mode = #tpu.pipeline_mode<synchronous>, transform_indices = @transform_9, window_bounds = array<i64: 1, 8>}, {transform_indices = @transform_10, window_bounds = array<i64: 8, 8>}, {pipeline_mode = #tpu.pipeline_mode<synchronous>, transform_indices = @transform_11, window_bounds = array<i64: 2, 8>}]} {
    %c0_i32 = arith.constant 0 : i32
    %0 = arith.cmpi eq, %arg0, %c0_i32 : i32
    %1 = arith.extui %0 : i1 to i32
    %c0_i32_0 = arith.constant 0 : i32
    %2 = arith.cmpi ne, %1, %c0_i32_0 : i32
    scf.if %2 {
      %cst_25 = arith.constant 0.000000e+00 : f32
      %42 = vector.broadcast %cst_25 : f32 to vector<2x16xf32>
      %c0_26 = arith.constant 0 : index
      %c0_27 = arith.constant 0 : index
      %43 = vector.load %arg13[%c0_26, %c0_27] : memref<2x16xf32, #tpu.memory_space<vmem>>, vector<2x16xf32>
      tpu.vector_store %arg13[%c0_26, %c0_27], %42 {strides = array<i32>} : memref<2x16xf32, #tpu.memory_space<vmem>>, vector<2x16xf32>,
    } else {
    }
    %c0 = arith.constant 0 : index
    %c0_1 = arith.constant 0 : index
    %3 = vector.load %arg1[%c0, %c0_1] : memref<8x16xf32, #tpu.memory_space<vmem>>, vector<8x16xf32>
    %c0_2 = arith.constant 0 : index
    %c0_3 = arith.constant 0 : index
    %4 = vector.load %arg3[%c0_2, %c0_3] : memref<16x8xf32, #tpu.memory_space<vmem>>, vector<16x8xf32>
    %cst = arith.constant dense<0.000000e+00> : vector<8x8xf32>
    %5 = tpu.matmul %3, %4, %cst {dimension_numbers = #tpu.dot_dimension_numbers<[1], [0], [0], [1], [0, 0, 1, 1], [], []>} : vector<8x16xf32>, vector<16x8xf32>, vector<8x8xf32> -> vector<8x8xf32>
    %c0_4 = arith.constant 0 : index
    %c0_5 = arith.constant 0 : index
    %6 = vector.load %arg4[%c0_4, %c0_5] : memref<1x8xf32, #tpu.memory_space<vmem>>, vector<1x8xf32>
    %7 = vector.broadcast %6 : vector<1x8xf32> to vector<8x8xf32>
    %8 = arith.addf %5, %7 : vector<8x8xf32>
    %cst_6 = arith.constant dense<0.000000e+00> : vector<8xf32>
    %9 = vector.multi_reduction <add>, %8, %cst_6 [1] : vector<8x8xf32> to vector<8xf32>
    %10 = vector.shape_cast %9 : vector<8xf32> to vector<8x1xf32>
    %cst_7 = arith.constant 8.000000e+00 : f32
    %11 = vector.broadcast %cst_7 : f32 to vector<8x1xf32>
    %12 = arith.divf %10, %11 : vector<8x1xf32>
    %13 = vector.broadcast %12 : vector<8x1xf32> to vector<8x8xf32>
    %14 = arith.subf %8, %13 : vector<8x8xf32>
    %15 = arith.mulf %14, %14 : vector<8x8xf32>
    %cst_8 = arith.constant dense<0.000000e+00> : vector<8xf32>
    %16 = vector.multi_reduction <add>, %15, %cst_8 [1] : vector<8x8xf32> to vector<8xf32>
    %17 = vector.shape_cast %16 : vector<8xf32> to vector<8x1xf32>
    %cst_9 = arith.constant 8.000000e+00 : f32
    %18 = vector.broadcast %cst_9 : f32 to vector<8x1xf32>
    %19 = arith.divf %17, %18 : vector<8x1xf32>
    %20 = vector.broadcast %12 : vector<8x1xf32> to vector<8x8xf32>
    %21 = arith.subf %8, %20 : vector<8x8xf32>
    %cst_10 = arith.constant 9.99999974E-6 : f32
    %22 = vector.broadcast %cst_10 : f32 to vector<8x1xf32>
    %23 = arith.addf %19, %22 : vector<8x1xf32>
    %24 = math.rsqrt %23 : vector<8x1xf32>
    %25 = vector.broadcast %24 : vector<8x1xf32> to vector<8x8xf32>
    %26 = arith.mulf %21, %25 : vector<8x8xf32>
    %c0_11 = arith.constant 0 : index
    %c0_12 = arith.constant 0 : index
    %27 = vector.load %arg5[%c0_11, %c0_12] : memref<1x8xf32, #tpu.memory_space<vmem>>, vector<1x8xf32>
    %28 = vector.broadcast %27 : vector<1x8xf32> to vector<8x8xf32>
    %29 = arith.mulf %26, %28 : vector<8x8xf32>
    %c0_13 = arith.constant 0 : index
    %c0_14 = arith.constant 0 : index
    %30 = vector.load %arg6[%c0_13, %c0_14] : memref<1x8xf32, #tpu.memory_space<vmem>>, vector<1x8xf32>
    %31 = vector.broadcast %30 : vector<1x8xf32> to vector<8x8xf32>
    %32 = arith.addf %29, %31 : vector<8x8xf32>
    %c0_15 = arith.constant 0 : index
    %c0_16 = arith.constant 0 : index
    %33 = vector.load %arg11[%c0_15, %c0_16] : memref<8x8xf32, #tpu.memory_space<vmem>>, vector<8x8xf32>
    tpu.vector_store %arg11[%c0_15, %c0_16], %32 {strides = array<i32>} : memref<8x8xf32, #tpu.memory_space<vmem>>, vector<8x8xf32>,
    %c0_17 = arith.constant 0 : index
    %c0_18 = arith.constant 0 : index
    %34 = vector.load %arg13[%c0_17, %c0_18] : memref<2x16xf32, #tpu.memory_space<vmem>>, vector<2x16xf32>
    %c0_19 = arith.constant 0 : index
    %c0_20 = arith.constant 0 : index
    %35 = vector.load %arg2[%c0_19, %c0_20] : memref<8x2xf32, #tpu.memory_space<vmem>>, vector<8x2xf32>
    %cst_21 = arith.constant dense<0.000000e+00> : vector<2x16xf32>
    %36 = tpu.matmul %35, %3, %cst_21 {dimension_numbers = #tpu.dot_dimension_numbers<[0], [0], [1], [1], [0, 1, 1, 1], [], []>} : vector<8x2xf32>, vector<8x16xf32>, vector<2x16xf32> -> vector<2x16xf32>
    %37 = arith.addf %34, %36 : vector<2x16xf32>
    %c0_22 = arith.constant 0 : index
    %c0_23 = arith.constant 0 : index
    %38 = vector.load %arg13[%c0_22, %c0_23] : memref<2x16xf32, #tpu.memory_space<vmem>>, vector<2x16xf32>
    tpu.vector_store %arg13[%c0_22, %c0_23], %37 {strides = array<i32>} : memref<2x16xf32, #tpu.memory_space<vmem>>, vector<2x16xf32>,
    %c1_i32 = arith.constant 1 : i32
    %39 = arith.cmpi eq, %arg0, %c1_i32 : i32
    %40 = arith.extui %39 : i1 to i32
    %c0_i32_24 = arith.constant 0 : i32
    %41 = arith.cmpi ne, %40, %c0_i32_24 : i32
    scf.if %41 {
      %c0_25 = arith.constant 0 : index
      %c0_26 = arith.constant 0 : index
      %42 = vector.load %arg13[%c0_25, %c0_26] : memref<2x16xf32, #tpu.memory_space<vmem>>, vector<2x16xf32>
      %c0_27 = arith.constant 0 : index
      %c0_28 = arith.constant 0 : index
      %43 = vector.load %arg7[%c0_27, %c0_28] : memref<16x8xf32, #tpu.memory_space<vmem>>, vector<16x8xf32>
      %cst_29 = arith.constant dense<0.000000e+00> : vector<2x8xf32>
      %44 = tpu.matmul %42, %43, %cst_29 {dimension_numbers = #tpu.dot_dimension_numbers<[1], [0], [0], [1], [0, 0, 1, 1], [], []>} : vector<2x16xf32>, vector<16x8xf32>, vector<2x8xf32> -> vector<2x8xf32>
      %c0_30 = arith.constant 0 : index
      %c0_31 = arith.constant 0 : index
      %45 = vector.load %arg8[%c0_30, %c0_31] : memref<1x8xf32, #tpu.memory_space<vmem>>, vector<1x8xf32>
      %46 = vector.broadcast %45 : vector<1x8xf32> to vector<2x8xf32>
      %47 = arith.addf %44, %46 : vector<2x8xf32>
      %cst_32 = arith.constant dense<0.000000e+00> : vector<2xf32>
      %48 = vector.multi_reduction <add>, %47, %cst_32 [1] : vector<2x8xf32> to vector<2xf32>
      %49 = vector.shape_cast %48 : vector<2xf32> to vector<2x1xf32>
      %cst_33 = arith.constant 8.000000e+00 : f32
      %50 = vector.broadcast %cst_33 : f32 to vector<2x1xf32>
      %51 = arith.divf %49, %50 : vector<2x1xf32>
      %52 = vector.broadcast %51 : vector<2x1xf32> to vector<2x8xf32>
      %53 = arith.subf %47, %52 : vector<2x8xf32>
      %54 = arith.mulf %53, %53 : vector<2x8xf32>
      %cst_34 = arith.constant dense<0.000000e+00> : vector<2xf32>
      %55 = vector.multi_reduction <add>, %54, %cst_34 [1] : vector<2x8xf32> to vector<2xf32>
      %56 = vector.shape_cast %55 : vector<2xf32> to vector<2x1xf32>
      %cst_35 = arith.constant 8.000000e+00 : f32
      %57 = vector.broadcast %cst_35 : f32 to vector<2x1xf32>
      %58 = arith.divf %56, %57 : vector<2x1xf32>
      %59 = vector.broadcast %51 : vector<2x1xf32> to vector<2x8xf32>
      %60 = arith.subf %47, %59 : vector<2x8xf32>
      %cst_36 = arith.constant 9.99999974E-6 : f32
      %61 = vector.broadcast %cst_36 : f32 to vector<2x1xf32>
      %62 = arith.addf %58, %61 : vector<2x1xf32>
      %63 = math.rsqrt %62 : vector<2x1xf32>
      %64 = vector.broadcast %63 : vector<2x1xf32> to vector<2x8xf32>
      %65 = arith.mulf %60, %64 : vector<2x8xf32>
      %c0_37 = arith.constant 0 : index
      %c0_38 = arith.constant 0 : index
      %66 = vector.load %arg9[%c0_37, %c0_38] : memref<1x8xf32, #tpu.memory_space<vmem>>, vector<1x8xf32>
      %67 = vector.broadcast %66 : vector<1x8xf32> to vector<2x8xf32>
      %68 = arith.mulf %65, %67 : vector<2x8xf32>
      %c0_39 = arith.constant 0 : index
      %c0_40 = arith.constant 0 : index
      %69 = vector.load %arg10[%c0_39, %c0_40] : memref<1x8xf32, #tpu.memory_space<vmem>>, vector<1x8xf32>
      %70 = vector.broadcast %69 : vector<1x8xf32> to vector<2x8xf32>
      %71 = arith.addf %68, %70 : vector<2x8xf32>
      %c0_41 = arith.constant 0 : index
      %c0_42 = arith.constant 0 : index
      %72 = vector.load %arg12[%c0_41, %c0_42] : memref<2x8xf32, #tpu.memory_space<vmem>>, vector<2x8xf32>
      tpu.vector_store %arg12[%c0_41, %c0_42], %71 {strides = array<i32>} : memref<2x8xf32, #tpu.memory_space<vmem>>, vector<2x8xf32>,
    } else {
    }
    return
  }
  func.func @transform_0(%arg0: i32) -> (i32, i32) {
    %c0_i32 = arith.constant 0 : i32
    %c0_i32_0 = arith.constant 0 : i32
    return %arg0, %c0_i32 : i32, i32
  }
  func.func @transform_1(%arg0: i32) -> (i32, i32) {
    %c0_i32 = arith.constant 0 : i32
    %c0_i32_0 = arith.constant 0 : i32
    return %arg0, %c0_i32 : i32, i32
  }
  func.func @transform_2(%arg0: i32) -> (i32, i32) {
    %c0_i32 = arith.constant 0 : i32
    %c0_i32_0 = arith.constant 0 : i32
    %c0_i32_1 = arith.constant 0 : i32
    return %c0_i32, %c0_i32_0 : i32, i32
  }
  func.func @transform_3(%arg0: i32) -> (i32, i32) {
    %c0_i32 = arith.constant 0 : i32
    %c0_i32_0 = arith.constant 0 : i32
    %c0_i32_1 = arith.constant 0 : i32
    return %c0_i32, %c0_i32_0 : i32, i32
  }
  func.func @transform_4(%arg0: i32) -> (i32, i32) {
    %c0_i32 = arith.constant 0 : i32
    %c0_i32_0 = arith.constant 0 : i32
    %c0_i32_1 = arith.constant 0 : i32
    return %c0_i32, %c0_i32_0 : i32, i32
  }
  func.func @transform_5(%arg0: i32) -> (i32, i32) {
    %c0_i32 = arith.constant 0 : i32
    %c0_i32_0 = arith.constant 0 : i32
    %c0_i32_1 = arith.constant 0 : i32
    return %c0_i32, %c0_i32_0 : i32, i32
  }
  func.func @transform_6(%arg0: i32) -> (i32, i32) {
    %c0_i32 = arith.constant 0 : i32
    %c0_i32_0 = arith.constant 0 : i32
    %c0_i32_1 = arith.constant 0 : i32
    return %c0_i32, %c0_i32_0 : i32, i32
  }
  func.func @transform_7(%arg0: i32) -> (i32, i32) {
    %c0_i32 = arith.constant 0 : i32
    %c0_i32_0 = arith.constant 0 : i32
    %c0_i32_1 = arith.constant 0 : i32
    return %c0_i32, %c0_i32_0 : i32, i32
  }
  func.func @transform_8(%arg0: i32) -> (i32, i32) {
    %c0_i32 = arith.constant 0 : i32
    %c0_i32_0 = arith.constant 0 : i32
    %c0_i32_1 = arith.constant 0 : i32
    return %c0_i32, %c0_i32_0 : i32, i32
  }
  func.func @transform_9(%arg0: i32) -> (i32, i32) {
    %c0_i32 = arith.constant 0 : i32
    %c0_i32_0 = arith.constant 0 : i32
    %c0_i32_1 = arith.constant 0 : i32
    return %c0_i32, %c0_i32_0 : i32, i32
  }
  func.func @transform_10(%arg0: i32) -> (i32, i32) {
    %c0_i32 = arith.constant 0 : i32
    %c0_i32_0 = arith.constant 0 : i32
    return %arg0, %c0_i32 : i32, i32
  }
  func.func @transform_11(%arg0: i32) -> (i32, i32) {
    %c0_i32 = arith.constant 0 : i32
    %c0_i32_0 = arith.constant 0 : i32
    %c0_i32_1 = arith.constant 0 : i32
    return %c0_i32, %c0_i32_0 : i32, i32
  }
}

module attributes {stable_mosaic.version = 11 : i64} {
  func.func @_gat_layer_kernel(%arg0: i32, %arg1: i32, %arg2: memref<16x10xf32, #tpu.memory_space<vmem>>, %arg3: memref<8x10xf32, #tpu.memory_space<vmem>>, %arg4: memref<8x16xf32, #tpu.memory_space<vmem>>, %arg5: memref<8x16x4xf32, #tpu.memory_space<vmem>>, %arg6: memref<1x10x8xf32, #tpu.memory_space<vmem>>, %arg7: memref<1x1x8xf32, #tpu.memory_space<vmem>>, %arg8: memref<1x10x8xf32, #tpu.memory_space<vmem>>, %arg9: memref<1x1x8xf32, #tpu.memory_space<vmem>>, %arg10: memref<1x4x8xf32, #tpu.memory_space<vmem>>, %arg11: memref<1x1x8xf32, #tpu.memory_space<vmem>>, %arg12: memref<1x1x8xf32, #tpu.memory_space<vmem>>, %arg13: memref<1x8x8xf32, #tpu.memory_space<vmem>>) attributes {dimension_semantics = [#tpu.dimension_semantics<parallel>, #tpu.dimension_semantics<arbitrary>], iteration_bounds = array<i64: 2, 2>, scalar_prefetch = 0 : i64, scratch_operands = 0 : i64, tpu.core_type = #tpu.core_type<tc>, window_params = [{pipeline_mode = #tpu.pipeline_mode<synchronous>, transform_indices = @transform_0, window_bounds = array<i64: 16, 10>}, {transform_indices = @transform_1, window_bounds = array<i64: 8, 10>}, {transform_indices = @transform_2, window_bounds = array<i64: 8, 16>}, {transform_indices = @transform_3, window_bounds = array<i64: 8, 16, 4>}, {transform_indices = @transform_4, window_bounds = array<i64: 1, 10, 8>}, {transform_indices = @transform_5, window_bounds = array<i64: 1, 1, 8>}, {transform_indices = @transform_6, window_bounds = array<i64: 1, 10, 8>}, {transform_indices = @transform_7, window_bounds = array<i64: 1, 1, 8>}, {transform_indices = @transform_8, window_bounds = array<i64: 1, 4, 8>}, {transform_indices = @transform_9, window_bounds = array<i64: 1, 1, 8>}, {transform_indices = @transform_10, window_bounds = array<i64: 1, 1, 8>}, {transform_indices = @transform_11, window_bounds = array<i64: 1, 8, 8>}]} {
    %c0 = arith.constant 0 : index
    %c0_0 = arith.constant 0 : index
    %0 = vector.load %arg2[%c0, %c0_0] : memref<16x10xf32, #tpu.memory_space<vmem>>, vector<16x10xf32>
    %c0_1 = arith.constant 0 : index
    %c0_2 = arith.constant 0 : index
    %c0_3 = arith.constant 0 : index
    %1 = vector.load %arg6[%c0_1, %c0_2, %c0_3] : memref<1x10x8xf32, #tpu.memory_space<vmem>>, vector<1x10x8xf32>
    %2 = vector.shape_cast %1 : vector<1x10x8xf32> to vector<10x8xf32>
    %cst = arith.constant dense<0.000000e+00> : vector<16x8xf32>
    %3 = tpu.matmul %0, %2, %cst {dimension_numbers = #tpu.dot_dimension_numbers<[1], [0], [0], [1], [0, 0, 1, 1], [], []>} : vector<16x10xf32>, vector<10x8xf32>, vector<16x8xf32> -> vector<16x8xf32>
    %c0_4 = arith.constant 0 : index
    %c0_5 = arith.constant 0 : index
    %c0_6 = arith.constant 0 : index
    %4 = vector.load %arg7[%c0_4, %c0_5, %c0_6] : memref<1x1x8xf32, #tpu.memory_space<vmem>>, vector<1x1x8xf32>
    %5 = vector.shape_cast %4 : vector<1x1x8xf32> to vector<1x8xf32>
    %6 = vector.broadcast %5 : vector<1x8xf32> to vector<16x8xf32>
    %7 = arith.addf %3, %6 : vector<16x8xf32>
    %c0_7 = arith.constant 0 : index
    %c0_8 = arith.constant 0 : index
    %8 = vector.load %arg3[%c0_7, %c0_8] : memref<8x10xf32, #tpu.memory_space<vmem>>, vector<8x10xf32>
    %c0_9 = arith.constant 0 : index
    %c0_10 = arith.constant 0 : index
    %c0_11 = arith.constant 0 : index
    %9 = vector.load %arg8[%c0_9, %c0_10, %c0_11] : memref<1x10x8xf32, #tpu.memory_space<vmem>>, vector<1x10x8xf32>
    %10 = vector.shape_cast %9 : vector<1x10x8xf32> to vector<10x8xf32>
    %cst_12 = arith.constant dense<0.000000e+00> : vector<8x8xf32>
    %11 = tpu.matmul %8, %10, %cst_12 {dimension_numbers = #tpu.dot_dimension_numbers<[1], [0], [0], [1], [0, 0, 1, 1], [], []>} : vector<8x10xf32>, vector<10x8xf32>, vector<8x8xf32> -> vector<8x8xf32>
    %c0_13 = arith.constant 0 : index
    %c0_14 = arith.constant 0 : index
    %c0_15 = arith.constant 0 : index
    %12 = vector.load %arg9[%c0_13, %c0_14, %c0_15] : memref<1x1x8xf32, #tpu.memory_space<vmem>>, vector<1x1x8xf32>
    %13 = vector.shape_cast %12 : vector<1x1x8xf32> to vector<1x8xf32>
    %14 = vector.broadcast %13 : vector<1x8xf32> to vector<8x8xf32>
    %15 = arith.addf %11, %14 : vector<8x8xf32>
    %c0_16 = arith.constant 0 : index
    %c0_17 = arith.constant 0 : index
    %c0_18 = arith.constant 0 : index
    %16 = vector.load %arg5[%c0_16, %c0_17, %c0_18] : memref<8x16x4xf32, #tpu.memory_space<vmem>>, vector<8x16x4xf32>
    %17 = vector.shape_cast %16 : vector<8x16x4xf32> to vector<128x4xf32>
    %c0_19 = arith.constant 0 : index
    %c0_20 = arith.constant 0 : index
    %c0_21 = arith.constant 0 : index
    %18 = vector.load %arg10[%c0_19, %c0_20, %c0_21] : memref<1x4x8xf32, #tpu.memory_space<vmem>>, vector<1x4x8xf32>
    %19 = vector.shape_cast %18 : vector<1x4x8xf32> to vector<4x8xf32>
    %cst_22 = arith.constant dense<0.000000e+00> : vector<128x8xf32>
    %20 = tpu.matmul %17, %19, %cst_22 {dimension_numbers = #tpu.dot_dimension_numbers<[1], [0], [0], [1], [0, 0, 1, 1], [], []>} : vector<128x4xf32>, vector<4x8xf32>, vector<128x8xf32> -> vector<128x8xf32>
    %21 = vector.shape_cast %20 : vector<128x8xf32> to vector<8x16x8xf32>
    %22 = vector.shape_cast %15 : vector<8x8xf32> to vector<8x1x8xf32>
    %23 = vector.broadcast %22 : vector<8x1x8xf32> to vector<8x16x8xf32>
    %24 = arith.addf %21, %23 : vector<8x16x8xf32>
    %25 = vector.shape_cast %7 : vector<16x8xf32> to vector<1x16x8xf32>
    %26 = vector.broadcast %25 : vector<1x16x8xf32> to vector<8x16x8xf32>
    %27 = arith.addf %24, %26 : vector<8x16x8xf32>
    %cst_23 = arith.constant 0.000000e+00 : f32
    %28 = vector.broadcast %cst_23 : f32 to vector<8x16x8xf32>
    %29 = arith.cmpf ogt, %27, %28 : vector<8x16x8xf32>
    %cst_24 = arith.constant 2.000000e-01 : f32
    %30 = vector.broadcast %cst_24 : f32 to vector<8x16x8xf32>
    %31 = arith.mulf %30, %27 : vector<8x16x8xf32>
    %32 = arith.select %29, %27, %31 : vector<8x16x8xi1>, vector<8x16x8xf32>
    %c0_25 = arith.constant 0 : index
    %c0_26 = arith.constant 0 : index
    %c0_27 = arith.constant 0 : index
    %33 = vector.load %arg11[%c0_25, %c0_26, %c0_27] : memref<1x1x8xf32, #tpu.memory_space<vmem>>, vector<1x1x8xf32>
    %34 = vector.broadcast %33 : vector<1x1x8xf32> to vector<8x16x8xf32>
    %35 = arith.mulf %32, %34 : vector<8x16x8xf32>
    %cst_28 = arith.constant dense<0.000000e+00> : vector<8x16xf32>
    %36 = vector.multi_reduction <add>, %35, %cst_28 [2] : vector<8x16x8xf32> to vector<8x16xf32>
    %c0_29 = arith.constant 0 : index
    %c0_30 = arith.constant 0 : index
    %37 = vector.load %arg4[%c0_29, %c0_30] : memref<8x16xf32, #tpu.memory_space<vmem>>, vector<8x16xf32>
    %38 = arith.addf %36, %37 : vector<8x16xf32>
    %cst_31 = arith.constant dense<0xFF800000> : vector<8xf32>
    %39 = vector.multi_reduction <maximumf>, %38, %cst_31 [1] : vector<8x16xf32> to vector<8xf32>
    %40 = vector.shape_cast %39 : vector<8xf32> to vector<8x1xf32>
    %41 = vector.broadcast %40 : vector<8x1xf32> to vector<8x16xf32>
    %42 = arith.subf %38, %41 : vector<8x16xf32>
    %43 = math.exp %42 : vector<8x16xf32>
    %cst_32 = arith.constant dense<0.000000e+00> : vector<8xf32>
    %44 = vector.multi_reduction <add>, %43, %cst_32 [1] : vector<8x16xf32> to vector<8xf32>
    %45 = vector.shape_cast %44 : vector<8xf32> to vector<8x1xf32>
    %46 = tpu.reciprocal %45 {approx = true} : vector<8x1xf32> -> vector<8x1xf32>
    %47 = vector.broadcast %46 : vector<8x1xf32> to vector<8x16xf32>
    %48 = arith.mulf %43, %47 : vector<8x16xf32>
    %cst_33 = arith.constant dense<0.000000e+00> : vector<8x8xf32>
    %49 = tpu.matmul %48, %7, %cst_33 {dimension_numbers = #tpu.dot_dimension_numbers<[1], [0], [0], [1], [0, 0, 1, 1], [], []>} : vector<8x16xf32>, vector<16x8xf32>, vector<8x8xf32> -> vector<8x8xf32>
    %c0_34 = arith.constant 0 : index
    %c0_35 = arith.constant 0 : index
    %c0_36 = arith.constant 0 : index
    %50 = vector.load %arg12[%c0_34, %c0_35, %c0_36] : memref<1x1x8xf32, #tpu.memory_space<vmem>>, vector<1x1x8xf32>
    %51 = vector.shape_cast %50 : vector<1x1x8xf32> to vector<1x8xf32>
    %52 = vector.broadcast %51 : vector<1x8xf32> to vector<8x8xf32>
    %53 = arith.addf %49, %52 : vector<8x8xf32>
    %cst_37 = arith.constant 0.000000e+00 : f32
    %54 = vector.broadcast %cst_37 : f32 to vector<8x8xf32>
    %55 = arith.maximumf %53, %54 : vector<8x8xf32>
    %c0_38 = arith.constant 0 : index
    %c0_39 = arith.constant 0 : index
    %c0_40 = arith.constant 0 : index
    %56 = vector.load %arg13[%c0_38, %c0_39, %c0_40] : memref<1x8x8xf32, #tpu.memory_space<vmem>>, vector<1x8x8xf32>
    %57 = vector.shape_cast %56 : vector<1x8x8xf32> to vector<8x8xf32>
    %58 = vector.shape_cast %55 : vector<8x8xf32> to vector<1x8x8xf32>
    tpu.vector_store %arg13[%c0_38, %c0_39, %c0_40], %58 {strides = array<i32>} : memref<1x8x8xf32, #tpu.memory_space<vmem>>, vector<1x8x8xf32>,
    return
  }
  func.func @transform_0(%arg0: i32, %arg1: i32) -> (i32, i32) {
    %c0_i32 = arith.constant 0 : i32
    %c0_i32_0 = arith.constant 0 : i32
    %c0_i32_1 = arith.constant 0 : i32
    return %c0_i32, %c0_i32_0 : i32, i32
  }
  func.func @transform_1(%arg0: i32, %arg1: i32) -> (i32, i32) {
    %c0_i32 = arith.constant 0 : i32
    %c0_i32_0 = arith.constant 0 : i32
    return %arg0, %c0_i32 : i32, i32
  }
  func.func @transform_2(%arg0: i32, %arg1: i32) -> (i32, i32) {
    %c0_i32 = arith.constant 0 : i32
    %c0_i32_0 = arith.constant 0 : i32
    return %arg0, %c0_i32 : i32, i32
  }
  func.func @transform_3(%arg0: i32, %arg1: i32) -> (i32, i32, i32) {
    %c0_i32 = arith.constant 0 : i32
    %c0_i32_0 = arith.constant 0 : i32
    %c0_i32_1 = arith.constant 0 : i32
    return %arg0, %c0_i32, %c0_i32_0 : i32, i32, i32
  }
  func.func @transform_4(%arg0: i32, %arg1: i32) -> (i32, i32, i32) {
    %c0_i32 = arith.constant 0 : i32
    %c0_i32_0 = arith.constant 0 : i32
    %c0_i32_1 = arith.constant 0 : i32
    return %arg1, %c0_i32, %c0_i32_0 : i32, i32, i32
  }
  func.func @transform_5(%arg0: i32, %arg1: i32) -> (i32, i32, i32) {
    %c0_i32 = arith.constant 0 : i32
    %c0_i32_0 = arith.constant 0 : i32
    %c0_i32_1 = arith.constant 0 : i32
    return %arg1, %c0_i32, %c0_i32_0 : i32, i32, i32
  }
  func.func @transform_6(%arg0: i32, %arg1: i32) -> (i32, i32, i32) {
    %c0_i32 = arith.constant 0 : i32
    %c0_i32_0 = arith.constant 0 : i32
    %c0_i32_1 = arith.constant 0 : i32
    return %arg1, %c0_i32, %c0_i32_0 : i32, i32, i32
  }
  func.func @transform_7(%arg0: i32, %arg1: i32) -> (i32, i32, i32) {
    %c0_i32 = arith.constant 0 : i32
    %c0_i32_0 = arith.constant 0 : i32
    %c0_i32_1 = arith.constant 0 : i32
    return %arg1, %c0_i32, %c0_i32_0 : i32, i32, i32
  }
  func.func @transform_8(%arg0: i32, %arg1: i32) -> (i32, i32, i32) {
    %c0_i32 = arith.constant 0 : i32
    %c0_i32_0 = arith.constant 0 : i32
    %c0_i32_1 = arith.constant 0 : i32
    return %arg1, %c0_i32, %c0_i32_0 : i32, i32, i32
  }
  func.func @transform_9(%arg0: i32, %arg1: i32) -> (i32, i32, i32) {
    %c0_i32 = arith.constant 0 : i32
    %c0_i32_0 = arith.constant 0 : i32
    %c0_i32_1 = arith.constant 0 : i32
    return %arg1, %c0_i32, %c0_i32_0 : i32, i32, i32
  }
  func.func @transform_10(%arg0: i32, %arg1: i32) -> (i32, i32, i32) {
    %c0_i32 = arith.constant 0 : i32
    %c0_i32_0 = arith.constant 0 : i32
    %c0_i32_1 = arith.constant 0 : i32
    return %arg1, %c0_i32, %c0_i32_0 : i32, i32, i32
  }
  func.func @transform_11(%arg0: i32, %arg1: i32) -> (i32, i32, i32) {
    %c0_i32 = arith.constant 0 : i32
    %c0_i32_0 = arith.constant 0 : i32
    return %arg1, %arg0, %c0_i32 : i32, i32, i32
  }
}

module attributes {stable_mosaic.version = 11 : i64} {
  func.func @_gat_layer_kernel(%arg0: i32, %arg1: i32, %arg2: memref<16x16xf32, #tpu.memory_space<vmem>>, %arg3: memref<8x16xf32, #tpu.memory_space<vmem>>, %arg4: memref<8x16xf32, #tpu.memory_space<vmem>>, %arg5: memref<8x16x4xf32, #tpu.memory_space<vmem>>, %arg6: memref<1x16x8xf32, #tpu.memory_space<vmem>>, %arg7: memref<1x1x8xf32, #tpu.memory_space<vmem>>, %arg8: memref<1x16x8xf32, #tpu.memory_space<vmem>>, %arg9: memref<1x1x8xf32, #tpu.memory_space<vmem>>, %arg10: memref<1x4x8xf32, #tpu.memory_space<vmem>>, %arg11: memref<1x1x8xf32, #tpu.memory_space<vmem>>, %arg12: memref<1x1x8xf32, #tpu.memory_space<vmem>>, %arg13: memref<1x8x8xf32, #tpu.memory_space<vmem>>) attributes {dimension_semantics = [#tpu.dimension_semantics<parallel>, #tpu.dimension_semantics<arbitrary>], iteration_bounds = array<i64: 2, 2>, scalar_prefetch = 0 : i64, scratch_operands = 0 : i64, tpu.core_type = #tpu.core_type<tc>, window_params = [{pipeline_mode = #tpu.pipeline_mode<synchronous>, transform_indices = @transform_0, window_bounds = array<i64: 16, 16>}, {transform_indices = @transform_1, window_bounds = array<i64: 8, 16>}, {transform_indices = @transform_2, window_bounds = array<i64: 8, 16>}, {transform_indices = @transform_3, window_bounds = array<i64: 8, 16, 4>}, {transform_indices = @transform_4, window_bounds = array<i64: 1, 16, 8>}, {transform_indices = @transform_5, window_bounds = array<i64: 1, 1, 8>}, {transform_indices = @transform_6, window_bounds = array<i64: 1, 16, 8>}, {transform_indices = @transform_7, window_bounds = array<i64: 1, 1, 8>}, {transform_indices = @transform_8, window_bounds = array<i64: 1, 4, 8>}, {transform_indices = @transform_9, window_bounds = array<i64: 1, 1, 8>}, {transform_indices = @transform_10, window_bounds = array<i64: 1, 1, 8>}, {transform_indices = @transform_11, window_bounds = array<i64: 1, 8, 8>}]} {
    %c0 = arith.constant 0 : index
    %c0_0 = arith.constant 0 : index
    %0 = vector.load %arg2[%c0, %c0_0] : memref<16x16xf32, #tpu.memory_space<vmem>>, vector<16x16xf32>
    %c0_1 = arith.constant 0 : index
    %c0_2 = arith.constant 0 : index
    %c0_3 = arith.constant 0 : index
    %1 = vector.load %arg6[%c0_1, %c0_2, %c0_3] : memref<1x16x8xf32, #tpu.memory_space<vmem>>, vector<1x16x8xf32>
    %2 = vector.shape_cast %1 : vector<1x16x8xf32> to vector<16x8xf32>
    %cst = arith.constant dense<0.000000e+00> : vector<16x8xf32>
    %3 = tpu.matmul %0, %2, %cst {dimension_numbers = #tpu.dot_dimension_numbers<[1], [0], [0], [1], [0, 0, 1, 1], [], []>} : vector<16x16xf32>, vector<16x8xf32>, vector<16x8xf32> -> vector<16x8xf32>
    %c0_4 = arith.constant 0 : index
    %c0_5 = arith.constant 0 : index
    %c0_6 = arith.constant 0 : index
    %4 = vector.load %arg7[%c0_4, %c0_5, %c0_6] : memref<1x1x8xf32, #tpu.memory_space<vmem>>, vector<1x1x8xf32>
    %5 = vector.shape_cast %4 : vector<1x1x8xf32> to vector<1x8xf32>
    %6 = vector.broadcast %5 : vector<1x8xf32> to vector<16x8xf32>
    %7 = arith.addf %3, %6 : vector<16x8xf32>
    %c0_7 = arith.constant 0 : index
    %c0_8 = arith.constant 0 : index
    %8 = vector.load %arg3[%c0_7, %c0_8] : memref<8x16xf32, #tpu.memory_space<vmem>>, vector<8x16xf32>
    %c0_9 = arith.constant 0 : index
    %c0_10 = arith.constant 0 : index
    %c0_11 = arith.constant 0 : index
    %9 = vector.load %arg8[%c0_9, %c0_10, %c0_11] : memref<1x16x8xf32, #tpu.memory_space<vmem>>, vector<1x16x8xf32>
    %10 = vector.shape_cast %9 : vector<1x16x8xf32> to vector<16x8xf32>
    %cst_12 = arith.constant dense<0.000000e+00> : vector<8x8xf32>
    %11 = tpu.matmul %8, %10, %cst_12 {dimension_numbers = #tpu.dot_dimension_numbers<[1], [0], [0], [1], [0, 0, 1, 1], [], []>} : vector<8x16xf32>, vector<16x8xf32>, vector<8x8xf32> -> vector<8x8xf32>
    %c0_13 = arith.constant 0 : index
    %c0_14 = arith.constant 0 : index
    %c0_15 = arith.constant 0 : index
    %12 = vector.load %arg9[%c0_13, %c0_14, %c0_15] : memref<1x1x8xf32, #tpu.memory_space<vmem>>, vector<1x1x8xf32>
    %13 = vector.shape_cast %12 : vector<1x1x8xf32> to vector<1x8xf32>
    %14 = vector.broadcast %13 : vector<1x8xf32> to vector<8x8xf32>
    %15 = arith.addf %11, %14 : vector<8x8xf32>
    %c0_16 = arith.constant 0 : index
    %c0_17 = arith.constant 0 : index
    %c0_18 = arith.constant 0 : index
    %16 = vector.load %arg5[%c0_16, %c0_17, %c0_18] : memref<8x16x4xf32, #tpu.memory_space<vmem>>, vector<8x16x4xf32>
    %17 = vector.shape_cast %16 : vector<8x16x4xf32> to vector<128x4xf32>
    %c0_19 = arith.constant 0 : index
    %c0_20 = arith.constant 0 : index
    %c0_21 = arith.constant 0 : index
    %18 = vector.load %arg10[%c0_19, %c0_20, %c0_21] : memref<1x4x8xf32, #tpu.memory_space<vmem>>, vector<1x4x8xf32>
    %19 = vector.shape_cast %18 : vector<1x4x8xf32> to vector<4x8xf32>
    %cst_22 = arith.constant dense<0.000000e+00> : vector<128x8xf32>
    %20 = tpu.matmul %17, %19, %cst_22 {dimension_numbers = #tpu.dot_dimension_numbers<[1], [0], [0], [1], [0, 0, 1, 1], [], []>} : vector<128x4xf32>, vector<4x8xf32>, vector<128x8xf32> -> vector<128x8xf32>
    %21 = vector.shape_cast %20 : vector<128x8xf32> to vector<8x16x8xf32>
    %22 = vector.shape_cast %15 : vector<8x8xf32> to vector<8x1x8xf32>
    %23 = vector.broadcast %22 : vector<8x1x8xf32> to vector<8x16x8xf32>
    %24 = arith.addf %21, %23 : vector<8x16x8xf32>
    %25 = vector.shape_cast %7 : vector<16x8xf32> to vector<1x16x8xf32>
    %26 = vector.broadcast %25 : vector<1x16x8xf32> to vector<8x16x8xf32>
    %27 = arith.addf %24, %26 : vector<8x16x8xf32>
    %cst_23 = arith.constant 0.000000e+00 : f32
    %28 = vector.broadcast %cst_23 : f32 to vector<8x16x8xf32>
    %29 = arith.cmpf ogt, %27, %28 : vector<8x16x8xf32>
    %cst_24 = arith.constant 2.000000e-01 : f32
    %30 = vector.broadcast %cst_24 : f32 to vector<8x16x8xf32>
    %31 = arith.mulf %30, %27 : vector<8x16x8xf32>
    %32 = arith.select %29, %27, %31 : vector<8x16x8xi1>, vector<8x16x8xf32>
    %c0_25 = arith.constant 0 : index
    %c0_26 = arith.constant 0 : index
    %c0_27 = arith.constant 0 : index
    %33 = vector.load %arg11[%c0_25, %c0_26, %c0_27] : memref<1x1x8xf32, #tpu.memory_space<vmem>>, vector<1x1x8xf32>
    %34 = vector.broadcast %33 : vector<1x1x8xf32> to vector<8x16x8xf32>
    %35 = arith.mulf %32, %34 : vector<8x16x8xf32>
    %cst_28 = arith.constant dense<0.000000e+00> : vector<8x16xf32>
    %36 = vector.multi_reduction <add>, %35, %cst_28 [2] : vector<8x16x8xf32> to vector<8x16xf32>
    %c0_29 = arith.constant 0 : index
    %c0_30 = arith.constant 0 : index
    %37 = vector.load %arg4[%c0_29, %c0_30] : memref<8x16xf32, #tpu.memory_space<vmem>>, vector<8x16xf32>
    %38 = arith.addf %36, %37 : vector<8x16xf32>
    %cst_31 = arith.constant dense<0xFF800000> : vector<8xf32>
    %39 = vector.multi_reduction <maximumf>, %38, %cst_31 [1] : vector<8x16xf32> to vector<8xf32>
    %40 = vector.shape_cast %39 : vector<8xf32> to vector<8x1xf32>
    %41 = vector.broadcast %40 : vector<8x1xf32> to vector<8x16xf32>
    %42 = arith.subf %38, %41 : vector<8x16xf32>
    %43 = math.exp %42 : vector<8x16xf32>
    %cst_32 = arith.constant dense<0.000000e+00> : vector<8xf32>
    %44 = vector.multi_reduction <add>, %43, %cst_32 [1] : vector<8x16xf32> to vector<8xf32>
    %45 = vector.shape_cast %44 : vector<8xf32> to vector<8x1xf32>
    %46 = tpu.reciprocal %45 {approx = true} : vector<8x1xf32> -> vector<8x1xf32>
    %47 = vector.broadcast %46 : vector<8x1xf32> to vector<8x16xf32>
    %48 = arith.mulf %43, %47 : vector<8x16xf32>
    %cst_33 = arith.constant dense<0.000000e+00> : vector<8x8xf32>
    %49 = tpu.matmul %48, %7, %cst_33 {dimension_numbers = #tpu.dot_dimension_numbers<[1], [0], [0], [1], [0, 0, 1, 1], [], []>} : vector<8x16xf32>, vector<16x8xf32>, vector<8x8xf32> -> vector<8x8xf32>
    %c0_34 = arith.constant 0 : index
    %c0_35 = arith.constant 0 : index
    %c0_36 = arith.constant 0 : index
    %50 = vector.load %arg12[%c0_34, %c0_35, %c0_36] : memref<1x1x8xf32, #tpu.memory_space<vmem>>, vector<1x1x8xf32>
    %51 = vector.shape_cast %50 : vector<1x1x8xf32> to vector<1x8xf32>
    %52 = vector.broadcast %51 : vector<1x8xf32> to vector<8x8xf32>
    %53 = arith.addf %49, %52 : vector<8x8xf32>
    %c0_37 = arith.constant 0 : index
    %c0_38 = arith.constant 0 : index
    %c0_39 = arith.constant 0 : index
    %54 = vector.load %arg13[%c0_37, %c0_38, %c0_39] : memref<1x8x8xf32, #tpu.memory_space<vmem>>, vector<1x8x8xf32>
    %55 = vector.shape_cast %54 : vector<1x8x8xf32> to vector<8x8xf32>
    %56 = vector.shape_cast %53 : vector<8x8xf32> to vector<1x8x8xf32>
    tpu.vector_store %arg13[%c0_37, %c0_38, %c0_39], %56 {strides = array<i32>} : memref<1x8x8xf32, #tpu.memory_space<vmem>>, vector<1x8x8xf32>,
    return
  }
  func.func @transform_0(%arg0: i32, %arg1: i32) -> (i32, i32) {
    %c0_i32 = arith.constant 0 : i32
    %c0_i32_0 = arith.constant 0 : i32
    %c0_i32_1 = arith.constant 0 : i32
    return %c0_i32, %c0_i32_0 : i32, i32
  }
  func.func @transform_1(%arg0: i32, %arg1: i32) -> (i32, i32) {
    %c0_i32 = arith.constant 0 : i32
    %c0_i32_0 = arith.constant 0 : i32
    return %arg0, %c0_i32 : i32, i32
  }
  func.func @transform_2(%arg0: i32, %arg1: i32) -> (i32, i32) {
    %c0_i32 = arith.constant 0 : i32
    %c0_i32_0 = arith.constant 0 : i32
    return %arg0, %c0_i32 : i32, i32
  }
  func.func @transform_3(%arg0: i32, %arg1: i32) -> (i32, i32, i32) {
    %c0_i32 = arith.constant 0 : i32
    %c0_i32_0 = arith.constant 0 : i32
    %c0_i32_1 = arith.constant 0 : i32
    return %arg0, %c0_i32, %c0_i32_0 : i32, i32, i32
  }
  func.func @transform_4(%arg0: i32, %arg1: i32) -> (i32, i32, i32) {
    %c0_i32 = arith.constant 0 : i32
    %c0_i32_0 = arith.constant 0 : i32
    %c0_i32_1 = arith.constant 0 : i32
    return %arg1, %c0_i32, %c0_i32_0 : i32, i32, i32
  }
  func.func @transform_5(%arg0: i32, %arg1: i32) -> (i32, i32, i32) {
    %c0_i32 = arith.constant 0 : i32
    %c0_i32_0 = arith.constant 0 : i32
    %c0_i32_1 = arith.constant 0 : i32
    return %arg1, %c0_i32, %c0_i32_0 : i32, i32, i32
  }
  func.func @transform_6(%arg0: i32, %arg1: i32) -> (i32, i32, i32) {
    %c0_i32 = arith.constant 0 : i32
    %c0_i32_0 = arith.constant 0 : i32
    %c0_i32_1 = arith.constant 0 : i32
    return %arg1, %c0_i32, %c0_i32_0 : i32, i32, i32
  }
  func.func @transform_7(%arg0: i32, %arg1: i32) -> (i32, i32, i32) {
    %c0_i32 = arith.constant 0 : i32
    %c0_i32_0 = arith.constant 0 : i32
    %c0_i32_1 = arith.constant 0 : i32
    return %arg1, %c0_i32, %c0_i32_0 : i32, i32, i32
  }
  func.func @transform_8(%arg0: i32, %arg1: i32) -> (i32, i32, i32) {
    %c0_i32 = arith.constant 0 : i32
    %c0_i32_0 = arith.constant 0 : i32
    %c0_i32_1 = arith.constant 0 : i32
    return %arg1, %c0_i32, %c0_i32_0 : i32, i32, i32
  }
  func.func @transform_9(%arg0: i32, %arg1: i32) -> (i32, i32, i32) {
    %c0_i32 = arith.constant 0 : i32
    %c0_i32_0 = arith.constant 0 : i32
    %c0_i32_1 = arith.constant 0 : i32
    return %arg1, %c0_i32, %c0_i32_0 : i32, i32, i32
  }
  func.func @transform_10(%arg0: i32, %arg1: i32) -> (i32, i32, i32) {
    %c0_i32 = arith.constant 0 : i32
    %c0_i32_0 = arith.constant 0 : i32
    %c0_i32_1 = arith.constant 0 : i32
    return %arg1, %c0_i32, %c0_i32_0 : i32, i32, i32
  }
  func.func @transform_11(%arg0: i32, %arg1: i32) -> (i32, i32, i32) {
    %c0_i32 = arith.constant 0 : i32
    %c0_i32_0 = arith.constant 0 : i32
    return %arg1, %arg0, %c0_i32 : i32, i32, i32
  }
}

</mosaic_0001>

<bundles_post_ra>
// kernel: graph_encoder_gat_forward.5
= control target key start
LH: loop header
LB: loop body
LE: loop exit
PB: predicated region body
PF: predicated region fallthrough
CT: control target
= control target key end

     0   :  { %17 = vsyncpa [#allocation4], 0  ;;  %s1013_s17 = smov 0   ;;  %s1100_s0 = inlined_call_operand.vmem [shape: f32[16,16], index: 0, kind: input, shape index: {}]   ;;  %s1101_s1 = inlined_call_operand.vmem [shape: f32[16,2], index: 1, kind: input, shape index: {}]   ;;  %s1102_s2 = inlined_call_operand.vmem [shape: f32[16,8], index: 2, kind: input, shape index: {}]   ;;  %s1103_s3 = inlined_call_operand.vmem [shape: f32[1,8], index: 3, kind: input, shape index: {}]   ;;  %s1104_s4 = inlined_call_operand.vmem [shape: f32[1,8], index: 4, kind: input, shape index: {}]   ;;  %s1105_s5 = inlined_call_operand.vmem [shape: f32[1,8], index: 5, kind: input, shape index: {}]   ;;  %s1106_s6 = inlined_call_operand.vmem [shape: f32[16,8], index: 6, kind: input, shape index: {}]   ;;  %s1107_s7 = inlined_call_operand.vmem [shape: f32[1,8], index: 7, kind: input, shape index: {}]   ;;  %s1108_s8 = inlined_call_operand.vmem [shape: f32[1,8], index: 8, kind: input, shape index: {}]   ;;  %s1109_s9 = inlined_call_operand.vmem [shape: f32[1,8], index: 9, kind: input, shape index: {}]   ;;  %s1110_s10 = inlined_call_operand.vmem [shape: f32[16,8], index: 10, kind: output, shape index: {0}]   ;;  %s1111_s11 = inlined_call_operand.hbm [shape: f32[2,8], index: 11, kind: output, shape index: {1}]  }
   0x1 LB: > { %s1019_s18 = sadd.s32 4294967295, %s945_s17   ;;  %p841_p0 = scmp.ge.s32.totalorder %s945_s17, 1  ;;  %s945_s17 = sphi %s1013_s17, %s23_s17  }
   0x2   : > { %p344_p1 = scmp.lt.s32.totalorder %s945_s17, 3 }
   0x4   : > { %p345_p2 = pnand %p841_p0, %p344_p1 }
   0x5   : > { %p386_p3 = scmp.lt.s32.totalorder (!%p345_p2), %s1019_s18, 1  ;;  %p845_p4 = scmp.ne.s32.totalorder (!%p345_p2), %s1019_s18, 0 }
   0x6   : > { %348 = sbr.rel (%p345_p2) target bundleno = 1052 (0x41c), region = 60 }
   0xb   : > { %s387_s19 = scalar_select %p386_p3, %s1019_s18, 1 }
   0xc   : > { %401 = sbr.rel (%p845_p4) target bundleno = 19 (0x13), region = 64 }
   0xd   : > { %s1025_s20 = sshll.u32 %s387_s19, 3 }
   0xe   : > { %s389_s23 = scalar_lea.vmem %s1100_s0, %s1025_s20  ;;  %s393_s26 = scalar_lea.vmem %s1101_s1, %s1025_s20 }
   0xf   : > { %s397_s29 = scalar_lea.vmem %s1110_s10, %s1025_s20 }
  0x11   : > { %vm402_vm0 = vcmask 123904   ;;  %v947_v0 = vmov 0.0  }
  0x12   : > { %403 = vst.msk [vmem:[#allocation2] sm:$0x3] %vm402_vm0, %v947_v0 }
  0x13 PF: > { %v406_v1 = vld [vmem:[%s1102_s2 + $0x8] sm:$0xff]  ;;  %v948_v2 = vmov 0.0   ;;  %v405_v3 = vld [vmem:[%s1102_s2] sm:$0xff]  ;;  %vm949_vm1 = vmmov 0   ;;  %vm414_vm2 = vcmask 130048   ;;  %vm488_vm3 = vcmask 64512  }
  0x14   : > { %868 = vmatprep.subr.mxu0 %v948_v2  ;;  %872 = vmatprep.mubr.msk.f32.mxu0 %vm949_vm1, %v948_v2  ;;  %v521_v4 = vld [vmem:[%s393_s26] sm:$0xff]  ;;  %vm628_vm4 = vcmask 123904   ;;  %p851_p5 = scmp.ne.s32.totalorder %s1019_s18, 1 }
  0x15   : > { %869 = vmatpush3.msra.mxu0 %v406_v1  ;;  %v404_v5 = vld [vmem:[%s389_s23] sm:$0xff]  ;;  %522 = vxpose.xlu0.b32.start.end [1/1] (short) (narrow) %v521_v4, 8 }
  0x16   : > { %870 = vmatprep.subr.mxu0 %v948_v2  ;;  %875 = vmatprep.subr.mxu1 %v948_v2  ;;  %v846_v7 = vld [vmem:[%s1103_s3] ss:$0 sm:$0xff] }
  0x17   : > { %871 = vmatpush3.msra.mxu0 %v405_v3  ;;  %876 = vmatpush3.msra.mxu1 %v404_v5  ;;  %v848_v25 = vld [vmem:[%s1104_s4] ss:$0 sm:$0xff] }
  0x18   : > { %873 = vmatmul.mubr.msk.f32.vlgmr.msra.gmra.mxu0 %vm414_vm2, %v404_v5  ;;  %877 = vmatprep.mubr.msk.f32.mxu1 %vm949_vm1, %v948_v2  ;;  %v849_v27 = vld [vmem:[%s1105_s5] ss:$0 sm:$0xff] }
  0x19   : > { %v520_v18 = vld [vmem:[#allocation2] sm:$0x3] }
  0x91   : > { %v538_v6 = vpop.trf.xlu0 }
  0x92   : > { %878 = vmatmul.mubr.msk.f32.vlgmr.msra.gmra.mxu1 %vm488_vm3, %v538_v6 }
  0xd8   : > { %v484_v8 = vpop.f32.mrf.mxu0 }
  0xd9   : > { %v485_v9 = vadd.f32 %v846_v7, %v484_v8 }
  0xda   : > { %v874_v10 = vpop.f32.mrf.mxu0 }
  0xdb   : > { %v489_v11 = vsel %vm488_vm3, %v485_v9, 0.0 }
  0xdc   : > { %490 = vadd.xlane.f32.xlu0 %v489_v11 }
 0x152   : > { %v623_v17 = vpop.f32.mrf.mxu1 }
 0x153   : > { %v627_v20 = vadd.f32 %v623_v17, %v520_v18 }
 0x154   : > { %v879_v19 = vpop.f32.mrf.mxu1 }
 0x155   : > { %629 = vst.msk [vmem:[#allocation2] sm:$0x3] %vm628_vm4, %v627_v20 }
 0x165   : > { %v491_v12 = vpop.xlane.xlu0 %490 }
 0x166   : > { %v493_v13 = vmul.f32 0.125, %v491_v12 }
 0x168   : > { %v494_v14 = vsub.f32 %v485_v9, %v493_v13 }
 0x16a   : > { %v495_v15 = vmul.f32 %v494_v14, %v494_v14 }
 0x16c   : > { %v496_v16 = vsel %vm488_vm3, %v495_v15, 0.0 }
 0x16d   : > { %497 = vadd.xlane.f32.xlu1 %v496_v16 }
 0x1f6   : > { %v498_v21 = vpop.xlane.xlu1 %497 }
 0x1f7   : > { %v499_v22 = vmul.f32 0.125, %v498_v21 }
 0x1f9   : > { %v500_v23 = vadd.f32 1e-05, %v499_v22 }
 0x1fb   : > { %907 = vrsqrt.f32 %v500_v23 }
 0x208   : > { %v908_v24 = vpop.eup %907 }
 0x209   : > { %v502_v26 = vmul.f32 %v908_v24, %v494_v14 }
 0x20b   : > { %v510_v28 = vmul.f32 %v848_v25, %v502_v26  ;;  %633 = sbr.rel (%p851_p5) target bundleno = 1037 (0x40d), region = 68 }
 0x20d   : > { %v518_v29 = vadd.f32 %v849_v27, %v510_v28 }
 0x20f   : > { %519 = vst.msk [vmem:[%s397_s29] sm:$0xff] %vm488_vm3, %v518_v29 }
 0x210   : > { %v636_v30 = vld [vmem:[%s1106_s6 + $0x8] sm:$0xff]  ;;  %v950_v31 = vmov 0.0   ;;  %v635_v32 = vld [vmem:[%s1106_s6] sm:$0xff]  ;;  %vm951_vm5 = vmmov 0   ;;  %vm717_vm6 = vcmask 58368  }
 0x211   : > { %880 = vmatprep.subr.mxu0 %v950_v31  ;;  %884 = vmatprep.mubr.msk.f32.mxu0 %vm951_vm5, %v950_v31  ;;  %v634_v33 = vld [vmem:[#allocation2] sm:$0x3] }
 0x212   : > { %881 = vmatpush3.msra.mxu0 %v636_v30  ;;  %v852_v34 = vld [vmem:[%s1107_s7] ss:$0 sm:$0xff] }
 0x213   : > { %882 = vmatprep.subr.mxu0 %v950_v31  ;;  %v854_v48 = vld [vmem:[%s1108_s8] ss:$0 sm:$0xff] }
 0x214   : > { %883 = vmatpush3.msra.mxu0 %v635_v32  ;;  %v855_v50 = vld [vmem:[%s1109_s9] ss:$0 sm:$0xff] }
 0x215   : > { %885 = vmatmul.mubr.msk.f32.vlgmr.msra.gmra.mxu0 %vm414_vm2, %v634_v33 }
 0x2d5   : > { %v713_v35 = vpop.f32.mrf.mxu0 }
 0x2d6   : > { %v714_v36 = vadd.f32 %v852_v34, %v713_v35 }
 0x2d7   : > { %v886_v37 = vpop.f32.mrf.mxu0 }
 0x2d8   : > { %v718_v38 = vsel %vm717_vm6, %v714_v36, 0.0 }
 0x2d9   : > { %719 = vadd.xlane.f32.xlu0 %v718_v38 }
 0x362   : > { %v720_v39 = vpop.xlane.xlu0 %719 }
 0x363   : > { %v721_v40 = vmul.f32 0.125, %v720_v39 }
 0x365   : > { %v722_v41 = vsub.f32 %v714_v36, %v721_v40 }
 0x367   : > { %v723_v42 = vmul.f32 %v722_v41, %v722_v41 }
 0x369   : > { %v724_v43 = vsel %vm717_vm6, %v723_v42, 0.0 }
 0x36a   : > { %725 = vadd.xlane.f32.xlu0 %v724_v43 }
 0x3f3   : > { %v726_v44 = vpop.xlane.xlu0 %725 }
 0x3f4   : > { %v727_v45 = vmul.f32 0.125, %v726_v44 }
 0x3f6   : > { %v728_v46 = vadd.f32 1e-05, %v727_v45 }
 0x3f8   : > { %909 = vrsqrt.f32 %v728_v46 }
 0x405   : > { %v910_v47 = vpop.eup %909 }
 0x406   : > { %v730_v49 = vmul.f32 %v910_v47, %v722_v41 }
 0x408   : > { %v738_v51 = vmul.f32 %v854_v48, %v730_v49 }
 0x40a   : > { %v746_v52 = vadd.f32 %v855_v50, %v738_v51 }
 0x40c   : > { %747 = vst.msk [vmem:[#allocation3] sm:$0x3] %vm717_vm6, %v746_v52 }
 0x40d PF: > { %p891_p6 = scmp.eq.s32.totalorder %s1019_s18, 1  ;;  %s952_s16 = smov [#allocation3]  }
 0x40e   : > { %s762_s19 = sshll.u32 %s952_s16, 4  ;;  %s763_s19 = int_to_ptr.vmem [resolvable:$true] %s762_s19 }
 0x40f   : > { %s911_s21 = scalar_lea.vmem %s763_s19, 32  ;;  %p918_p10 = scmp.lt.s32.totalorder %s763_s19, %s763_s19 }
 0x410   : > { %p912_p7 = scmp.ne.s32.totalorder %s763_s19, %s911_s21  ;;  %p919_p11 = scmp.lt.s32.totalorder %s911_s21, %s911_s21 }
 0x412   : > { %p913_p8 = pnand %p912_p7, %p891_p6  ;;  %p920_p12 = por %p919_p11, %p918_p10 }
 0x414   : > { %p914_p9 = pneg %p913_p8 }
 0x416   : > { %p921_p13 = pnand %p920_p12, %p914_p9 }
 0x418   : > { %924 = shalt.err (!%p921_p13)
}
 0x419   : > { %888 = dma.vmem_to_hbm [thread:$0]  (%p891_p6), %s763_s19, 32, %s1111_s11, [#allocation4]  }
 0x41a   : > { %940 = dma.done.wait (%p891_p6), [#allocation4], 32  }
 0x41b   : > { %942 = vsyncadd (%p891_p6), [#allocation4], 4294967264 }
 0x41c PF: > { %s23_s17 = sadd.s32 1, %s945_s17  }
 0x41d   : > { %p20_p0 = scmp.ge.s32.totalorder %s23_s17, 4  }
 0x41f   :  { %22 = sbr.rel (!%p20_p0) target bundleno = 1 (0x1), region = 110 }
 0x424   :  { %782 = vsyncpa [#allocation4], 1 }
 0x425   :  { %784 = vsyncpa [#allocation4 + $0x1], 1 }

// kernel: graph_encoder_gat_forward.3
= control target key start
LH: loop header
LB: loop body
LE: loop exit
PB: predicated region body
PF: predicated region fallthrough
CT: control target
= control target key end

     0   :  { %s2483_s17 = smov 0   ;;  %s2485_s18 = smov 0   ;;  %s3001_s0 = inlined_call_operand.vmem [shape: f32[16,10], index: 0, kind: input, shape index: {}, may-alias: {0,1}]   ;;  %s3002_s1 = inlined_call_operand.vmem [shape: f32[16,10], index: 1, kind: input, shape index: {}, may-alias: {0,1}]   ;;  %s3003_s2 = inlined_call_operand.vmem [shape: f32[16,16], index: 2, kind: input, shape index: {}]   ;;  %s3004_s3 = inlined_call_operand.vmem [shape: f32[16,16,4], index: 3, kind: input, shape index: {}]   ;;  %s3005_s4 = inlined_call_operand.vmem [shape: f32[2,10,8], index: 4, kind: input, shape index: {}]   ;;  %s3006_s5 = inlined_call_operand.vmem [shape: f32[2,1,8], index: 5, kind: input, shape index: {}]   ;;  %s3007_s6 = inlined_call_operand.vmem [shape: f32[2,10,8], index: 6, kind: input, shape index: {}]   ;;  %s3008_s7 = inlined_call_operand.vmem [shape: f32[2,1,8], index: 7, kind: input, shape index: {}]   ;;  %s3009_s8 = inlined_call_operand.vmem [shape: f32[2,4,8], index: 8, kind: input, shape index: {}]   ;;  %s3010_s9 = inlined_call_operand.vmem [shape: f32[2,1,8], index: 9, kind: input, shape index: {}]   ;;  %s3011_s10 = inlined_call_operand.vmem [shape: f32[2,1,8], index: 10, kind: input, shape index: {}]   ;;  %s3012_s11 = inlined_call_operand.vmem [shape: f32[2,16,8], index: 11, kind: output, shape index: {}]  }
   0x1   :  { %s2487_s19 = smov 0   ;;  %s2489_s20 = smov 0  }
   0x2   :  { %s2491_s21 = smov 0  }
   0x3 LB: > { %s30_s22 = sadd.s32 1, %s2409_s19  ;;  %s33_s23 = sadd.s32 1, %s2413_s20  ;;  %s2417_s21 = sphi %s2491_s21, %s21_s21   ;;  %s2413_s20 = sphi %s2489_s20, %s3016_s20   ;;  %s2409_s19 = sphi %s2487_s19, %s3015_s19   ;;  %s2405_s18 = sphi %s2485_s18, %s3014_s18   ;;  %s2401_s17 = sphi %s2483_s17, %s3013_s17  }
   0x4   : > { %p31_p0 = scmp.ge.s32.totalorder %s30_s22, 2  ;;  %p2178_p1 = scmp.ge.s32.totalorder %s2417_s21, 1 }
   0x5   : > { %p432_p2 = scmp.lt.s32.totalorder %s2417_s21, 5 }
   0x6   : > { %s3018_s22 = smov (%p31_p0, %s30_s22), 0  ;;  %s3020_s23 = smov (!%p31_p0, %s33_s23), %s2413_s20 }
   0x7   : > { %p433_p3 = pnand %p2178_p1, %p432_p2  ;;  %p35_p4 = scmp.ge.s32.totalorder %s3020_s23, 2 }
   0x8   : > { %p525_p5 = scmp.lt.s32.totalorder (!%p433_p3), %s2401_s17, 1  ;;  %p510_p6 = scmp.lt.s32.totalorder (!%p433_p3), %s2405_s18, 1 }
   0x9   : > { %s3022_s23 = smov (%p35_p4, %s3020_s23), 0  ;;  %436 = sbr.rel (%p433_p3) target bundleno = 1412 (0x584), region = 64 }
   0xa   : > { %s2181_s28 = sshll.u32 (!%p433_p3), %s2405_s18, 3 }
   0xb   : > { %p519_p7 = scmp.lt.s32.totalorder (!%p433_p3), %s2181_s28, 15 }
   0xe   : > { %v559_v0 = vld [vmem:[%s3001_s0] sm:$0xff]  ;;  %vm570_vm0 = vcmask 80896   ;;  %v2419_v1 = vmov 0.0   ;;  %vm2420_vm1 = vmmov 0   ;;  %v962_v2 = vlaneseq  ;;  %s3024_s17 = smov (!%p525_p5, %s2401_s17), 1  ;;  %v560_v11 = vld [vmem:[%s3001_s0 + $0x8] sm:$0xff] }
   0xf   : > { %2257 = vmatprep.subr.mxu1 %v2419_v1  ;;  %2261 = vmatprep.mubr.msk.f32.mxu1 %vm2420_vm1, %v2419_v1  ;;  %s2526_s26 = scalar_select %p510_p6, %s2405_s18, 1  ;;  %vm577_vm2 = vcmask 1041408   ;;  %vm808_vm3 = vcmask 1043456   ;;  %vm759_vm4 = vcmask 31744   ;;  %v2421_v42 = vmov 1966171168  }
  0x10   : > { %2254 = vmatprep.mubr.msk.f32.mxu0 %vm570_vm0, %v559_v0  ;;  %v2529_v3 = vshrl.u32 %v962_v2, 7  ;;  %s2221_s27 = sshll.u32 %s3024_s17, 4  ;;  %s2188_s14 = sshll.u32 %s3024_s17, 2  ;;  %v960_v43 = vunpack.c.l.s4 %v2421_v42  ;;  %vm1150_vm6 = vcmask 64512  }
  0x11   : > { %s529_s12 = scalar_lea.vmem %s3005_s4, %s2221_s27  ;;  %s537_s15 = scalar_lea.vmem %s3007_s6, %s2221_s27 }
  0x12   : > { %v2540_v4 = vsub.s32 0, %v2529_v3  ;;  %v562_v5 = vld [vmem:[%s529_s12 + $0x8] sm:$0x3]  ;;  %v561_v7 = vld [vmem:[%s529_s12] sm:$0xff]  ;;  %s2179_s16 = sshll.u32 %s2526_s26, 3  ;;  %s544_s24 = scalar_lea.vmem %s3009_s8, %s2188_s14  ;;  %v2563_v14 = vsub.s32 1, %v2529_v3  ;;  %v961_v44 = vunpack.c.0.s8 %v960_v43 }
  0x13   : > { %v658_v6 = vld [vmem:[%s537_s15 + $0x8] sm:$0x3]  ;;  %2250 = vmatprep.subr.msk.mxu0 %vm577_vm2, %v562_v5  ;;  %v657_v8 = vld [vmem:[%s537_s15] sm:$0xff]  ;;  %s513_s25 = scalar_lea.vmem %s3002_s1, %s2179_s16  ;;  %s517_s13 = scalar_lea.vmem %s3003_s2, %s2179_s16  ;;  %v2570_v15 = vsub.s32 2, %v2529_v3  ;;  %v2594_v24 = vsub.s32 3, %v2529_v3  ;;  %v2607_v30 = vsub.s32 4, %v2529_v3 }
  0x14   : > { %2258 = vmatpush3.msk.msra.mxu1 %vm577_vm2, %v658_v6  ;;  %2251 = vmatpush3.msk.msra.mxu0 %vm577_vm2, %v562_v5  ;;  %v656_v9 = vld [vmem:[%s513_s25] sm:$0xff]  ;;  %s3026_s28 = smov (!%p519_p7, %s2181_s28), 15  ;;  %v2619_v35 = vsub.s32 5, %v2529_v3  ;;  %v2630_v39 = vsub.s32 6, %v2529_v3  ;;  %s540_s27 = scalar_lea.vmem %s3008_s7, %s3024_s17  ;;  %v964_v46 = vsub.s32 %v961_v44, %v2529_v3 }
  0x15   : > { %2259 = vmatprep.subr.mxu1 %v2419_v1  ;;  %v2550_v10 = vld [vmem:[%s517_s13] sm:$0xff]  ;;  %2252 = vmatprep.subr.mxu0 %v561_v7  ;;  %s2220_s16 = sshll.u32 %s3026_s28, 4  ;;  %s532_s15 = scalar_lea.vmem %s3006_s5, %s3024_s17 }
  0x16   : > { %2260 = vmatpush3.msra.mxu1 %v657_v8  ;;  %v1204_v12 = vrot.slane %v2550_v10, %v2540_v4  ;;  %2253 = vmatpush3.msra.mxu0 %v561_v7  ;;  %v758_v13 = vld [vmem:[%s544_s24] sm:$0xf]  ;;  %s2576_s30 = scalar_lea.vmem %s3004_s3, %s2220_s16  ;;  %v1215_v19 = vrot.slane %v2550_v10, %v2563_v14  ;;  %v1226_v23 = vrot.slane %v2550_v10, %v2570_v15  ;;  %s547_s16 = scalar_lea.vmem %s3010_s9, %s3024_s17 }
  0x17   : > { %2262 = vmatmul.mubr.msk.f32.vlgmr.msra.gmra.mxu1 %vm570_vm0, %v656_v9  ;;  %2255 = vmatmul.mubr.msk.f32.vlgmr.msra.gmra.mxu0 %vm570_vm0, %v560_v11  ;;  %v752_v16 = vld [vmem:[%s2576_s30 + $0x50] sm:$0xff]  ;;  %v742_v17 = vld [vmem:[%s2576_s30] sm:$0xff]  ;;  %v753_v18 = vld [vmem:[%s2576_s30 + $0x58] sm:$0xff]  ;;  %v1237_v29 = vrot.slane %v2550_v10, %v2594_v24  ;;  %v1248_v34 = vrot.slane %v2550_v10, %v2607_v30  ;;  %v1259_v38 = vrot.slane %v2550_v10, %v2619_v35  ;;  %s2189_s25 = sshll.u32 %s3024_s17, 1  ;;  %s550_s28 = scalar_lea.vmem %s3011_s10, %s3024_s17 }
  0x18   : > { %2264 = vmatprep.subr.msk.mxu0 %vm808_vm3, %v758_v13  ;;  %2297 = vmatprep.subr.msk.mxu1 %vm808_vm3, %v758_v13  ;;  %v743_v20 = vld [vmem:[%s2576_s30 + $0x8] sm:$0xff]  ;;  %v754_v21 = vld [vmem:[%s2576_s30 + $0x60] sm:$0xff]  ;;  %v744_v22 = vld [vmem:[%s2576_s30 + $0x10] sm:$0xff]  ;;  %v1270_v41 = vrot.slane %v2550_v10, %v2630_v39  ;;  %s556_s13 = sadd.s32 %s2189_s25, %s2526_s26 }
  0x19   : > { %2265 = vmatpush3.msk.msra.mxu0 %vm808_vm3, %v758_v13  ;;  %2298 = vmatpush3.msk.msra.mxu1 %vm808_vm3, %v758_v13  ;;  %v755_v25 = vld [vmem:[%s2576_s30 + $0x68] sm:$0xff]  ;;  %v745_v26 = vld [vmem:[%s2576_s30 + $0x18] sm:$0xff]  ;;  %v756_v27 = vld [vmem:[%s2576_s30 + $0x70] sm:$0xff] }
  0x1a   : > { %1210 = vbcast.lane.b32.xlu1 %v1204_v12, 264  ;;  %1206 = vbcast.lane.b32.xlu0 %v1204_v12, 256  ;;  %v746_v28 = vld [vmem:[%s2576_s30 + $0x20] sm:$0xff]  ;;  %v757_v31 = vld [vmem:[%s2576_s30 + $0x78] sm:$0xff]  ;;  %v747_v32 = vld [vmem:[%s2576_s30 + $0x28] sm:$0xff] }
  0x1b   : > { %2290 = vmatprep.subr.mxu1 %v2419_v1  ;;  %2281 = vmatprep.mubr.msk.f32.mxu1 %vm759_vm4, %v752_v16  ;;  %v748_v33 = vld [vmem:[%s2576_s30 + $0x30] sm:$0xff]  ;;  %v749_v36 = vld [vmem:[%s2576_s30 + $0x38] sm:$0xff]  ;;  %v750_v37 = vld [vmem:[%s2576_s30 + $0x40] sm:$0xff] }
  0x1c   : > { %2266 = vmatprep.mubr.msk.f32.mxu0 %vm759_vm4, %v742_v17  ;;  %2282 = vmatmul.mubr.msk.f32.vlgmr.msra.gmra.mxu1 %vm759_vm4, %v753_v18  ;;  %v751_v40 = vld [vmem:[%s2576_s30 + $0x48] sm:$0xff]  ;;  %v2195_v45 = vld [vmem:[%s540_s27] ss:$0 sm:$0xff]  ;;  %s2190_s27 = sshll.u32 %s556_s13, 3 }
  0x1d   : > { %2267 = vmatmul.mubr.msk.f32.vlgmr.msra.gmra.mxu0 %vm759_vm4, %v743_v20  ;;  %2284 = vmatprep.mubr.msk.f32.mxu1 %vm759_vm4, %v754_v21  ;;  %v2191_v47 = vld [vmem:[%s532_s15] ss:$0 sm:$0xff]  ;;  %s558_s15 = scalar_lea.vmem %s3012_s11, %s2190_s27 }
  0x1e   : > { %2269 = vmatprep.mubr.msk.f32.mxu0 %vm759_vm4, %v744_v22  ;;  %1217 = vbcast.lane.b32.xlu1 %v1215_v19, 256 }
  0x1f   : > { %1228 = vbcast.lane.b32.xlu0 %v1226_v23, 256 }
  0x20   : > { %2285 = vmatmul.mubr.msk.f32.gmra.mxu1 %vm759_vm4, %v755_v25 }
  0x21   : > { %2270 = vmatmul.mubr.msk.f32.gmra.mxu0 %vm759_vm4, %v745_v26  ;;  %2287 = vmatprep.mubr.msk.f32.mxu1 %vm759_vm4, %v756_v27 }
  0x22   : > { %2272 = vmatprep.mubr.msk.f32.mxu0 %vm759_vm4, %v746_v28  ;;  %1221 = vbcast.lane.b32.xlu1 %v1215_v19, 264 }
  0x23   : > { %1239 = vbcast.lane.b32.xlu0 %v1237_v29, 256 }
  0x24   : > { %2288 = vmatmul.mubr.msk.f32.gmra.mxu1 %vm759_vm4, %v757_v31 }
  0x25   : > { %2273 = vmatmul.mubr.msk.f32.gmra.mxu0 %vm759_vm4, %v747_v32  ;;  %2294 = vmatprep.mubr.msk.f32.mxu1 %vm2420_vm1, %v2419_v1 }
  0x26   : > { %2275 = vmatprep.mubr.msk.f32.mxu0 %vm759_vm4, %v748_v33  ;;  %1232 = vbcast.lane.b32.xlu1 %v1226_v23, 264 }
  0x27   : > { %1250 = vbcast.lane.b32.xlu0 %v1248_v34, 256 }
  0x29   : > { %2276 = vmatmul.mubr.msk.f32.gmra.mxu0 %vm759_vm4, %v749_v36 }
  0x2a   : > { %2278 = vmatprep.mubr.msk.f32.mxu0 %vm759_vm4, %v750_v37  ;;  %1243 = vbcast.lane.b32.xlu1 %v1237_v29, 264 }
  0x2b   : > { %1261 = vbcast.lane.b32.xlu0 %v1259_v38, 256 }
  0x2d   : > { %2279 = vmatmul.mubr.msk.f32.gmra.mxu0 %vm759_vm4, %v751_v40 }
  0x2e   : > { %1254 = vbcast.lane.b32.xlu1 %v1248_v34, 264 }
  0x2f   : > { %1272 = vbcast.lane.b32.xlu0 %v1270_v41, 256 }
  0x32   : > { %1265 = vbcast.lane.b32.xlu1 %v1259_v38, 264 }
  0x36   : > { %1276 = vbcast.lane.b32.xlu1 %v1270_v41, 264 }
  0xd7   : > { %v738_v48 = vpop.f32.mrf.mxu1  ;;  %v2256_v50 = vpop.f32.mrf.mxu0 }
  0xd8   : > { %v739_v49 = vadd.f32 %v2195_v45, %v738_v48  ;;  %v2646_v51 = vadd.f32 %v2256_v50, %v2191_v47  ;;  %v2673_v50 = vld [vmem:[%s547_s16] ss:$0 sm:$0xff] }
  0xd9   : > { %v2263_v52 = vpop.f32.mrf.mxu1  ;;  %v647_v55 = vpop.f32.mrf.mxu0 }
  0xda   : > { %v958_v53 = vcombine.high %v739_v49, %v739_v49  ;;  %v965_v54 = vrot.slane %v739_v49, %v964_v46  ;;  %v2648_v56 = vadd.f32 %v2191_v47, %v647_v55  ;;  %2291 = vmatpush3.msra.mxu1 %v2646_v51 }
  0xdb   : > { %2292 = vmatprep.subr.mxu1 %v2419_v1 }
  0xdc   : > { %v972_v57 = vrot.slane %v958_v53, %v964_v46  ;;  %v973_v58 = vcombine.high %v965_v54, %v965_v54  ;;  %v981_v59 = vrot.slane %v965_v54, %v964_v46  ;;  %v2283_v60 = vpop.f32.mrf.mxu1  ;;  %2293 = vmatpush3.msra.mxu1 %v2648_v56 }
  0xdd   : > { %v2268_v61 = vpop.f32.mrf.mxu0 }
  0xde   : > { %v974_v62 = vcombine.high %v972_v57, %v972_v57  ;;  %v1010_v63 = vrot.slane %v981_v59, %v2540_v4  ;;  %v2654_v0 = vrot.slane %v972_v57, %v964_v46  ;;  %v995_v5 = vrot.slane %v973_v58, %v964_v46  ;;  %v928_v6 = vpop.f32.mrf.mxu1 }
  0xdf   : > { %v878_v7 = vpop.f32.mrf.mxu0  ;;  %v1003_v33 = vcombine.high %v981_v59, %v981_v59 }
  0xe0   : > { %v1002_v8 = vrot.slane %v974_v62, %v964_v46  ;;  %v1048_v9 = vadd.f32 %v2268_v61, %v1010_v63  ;;  %v1047_v11 = vadd.f32 %v1010_v63, %v878_v7  ;;  %v2286_v12 = vpop.f32.mrf.mxu1  ;;  %v1004_v13 = vcombine.high %v2654_v0, %v2654_v0 }
  0xe1   : > { %v2271_v1 = vpop.f32.mrf.mxu0  ;;  %v1014_v16 = vrot.slane %v995_v5, %v2540_v4  ;;  %v1005_v38 = vcombine.high %v995_v5, %v995_v5  ;;  %v1018_v48 = vrot.slane %v1003_v33, %v2540_v4 }
  0xe2   : > { %v1030_v17 = vrot.slane %v1002_v8, %v2540_v4  ;;  %v938_v19 = vpop.f32.mrf.mxu1  ;;  %v1064_v21 = vadd.f32 %v1048_v9, %v2646_v51  ;;  %v1006_v22 = vcombine.high %v1002_v8, %v1002_v8  ;;  %v1063_v23 = vadd.f32 %v1047_v11, %v2648_v56 }
  0xe3   : > { %v1050_v18 = vadd.f32 %v2271_v1, %v1014_v16  ;;  %v888_v20 = vpop.f32.mrf.mxu0  ;;  %v1034_v25 = vrot.slane %v1004_v13, %v2540_v4  ;;  %v1022_v55 = vrot.slane %v1005_v38, %v2540_v4 }
  0xe4   : > { %v1049_v27 = vadd.f32 %v1014_v16, %v888_v20  ;;  %v2289_v28 = vpop.f32.mrf.mxu1  ;;  %v1058_v31 = vadd.f32 %v2283_v60, %v1030_v17  ;;  %v1057_v32 = vadd.f32 %v1030_v17, %v928_v6  ;;  %v1038_v37 = vrot.slane %v1006_v22, %v2540_v4 }
  0xe5   : > { %v1066_v26 = vadd.f32 %v1050_v18, %v2646_v51  ;;  %v2274_v29 = vpop.f32.mrf.mxu0  ;;  %v1096_v40 = vmul.f32 0.2, %v1064_v21  ;;  %v1095_v41 = vmul.f32 0.2, %v1063_v23  ;;  %v1059_v43 = vadd.f32 %v1034_v25, %v938_v19 }
  0xe6   : > { %v1065_v36 = vadd.f32 %v1049_v27, %v2648_v56  ;;  %v948_v44 = vpop.f32.mrf.mxu1  ;;  %v1074_v45 = vadd.f32 %v1058_v31, %v2646_v51  ;;  %v1073_v46 = vadd.f32 %v1057_v32, %v2648_v56  ;;  %v1060_v47 = vadd.f32 %v2286_v12, %v1034_v25 }
  0xe7   : > { %v898_v34 = vpop.f32.mrf.mxu0  ;;  %v1098_v42 = vmul.f32 0.2, %v1066_v26  ;;  %vm1079_vm5 = vcmp.gt.f32.partialorder %v1063_v23, 0.0  ;;  %vm1082_vm7 = vcmp.gt.f32.partialorder %v1066_v26, 0.0  ;;  %vm1080_vm8 = vcmp.gt.f32.partialorder %v1064_v21, 0.0 }
  0xe8   : > { %v1097_v52 = vmul.f32 0.2, %v1065_v36  ;;  %v1052_v53 = vadd.f32 %v2274_v29, %v1018_v48  ;;  %v1061_v54 = vadd.f32 %v1038_v37, %v948_v44  ;;  %v1075_v57 = vadd.f32 %v1059_v43, %v2648_v56 }
  0xe9   : > { %v2277_v49 = vpop.f32.mrf.mxu0  ;;  %v1111_v58 = vsel %vm1079_vm5, %v1063_v23, %v1095_v41  ;;  %v1114_v59 = vsel %vm1082_vm7, %v1066_v26, %v1098_v42  ;;  %v1112_v60 = vsel %vm1080_vm8, %v1064_v21, %v1096_v40  ;;  %v1106_v61 = vmul.f32 0.2, %v1074_v45 }
  0xea   : > { %v1105_v62 = vmul.f32 0.2, %v1073_v46  ;;  %v1076_v63 = vadd.f32 %v1060_v47, %v2646_v51  ;;  %v1134_v6 = vmul.f32 %v2673_v50, %v1111_v58  ;;  %v1062_v7 = vadd.f32 %v2289_v28, %v1038_v37 }
  0xeb   : > { %v908_v5 = vpop.f32.mrf.mxu0  ;;  %v1051_v8 = vadd.f32 %v1018_v48, %v898_v34  ;;  %v1137_v9 = vmul.f32 %v2673_v50, %v1114_v59  ;;  %vm1081_vm9 = vcmp.gt.f32.partialorder %v1065_v36, 0.0  ;;  %v1077_v11 = vadd.f32 %v1061_v54, %v2648_v56 }
  0xec   : > { %v1151_v12 = vsel %vm1150_vm6, %v1134_v6, 0.0  ;;  %v1135_v13 = vmul.f32 %v2673_v50, %v1112_v60  ;;  %v1113_v1 = vsel %vm1081_vm9, %v1065_v36, %v1097_v52  ;;  %v1107_v16 = vmul.f32 0.2, %v1075_v57 }
  0xed   : > { %v1068_v17 = vadd.f32 %v1052_v53, %v2646_v51  ;;  %1152 = vadd.xlane.f32.xlu0 %v1151_v12  ;;  %v1160_v18 = vsel %vm1150_vm6, %v1137_v9, 0.0  ;;  %v1136_v19 = vmul.f32 %v2673_v50, %v1113_v1  ;;  %v1108_v20 = vmul.f32 0.2, %v1076_v63  ;;  %v2280_v21 = vpop.f32.mrf.mxu0 }
  0xee   : > { %1161 = vadd.xlane.f32.xlu1 %v1160_v18  ;;  %vm1089_vm10 = vcmp.gt.f32.partialorder %v1073_v46, 0.0  ;;  %vm1090_vm11 = vcmp.gt.f32.partialorder %v1074_v45, 0.0  ;;  %vm1091_vm12 = vcmp.gt.f32.partialorder %v1075_v57, 0.0  ;;  %v1067_v22 = vadd.f32 %v1051_v8, %v2648_v56 }
  0xef   : > { %v1054_v23 = vadd.f32 %v2277_v49, %v1022_v55  ;;  %v1121_v25 = vsel %vm1089_vm10, %v1073_v46, %v1105_v62  ;;  %v1122_v26 = vsel %vm1090_vm11, %v1074_v45, %v1106_v61  ;;  %v1109_v27 = vmul.f32 0.2, %v1077_v11  ;;  %v918_v38 = vpop.f32.mrf.mxu0 }
  0xf0   : > { %v1053_v28 = vadd.f32 %v1022_v55, %v908_v5  ;;  %v1154_v29 = vsel %vm1150_vm6, %v1135_v13, 0.0  ;;  %v1144_v31 = vmul.f32 %v2673_v50, %v1121_v25  ;;  %v1157_v32 = vsel %vm1150_vm6, %v1136_v19, 0.0 }
  0xf1   : > { %1155 = vadd.xlane.f32.xlu0 %v1154_v29  ;;  %v1145_v33 = vmul.f32 %v2673_v50, %v1122_v26  ;;  %v1123_v34 = vsel %vm1091_vm12, %v1075_v57, %v1107_v16  ;;  %vm1092_vm13 = vcmp.gt.f32.partialorder %v1076_v63, 0.0  ;;  %v1078_v36 = vadd.f32 %v1062_v7, %v2646_v51 }
  0xf2   : > { %v1100_v37 = vmul.f32 0.2, %v1068_v17  ;;  %1158 = vadd.xlane.f32.xlu1 %v1157_v32  ;;  %v1124_v40 = vsel %vm1092_vm13, %v1076_v63, %v1108_v20  ;;  %vm1093_vm14 = vcmp.gt.f32.partialorder %v1077_v11, 0.0  ;;  %v1070_v41 = vadd.f32 %v1054_v23, %v2646_v51  ;;  %v1211_v32 = vpop.permute.xlu1 %1210 }
  0xf3   : > { %v1026_v42 = vrot.slane %v2654_v0, %v2540_v4  ;;  %vm1084_vm15 = vcmp.gt.f32.partialorder %v1068_v17, 0.0  ;;  %v1099_v43 = vmul.f32 0.2, %v1067_v22  ;;  %v1069_v44 = vadd.f32 %v1053_v28, %v2648_v56 }
  0xf4   : > { %v1181_v45 = vsel %vm1150_vm6, %v1144_v31, 0.0  ;;  %v1146_v46 = vmul.f32 %v2673_v50, %v1123_v34  ;;  %v1184_v48 = vsel %vm1150_vm6, %v1145_v33, 0.0  ;;  %v1147_v49 = vmul.f32 %v2673_v50, %v1124_v40  ;;  %v1207_v34 = vpop.permute.xlu0 %1206 }
  0xf5   : > { %v1055_v47 = vadd.f32 %v1026_v42, %v918_v38  ;;  %1182 = vadd.xlane.f32.xlu0 %v1181_v45  ;;  %v1125_v52 = vsel %vm1093_vm14, %v1077_v11, %v1109_v27  ;;  %v1110_v53 = vmul.f32 0.2, %v1078_v36  ;;  %v1056_v54 = vadd.f32 %v2280_v21, %v1026_v42 }
  0xf6   : > { %1185 = vadd.xlane.f32.xlu1 %v1184_v48  ;;  %v1116_v55 = vsel %vm1084_vm15, %v1068_v17, %v1100_v37  ;;  %vm1083_vm0 = vcmp.gt.f32.partialorder %v1067_v22, 0.0  ;;  %vm1094_vm1 = vcmp.gt.f32.partialorder %v1078_v36, 0.0  ;;  %v1102_v0 = vmul.f32 0.2, %v1070_v41  ;;  %v1218_v33 = vpop.permute.xlu1 %1217 }
  0xf7   : > { %v1101_v57 = vmul.f32 0.2, %v1069_v44  ;;  %v1187_v58 = vsel %vm1150_vm6, %v1146_v46, 0.0  ;;  %v1148_v59 = vmul.f32 %v2673_v50, %v1125_v52  ;;  %v1071_v60 = vadd.f32 %v1055_v47, %v2648_v56 }
  0xf8   : > { %v1190_v61 = vsel %vm1150_vm6, %v1147_v49, 0.0  ;;  %v1139_v62 = vmul.f32 %v2673_v50, %v1116_v55  ;;  %v1115_v63 = vsel %vm1083_vm0, %v1067_v22, %v1099_v43  ;;  %v1072_v5 = vadd.f32 %v1056_v54, %v2646_v51 }
  0xf9   : > { %1188 = vadd.xlane.f32.xlu0 %v1187_v58  ;;  %v1126_v6 = vsel %vm1094_vm1, %v1078_v36, %v1110_v53  ;;  %vm1085_vm2 = vcmp.gt.f32.partialorder %v1069_v44, 0.0  ;;  %vm1086_vm3 = vcmp.gt.f32.partialorder %v1070_v41, 0.0  ;;  %v2422_v7 = vmov 0  }
  0xfa   : > { %1191 = vadd.xlane.f32.xlu1 %v1190_v61  ;;  %2343 = vset.pattern.permute.xlu0 %v2422_v7  ;;  %v1193_v8 = vsel %vm1150_vm6, %v1148_v59, 0.0  ;;  %v1138_v9 = vmul.f32 %v2673_v50, %v1115_v63  ;;  %v1103_v56 = vmul.f32 0.2, %v1071_v60  ;;  %v1166_v11 = vsel %vm1150_vm6, %v1139_v62, 0.0  ;;  %v1222_v36 = vpop.permute.xlu1 %1221 }
  0xfb   : > { %2344 = vset.pattern.permute.xlu1 %v2422_v7  ;;  %v1149_v12 = vmul.f32 %v2673_v50, %v1126_v6  ;;  %v1117_v13 = vsel %vm1085_vm2, %v1069_v44, %v1101_v57  ;;  %v1104_v1 = vmul.f32 0.2, %v1072_v5  ;;  %v1118_v51 = vsel %vm1086_vm3, %v1070_v41, %v1102_v0 }
  0xfc   : > { %vm1087_vm4 = vcmp.gt.f32.partialorder %v1071_v60, 0.0  ;;  %vm1088_vm5 = vcmp.gt.f32.partialorder %v1072_v5, 0.0  ;;  %v1163_v16 = vsel %vm1150_vm6, %v1138_v9, 0.0  ;;  %v1140_v17 = vmul.f32 %v2673_v50, %v1117_v13 }
  0xfd   : > { %1194 = vadd.xlane.f32.xlu0 %v1193_v8  ;;  %v1196_v18 = vsel %vm1150_vm6, %v1149_v12, 0.0  ;;  %v1141_v19 = vmul.f32 %v2673_v50, %v1118_v51  ;;  %v1119_v20 = vsel %vm1087_vm4, %v1071_v60, %v1103_v56  ;;  %v1120_v21 = vsel %vm1088_vm5, %v1072_v5, %v1104_v1 }
  0xfe   : > { %1167 = vadd.xlane.f32.xlu1 %v1166_v11  ;;  %v1169_v22 = vsel %vm1150_vm6, %v1140_v17, 0.0  ;;  %v1142_v23 = vmul.f32 %v2673_v50, %v1119_v20  ;;  %v1143_v26 = vmul.f32 %v2673_v50, %v1120_v21  ;;  %v2721_v29 = vsub.s32 7, %v2529_v3  ;;  %v1229_v50 = vpop.permute.xlu0 %1228  ;;  %v1233_v37 = vpop.permute.xlu1 %1232 }
  0xff   : > { %v1172_v25 = vsel %vm1150_vm6, %v1141_v19, 0.0  ;;  %vm1396_vm7 = vcmask 130112   ;;  %vm1461_vm8 = vcmask 1041409   ;;  %vm1463_vm9 = vcmask 1042434  }
 0x100   : > { %v1175_v27 = vsel %vm1150_vm6, %v1142_v23, 0.0  ;;  %v1178_v28 = vsel %vm1150_vm6, %v1143_v26, 0.0  ;;  %v1281_v31 = vrot.slane %v2550_v10, %v2721_v29  ;;  %vm1465_vm10 = vcmask 1043459  }
 0x101   : > { %1164 = vadd.xlane.f32.xlu0 %v1163_v16  ;;  %vm1467_vm11 = vcmask 1044484   ;;  %vm1469_vm12 = vcmask 1045509   ;;  %vm1471_vm13 = vcmask 1046534   ;;  %vm1473_vm14 = vcmask 1047559  }
 0x102   : > { %1197 = vadd.xlane.f32.xlu1 %v1196_v18  ;;  %v1240_v38 = vpop.permute.xlu0 %1239  ;;  %v1244_v40 = vpop.permute.xlu1 %1243  ;;  %vm1476_vm15 = vcmask 130048  }
 0x105   : > { %1170 = vadd.xlane.f32.xlu0 %v1169_v22 }
 0x106   : > { %1173 = vadd.xlane.f32.xlu1 %v1172_v25  ;;  %v1251_v41 = vpop.permute.xlu0 %1250  ;;  %v1255_v42 = vpop.permute.xlu1 %1254 }
 0x109   : > { %1176 = vadd.xlane.f32.xlu0 %v1175_v27 }
 0x10a   : > { %1179 = vadd.xlane.f32.xlu1 %v1178_v28  ;;  %v1262_v43 = vpop.permute.xlu0 %1261  ;;  %v1266_v44 = vpop.permute.xlu1 %1265 }
 0x10e   : > { %v1273_v45 = vpop.permute.xlu0 %1272  ;;  %v1277_v46 = vpop.permute.xlu1 %1276 }
 0x11b   : > { %1287 = vbcast.lane.b32.xlu1 %v1281_v31, 264 }
 0x11f   : > { %1283 = vbcast.lane.b32.xlu0 %v1281_v31, 256 }
 0x176   : > { %v1153_v47 = vpop.xlane.xlu0 %1152 }
 0x177   : > { %v2725_v48 = vadd.f32 %v1207_v34, %v1153_v47  ;;  %v1162_v10 = vpop.xlane.xlu1 %1161 }
 0x178   : > { %v2728_v52 = vadd.f32 %v1222_v36, %v1162_v10 }
 0x179   : > { %1338 = vperm.xlu0 %2343, %v2725_v48  }
 0x17a   : > { %v1156_v49 = vpop.xlane.xlu0 %1155 }
 0x17b   : > { %v2730_v53 = vadd.f32 %v1211_v32, %v1156_v49  ;;  %v1159_v54 = vpop.xlane.xlu1 %1158  ;;  %v1386_v32 = vand.u32 127, %v962_v2 }
 0x17c   : > { %v2734_v0 = vadd.f32 %v1218_v33, %v1159_v54 }
 0x17d   : > { %1341 = vperm.xlu1 %2344, %v2730_v53   ;;  %1347 = vperm.xlu0 %2343, %v2728_v52   ;;  %v1391_v36 = vadd.s32 4294967288, %v1386_v32 }
 0x17e   : > { %v1183_v55 = vpop.xlane.xlu0 %1182 }
 0x17f   : > { %v1186_v57 = vpop.xlane.xlu1 %1185  ;;  %v2740_v60 = vadd.f32 %v1262_v43, %v1183_v55 }
 0x180   : > { %v2736_v58 = vadd.f32 %v1266_v44, %v1186_v57 }
 0x181   : > { %1344 = vperm.xlu1 %2344, %v2734_v0  }
 0x182   : > { %v1189_v59 = vpop.xlane.xlu0 %1188  ;;  %1371 = vperm.xlu0 %2343, %v2736_v58  }
 0x183   : > { %v1192_v61 = vpop.xlane.xlu1 %1191  ;;  %v2746_v5 = vadd.f32 %v1273_v45, %v1189_v59 }
 0x184   : > { %v2742_v62 = vadd.f32 %v1277_v46, %v1192_v61 }
 0x185   : > { %1368 = vperm.xlu1 %2344, %v2740_v60  }
 0x186   : > { %v1195_v63 = vpop.xlane.xlu0 %1194  ;;  %1377 = vperm.xlu0 %2343, %v2742_v62  }
 0x187   : > { %v1168_v6 = vpop.xlane.xlu1 %1167 }
 0x188   : > { %v2748_v7 = vadd.f32 %v1233_v37, %v1168_v6  ;;  %v2775_v37 = vsub.s32 %v1386_v32, %v2529_v3 }
 0x189   : > { %1374 = vperm.xlu1 %2344, %v2746_v5  }
 0x18a   : > { %v1165_v8 = vpop.xlane.xlu0 %1164  ;;  %1353 = vperm.xlu0 %2343, %v2748_v7  }
 0x18b   : > { %v2752_v9 = vadd.f32 %v1229_v50, %v1165_v8  ;;  %v1198_v56 = vpop.xlane.xlu1 %1197 }
 0x18d   : > { %1350 = vperm.xlu1 %2344, %v2752_v9  }
 0x18e   : > { %v1171_v11 = vpop.xlane.xlu0 %1170 }
 0x18f   : > { %v2755_v12 = vadd.f32 %v1240_v38, %v1171_v11  ;;  %v1174_v13 = vpop.xlane.xlu1 %1173  ;;  %v2778_v38 = vsub.s32 %v1391_v36, %v2529_v3 }
 0x190   : > { %v2757_v1 = vadd.f32 %v1244_v40, %v1174_v13 }
 0x191   : > { %1356 = vperm.xlu1 %2344, %v2755_v12  }
 0x192   : > { %v1177_v51 = vpop.xlane.xlu0 %1176  ;;  %1359 = vperm.xlu0 %2343, %v2757_v1  }
 0x193   : > { %v2761_v16 = vadd.f32 %v1251_v41, %v1177_v51  ;;  %v1180_v17 = vpop.xlane.xlu1 %1179 }
 0x194   : > { %v2763_v18 = vadd.f32 %v1255_v42, %v1180_v17 }
 0x195   : > { %1362 = vperm.xlu1 %2344, %v2761_v16  }
 0x196   : > { %v1284_v19 = vpop.permute.xlu0 %1283  ;;  %1365 = vperm.xlu0 %2343, %v2763_v18  }
 0x197   : > { %v2767_v20 = vadd.f32 %v1284_v19, %v1195_v63  ;;  %v1288_v21 = vpop.permute.xlu1 %1287 }
 0x198   : > { %v2769_v22 = vadd.f32 %v1288_v21, %v1198_v56 }
 0x199   : > { %1380 = vperm.xlu1 %2344, %v2767_v20  }
 0x19a   : > { %1383 = vperm.xlu0 %2343, %v2769_v22  }
 0x1f4   : > { %v1339_v23 = vpop.permute.xlu0 %1338 }
 0x1f5   : > { %v1390_v10 = vrot.slane %v1339_v23, %v2775_v37 }
 0x1f8   : > { %v1342_v25 = vpop.permute.xlu1 %1341  ;;  %v1348_v26 = vpop.permute.xlu0 %1347 }
 0x1f9   : > { %v1395_v44 = vrot.slane %v1342_v25, %v2778_v38  ;;  %v1405_v2 = vrot.slane %v1348_v26, %v2778_v38 }
 0x1fb   : > { %v1397_v57 = vsel %vm1396_vm7, %v1395_v44, %v1390_v10 }
 0x1fc   : > { %v1345_v27 = vpop.permute.xlu1 %1344 }
 0x1fd   : > { %v1372_v28 = vpop.permute.xlu0 %1371  ;;  %v1401_v41 = vrot.slane %v1345_v27, %v2775_v37 }
 0x1fe   : > { %v1441_v13 = vrot.slane %v1372_v28, %v2778_v38 }
 0x1ff   : > { %v1406_v3 = vsel %vm1396_vm7, %v1405_v2, %v1401_v41 }
 0x200   : > { %v1369_v31 = vpop.permute.xlu1 %1368  ;;  %v1462_v6 = vsel %vm1461_vm8, %v1406_v3, %v1397_v57 }
 0x201   : > { %v1378_v33 = vpop.permute.xlu0 %1377  ;;  %v1437_v59 = vrot.slane %v1369_v31, %v2775_v37 }
 0x202   : > { %v1450_v17 = vrot.slane %v1378_v33, %v2778_v38 }
 0x203   : > { %v1442_v25 = vsel %vm1396_vm7, %v1441_v13, %v1437_v59 }
 0x204   : > { %v1375_v34 = vpop.permute.xlu1 %1374 }
 0x205   : > { %v1354_v40 = vpop.permute.xlu0 %1353  ;;  %v1446_v8 = vrot.slane %v1375_v34, %v2775_v37 }
 0x206   : > { %v1414_v46 = vrot.slane %v1354_v40, %v2778_v38 }
 0x207   : > { %v1451_v31 = vsel %vm1396_vm7, %v1450_v17, %v1446_v8 }
 0x208   : > { %v1351_v50 = vpop.permute.xlu1 %1350 }
 0x209   : > { %v1410_v42 = vrot.slane %v1351_v50, %v2775_v37 }
 0x20b   : > { %v1415_v54 = vsel %vm1396_vm7, %v1414_v46, %v1410_v42 }
 0x20c   : > { %v1357_v43 = vpop.permute.xlu1 %1356  ;;  %v1464_v51 = vsel %vm1463_vm9, %v1415_v54, %v1462_v6 }
 0x20d   : > { %v1360_v45 = vpop.permute.xlu0 %1359  ;;  %v1419_v49 = vrot.slane %v1357_v43, %v2775_v37 }
 0x20e   : > { %v1423_v47 = vrot.slane %v1360_v45, %v2778_v38 }
 0x210   : > { %v1363_v55 = vpop.permute.xlu1 %1362  ;;  %v1424_v61 = vsel %vm1396_vm7, %v1423_v47, %v1419_v49 }
 0x211   : > { %v1366_v63 = vpop.permute.xlu0 %1365  ;;  %v1428_v56 = vrot.slane %v1363_v55, %v2775_v37  ;;  %v1466_v19 = vsel %vm1465_vm10, %v1424_v61, %v1464_v51 }
 0x212   : > { %v1432_v11 = vrot.slane %v1366_v63, %v2778_v38 }
 0x214   : > { %v1433_v21 = vsel %vm1396_vm7, %v1432_v11, %v1428_v56  ;;  %v1381_v23 = vpop.permute.xlu1 %1380 }
 0x215   : > { %v1468_v26 = vsel %vm1467_vm11, %v1433_v21, %v1466_v19  ;;  %v1384_v27 = vpop.permute.xlu0 %1383  ;;  %v1455_v28 = vrot.slane %v1381_v23, %v2775_v37 }
 0x216   : > { %v1459_v32 = vrot.slane %v1384_v27, %v2778_v38  ;;  %v1470_v33 = vsel %vm1469_vm12, %v1442_v25, %v1468_v26 }
 0x217   : > { %v1472_v34 = vsel %vm1471_vm13, %v1451_v31, %v1470_v33 }
 0x218   : > { %v1460_v36 = vsel %vm1396_vm7, %v1459_v32, %v1455_v28 }
 0x219   : > { %v1474_v50 = vsel %vm1473_vm14, %v1460_v36, %v1472_v34 }
 0x21a   : > { %v1477_v40 = vsel %vm1476_vm15, %v1474_v50, -inf }
 0x21b   : > { %1478 = vmax.xlane.f32.xlu1 %v1477_v40 }
 0x2a4   : > { %v1479_v41 = vpop.xlane.xlu1 %1478 }
 0x2a5   : > { %v1484_v42 = vrot.slane %v1479_v41, %v2540_v4  ;;  %v1488_v44 = vrot.slane %v1479_v41, %v2563_v14  ;;  %v1500_v45 = vrot.slane %v1479_v41, %v2607_v30  ;;  %v2820_v49 = vrot.slane %v1479_v41, %v2721_v29 }
 0x2a6   : > { %v1492_v54 = vrot.slane %v1479_v41, %v2570_v15 }
 0x2a7   : > { %v1521_v43 = vsub.f32 %v2725_v48, %v1484_v42  ;;  %v1522_v2 = vsub.f32 %v2730_v53, %v1484_v42  ;;  %v1523_v47 = vsub.f32 %v2734_v0, %v1488_v44  ;;  %v1530_v3 = vsub.f32 %v2763_v18, %v1500_v45 }
 0x2a8   : > { %v1524_v48 = vsub.f32 %v2728_v52, %v1488_v44  ;;  %v1536_v53 = vsub.f32 %v2769_v22, %v2820_v49  ;;  %v1525_v59 = vsub.f32 %v2752_v9, %v1492_v54  ;;  %v1496_v18 = vrot.slane %v1479_v41, %v2594_v24 }
 0x2a9   : > { %v1537_v46 = vmul.f32 1.442695, %v1521_v43  ;;  %v1539_v10 = vmul.f32 1.442695, %v1522_v2  ;;  %v1541_v55 = vmul.f32 1.442695, %v1523_v47  ;;  %v1526_v63 = vsub.f32 %v2748_v7, %v1492_v54 }
 0x2aa   : > { %v1555_v57 = vmul.f32 1.442695, %v1530_v3  ;;  %v1543_v0 = vmul.f32 1.442695, %v1524_v48  ;;  %v1567_v61 = vmul.f32 1.442695, %v1536_v53  ;;  %v1527_v52 = vsub.f32 %v2755_v12, %v1496_v18 }
 0x2ab   : > { %2345 = vpow2.f32 %v1537_v46  ;;  %v1545_v6 = vmul.f32 1.442695, %v1525_v59  ;;  %v1547_v22 = vmul.f32 1.442695, %v1526_v63  ;;  %v1528_v56 = vsub.f32 %v2757_v1, %v1496_v18 }
 0x2ac   : > { %2347 = vpow2.f32 %v1539_v10  ;;  %v1549_v11 = vmul.f32 1.442695, %v1527_v52  ;;  %v1504_v12 = vrot.slane %v1479_v41, %v2619_v35  ;;  %v1529_v51 = vsub.f32 %v2761_v16, %v1500_v45 }
 0x2ad   : > { %2349 = vpow2.f32 %v1541_v55  ;;  %v1551_v17 = vmul.f32 1.442695, %v1528_v56  ;;  %v1508_v16 = vrot.slane %v1479_v41, %v2630_v39 }
 0x2ae   : > { %2351 = vpow2.f32 %v1555_v57  ;;  %v1531_v21 = vsub.f32 %v2740_v60, %v1504_v12  ;;  %v1553_v23 = vmul.f32 1.442695, %v1529_v51  ;;  %v1532_v26 = vsub.f32 %v2736_v58, %v1504_v12 }
 0x2af   : > { %2353 = vpow2.f32 %v1543_v0  ;;  %v1533_v60 = vsub.f32 %v2746_v5, %v1508_v16  ;;  %v1534_v33 = vsub.f32 %v2742_v62, %v1508_v16  ;;  %v1535_v58 = vsub.f32 %v2767_v20, %v2820_v49 }
 0x2b0   : > { %2355 = vpow2.f32 %v1567_v61  ;;  %v1557_v27 = vmul.f32 1.442695, %v1531_v21  ;;  %v1559_v28 = vmul.f32 1.442695, %v1532_v26 }
 0x2b1   : > { %2357 = vpow2.f32 %v1545_v6  ;;  %v1561_v34 = vmul.f32 1.442695, %v1533_v60  ;;  %v1563_v50 = vmul.f32 1.442695, %v1534_v33  ;;  %v1565_v40 = vmul.f32 1.442695, %v1535_v58 }
 0x2b2   : > { %2359 = vpow2.f32 %v1547_v22 }
 0x2b3   : > { %2361 = vpow2.f32 %v1549_v11 }
 0x2b4   : > { %2363 = vpow2.f32 %v1551_v17 }
 0x2b5   : > { %2365 = vpow2.f32 %v1553_v23 }
 0x2b6   : > { %2367 = vpow2.f32 %v1557_v27 }
 0x2b7   : > { %2369 = vpow2.f32 %v1559_v28 }
 0x2b8   : > { %v2829_v8 = vpop.eup %2345  ;;  %2371 = vpow2.f32 %v1561_v34 }
 0x2b9   : > { %1586 = vperm.xlu0 %2343, %v2829_v8   ;;  %v2833_v9 = vpop.eup %2347  ;;  %2373 = vpow2.f32 %v1563_v50 }
 0x2ba   : > { %v2837_v7 = vpop.eup %2349  ;;  %2375 = vpow2.f32 %v1565_v40 }
 0x2bb   : > { %v2839_v13 = vpop.eup %2351 }
 0x2bc   : > { %1613 = vperm.xlu1 %2344, %v2839_v13   ;;  %v2845_v19 = vpop.eup %2353 }
 0x2bd   : > { %1589 = vperm.xlu0 %2343, %v2833_v9   ;;  %v2848_v1 = vpop.eup %2355 }
 0x2be   : > { %v2851_v25 = vpop.eup %2357 }
 0x2bf   : > { %v2857_v31 = vpop.eup %2359 }
 0x2c0   : > { %1631 = vperm.xlu1 %2344, %v2848_v1   ;;  %v2861_v32 = vpop.eup %2361 }
 0x2c1   : > { %1592 = vperm.xlu0 %2343, %v2837_v7   ;;  %v2865_v36 = vpop.eup %2363 }
 0x2c2   : > { %v2870_v5 = vpop.eup %2365 }
 0x2c3   : > { %v2873_v41 = vpop.eup %2367 }
 0x2c4   : > { %v2876_v62 = vpop.eup %2369 }
 0x2c5   : > { %1595 = vperm.xlu0 %2343, %v2845_v19   ;;  %v2879_v42 = vpop.eup %2371 }
 0x2c6   : > { %v2882_v20 = vpop.eup %2373 }
 0x2c7   : > { %v2885_v43 = vpop.eup %2375 }
 0x2c9   : > { %1598 = vperm.xlu0 %2343, %v2851_v25  }
 0x2cd   : > { %1601 = vperm.xlu0 %2343, %v2857_v31  }
 0x2d1   : > { %1604 = vperm.xlu0 %2343, %v2861_v32  }
 0x2d5   : > { %1607 = vperm.xlu0 %2343, %v2865_v36  }
 0x2d9   : > { %1610 = vperm.xlu0 %2343, %v2870_v5  }
 0x2dd   : > { %1616 = vperm.xlu0 %2343, %v2873_v41  }
 0x2e1   : > { %1619 = vperm.xlu0 %2343, %v2876_v62  }
 0x2e5   : > { %1622 = vperm.xlu0 %2343, %v2879_v42  }
 0x2e9   : > { %1625 = vperm.xlu0 %2343, %v2882_v20  }
 0x2ed   : > { %1628 = vperm.xlu0 %2343, %v2885_v43  }
 0x334   : > { %v1587_v44 = vpop.permute.xlu0 %1586 }
 0x335   : > { %v1636_v22 = vrot.slane %v1587_v44, %v2775_v37 }
 0x337   : > { %v1614_v53 = vpop.permute.xlu1 %1613 }
 0x338   : > { %v1590_v2 = vpop.permute.xlu0 %1589  ;;  %v1676_v51 = vrot.slane %v1614_v53, %v2778_v38 }
 0x339   : > { %v1640_v61 = vrot.slane %v1590_v2, %v2778_v38 }
 0x33b   : > { %v1641_v23 = vsel %vm1396_vm7, %v1640_v61, %v1636_v22  ;;  %v1632_v60 = vpop.permute.xlu1 %1631 }
 0x33c   : > { %v1593_v45 = vpop.permute.xlu0 %1592 }
 0x33d   : > { %v1645_v18 = vrot.slane %v1593_v45, %v2775_v37  ;;  %v1703_v45 = vrot.slane %v1632_v60, %v2778_v38 }
 0x340   : > { %v1596_v46 = vpop.permute.xlu0 %1595 }
 0x341   : > { %v1649_v57 = vrot.slane %v1596_v46, %v2778_v38 }
 0x343   : > { %v1650_v56 = vsel %vm1396_vm7, %v1649_v57, %v1645_v18 }
 0x344   : > { %v1599_v47 = vpop.permute.xlu0 %1598  ;;  %v1705_v28 = vsel %vm1461_vm8, %v1650_v56, %v1641_v23 }
 0x345   : > { %v1654_v6 = vrot.slane %v1599_v47, %v2775_v37 }
 0x348   : > { %v1602_v10 = vpop.permute.xlu0 %1601 }
 0x349   : > { %v1658_v59 = vrot.slane %v1602_v10, %v2778_v38 }
 0x34b   : > { %v1659_v17 = vsel %vm1396_vm7, %v1658_v59, %v1654_v6 }
 0x34c   : > { %v1605_v3 = vpop.permute.xlu0 %1604  ;;  %v1706_v58 = vsel %vm1463_vm9, %v1659_v17, %v1705_v28 }
 0x34d   : > { %v1663_v11 = vrot.slane %v1605_v3, %v2775_v37 }
 0x350   : > { %v1608_v49 = vpop.permute.xlu0 %1607 }
 0x351   : > { %v1667_v63 = vrot.slane %v1608_v49, %v2778_v38 }
 0x353   : > { %v1668_v16 = vsel %vm1396_vm7, %v1667_v63, %v1663_v11 }
 0x354   : > { %v1611_v54 = vpop.permute.xlu0 %1610  ;;  %v1707_v40 = vsel %vm1465_vm10, %v1668_v16, %v1706_v58 }
 0x355   : > { %v1672_v52 = vrot.slane %v1611_v54, %v2775_v37 }
 0x357   : > { %v1677_v33 = vsel %vm1396_vm7, %v1676_v51, %v1672_v52 }
 0x358   : > { %v1617_v48 = vpop.permute.xlu0 %1616  ;;  %v1708_v46 = vsel %vm1467_vm11, %v1677_v33, %v1707_v40 }
 0x359   : > { %v1681_v26 = vrot.slane %v1617_v48, %v2775_v37 }
 0x35c   : > { %v1620_v55 = vpop.permute.xlu0 %1619 }
 0x35d   : > { %v1685_v12 = vrot.slane %v1620_v55, %v2778_v38 }
 0x35f   : > { %v1686_v50 = vsel %vm1396_vm7, %v1685_v12, %v1681_v26 }
 0x360   : > { %v1623_v0 = vpop.permute.xlu0 %1622  ;;  %v1709_v10 = vsel %vm1469_vm12, %v1686_v50, %v1708_v46 }
 0x361   : > { %v1690_v34 = vrot.slane %v1623_v0, %v2775_v37 }
 0x364   : > { %v1626_v21 = vpop.permute.xlu0 %1625 }
 0x365   : > { %v1694_v27 = vrot.slane %v1626_v21, %v2778_v38 }
 0x367   : > { %v1695_v44 = vsel %vm1396_vm7, %v1694_v27, %v1690_v34 }
 0x368   : > { %v1629_v2 = vpop.permute.xlu0 %1628  ;;  %v1710_v49 = vsel %vm1471_vm13, %v1695_v44, %v1709_v10 }
 0x369   : > { %v1699_v47 = vrot.slane %v1629_v2, %v2775_v37 }
 0x36b   : > { %v1704_v3 = vsel %vm1396_vm7, %v1703_v45, %v1699_v47 }
 0x36c   : > { %v1711_v54 = vsel %vm1473_vm14, %v1704_v3, %v1710_v49 }
 0x36d   : > { %v1713_v48 = vsel %vm1476_vm15, %v1711_v54, 0.0 }
 0x36e   : > { %1714 = vadd.xlane.f32.xlu0 %v1713_v48 }
 0x3f7   : > { %v1715_v55 = vpop.xlane.xlu0 %1714 }
 0x3f8   : > { %2377 = vrcp.f32 %v1715_v55 }
 0x405   : > { %v2378_v57 = vpop.eup %2377 }
 0x406   : > { %v1737_v53 = vrot.slane %v2378_v57, %v2607_v30  ;;  %v1721_v59 = vrot.slane %v2378_v57, %v2540_v4  ;;  %v1749_v18 = vrot.slane %v2378_v57, %v2721_v29  ;;  %v1725_v52 = vrot.slane %v2378_v57, %v2563_v14 }
 0x408   : > { %v1766_v0 = vmul.f32 %v2870_v5, %v1737_v53  ;;  %v1758_v61 = vmul.f32 %v2829_v8, %v1721_v59  ;;  %v1773_v63 = vmul.f32 %v2848_v1, %v1749_v18  ;;  %v1759_v6 = vmul.f32 %v2833_v9, %v1721_v59 }
 0x409   : > { %v1760_v30 = vmul.f32 %v2837_v7, %v1725_v52  ;;  %v1761_v4 = vmul.f32 %v2845_v19, %v1725_v52  ;;  %v1729_v5 = vrot.slane %v2378_v57, %v2570_v15  ;;  %v1733_v1 = vrot.slane %v2378_v57, %v2594_v24 }
 0x40a   : > { %1822 = vperm.xlu0 %2343, %v1766_v0   ;;  %1798 = vperm.xlu1 %2344, %v1758_v61   ;;  %v1767_v7 = vmul.f32 %v2839_v13, %v1737_v53  ;;  %v1741_v19 = vrot.slane %v2378_v57, %v2619_v35 }
 0x40b   : > { %v1762_v29 = vmul.f32 %v2851_v25, %v1729_v5  ;;  %v1763_v8 = vmul.f32 %v2857_v31, %v1729_v5  ;;  %v1764_v14 = vmul.f32 %v2861_v32, %v1733_v1  ;;  %v1765_v9 = vmul.f32 %v2865_v36, %v1733_v1 }
 0x40c   : > { %v1768_v15 = vmul.f32 %v2873_v41, %v1741_v19  ;;  %v1769_v25 = vmul.f32 %v2876_v62, %v1741_v19  ;;  %v1745_v31 = vrot.slane %v2378_v57, %v2630_v39  ;;  %v1772_v36 = vmul.f32 %v2885_v43, %v1749_v18 }
 0x40e   : > { %1843 = vperm.xlu0 %2343, %v1773_v63   ;;  %1801 = vperm.xlu1 %2344, %v1759_v6   ;;  %v1770_v24 = vmul.f32 %v2879_v42, %v1745_v31  ;;  %v1771_v32 = vmul.f32 %v2882_v20, %v1745_v31 }
 0x412   : > { %1804 = vperm.xlu1 %2344, %v1760_v30  }
 0x416   : > { %1807 = vperm.xlu1 %2344, %v1761_v4  }
 0x41a   : > { %1810 = vperm.xlu1 %2344, %v1762_v29  }
 0x41e   : > { %1813 = vperm.xlu1 %2344, %v1763_v8  }
 0x422   : > { %1816 = vperm.xlu1 %2344, %v1764_v14  }
 0x426   : > { %1819 = vperm.xlu1 %2344, %v1765_v9  }
 0x42a   : > { %1825 = vperm.xlu1 %2344, %v1767_v7  }
 0x42e   : > { %1828 = vperm.xlu1 %2344, %v1768_v15  }
 0x432   : > { %1831 = vperm.xlu1 %2344, %v1769_v25  }
 0x436   : > { %1834 = vperm.xlu1 %2344, %v1770_v24  }
 0x43a   : > { %1837 = vperm.xlu1 %2344, %v1771_v32  }
 0x43e   : > { %1840 = vperm.xlu1 %2344, %v1772_v36  }
 0x485   : > { %v1799_v13 = vpop.permute.xlu1 %1798  ;;  %v1823_v21 = vpop.permute.xlu0 %1822 }
 0x486   : > { %v1848_v28 = vrot.slane %v1799_v13, %v2775_v37  ;;  %v1884_v50 = vrot.slane %v1823_v21, %v2775_v37 }
 0x489   : > { %v1802_v35 = vpop.permute.xlu1 %1801  ;;  %v1844_v10 = vpop.permute.xlu0 %1843 }
 0x48a   : > { %v1852_v43 = vrot.slane %v1802_v35, %v2778_v38  ;;  %v1915_v0 = vrot.slane %v1844_v10, %v2778_v38 }
 0x48c   : > { %v1853_v2 = vsel %vm1396_vm7, %v1852_v43, %v1848_v28 }
 0x48d   : > { %v1805_v22 = vpop.permute.xlu1 %1804 }
 0x48e   : > { %v1857_v16 = vrot.slane %v1805_v22, %v2775_v37 }
 0x491   : > { %v1808_v56 = vpop.permute.xlu1 %1807 }
 0x492   : > { %v1861_v42 = vrot.slane %v1808_v56, %v2778_v38 }
 0x494   : > { %v1862_v33 = vsel %vm1396_vm7, %v1861_v42, %v1857_v16 }
 0x495   : > { %v1811_v41 = vpop.permute.xlu1 %1810  ;;  %v1917_v3 = vsel %vm1461_vm8, %v1862_v33, %v1853_v2 }
 0x496   : > { %v1866_v27 = vrot.slane %v1811_v41, %v2775_v37 }
 0x499   : > { %v1814_v11 = vpop.permute.xlu1 %1813 }
 0x49a   : > { %v1870_v20 = vrot.slane %v1814_v11, %v2778_v38 }
 0x49c   : > { %v1871_v40 = vsel %vm1396_vm7, %v1870_v20, %v1866_v27 }
 0x49d   : > { %v1817_v12 = vpop.permute.xlu1 %1816  ;;  %v1918_v48 = vsel %vm1463_vm9, %v1871_v40, %v1917_v3 }
 0x49e   : > { %v1875_v34 = vrot.slane %v1817_v12, %v2775_v37 }
 0x4a1   : > { %v1820_v62 = vpop.permute.xlu1 %1819 }
 0x4a2   : > { %v1879_v26 = vrot.slane %v1820_v62, %v2778_v38 }
 0x4a4   : > { %v1880_v45 = vsel %vm1396_vm7, %v1879_v26, %v1875_v34 }
 0x4a5   : > { %v1826_v51 = vpop.permute.xlu1 %1825  ;;  %v1919_v57 = vsel %vm1465_vm10, %v1880_v45, %v1918_v48 }
 0x4a6   : > { %v1888_v60 = vrot.slane %v1826_v51, %v2778_v38 }
 0x4a8   : > { %v1889_v49 = vsel %vm1396_vm7, %v1888_v60, %v1884_v50 }
 0x4a9   : > { %v1829_v39 = vpop.permute.xlu1 %1828  ;;  %v1920_v61 = vsel %vm1467_vm11, %v1889_v49, %v1919_v57 }
 0x4aa   : > { %v1893_v46 = vrot.slane %v1829_v39, %v2775_v37 }
 0x4ad   : > { %v1832_v17 = vpop.permute.xlu1 %1831 }
 0x4ae   : > { %v1897_v58 = vrot.slane %v1832_v17, %v2778_v38 }
 0x4b0   : > { %v1898_v55 = vsel %vm1396_vm7, %v1897_v58, %v1893_v46 }
 0x4b1   : > { %v1835_v23 = vpop.permute.xlu1 %1834  ;;  %v1921_v63 = vsel %vm1469_vm12, %v1898_v55, %v1920_v61 }
 0x4b2   : > { %v1902_v54 = vrot.slane %v1835_v23, %v2775_v37 }
 0x4b5   : > { %v1838_v44 = vpop.permute.xlu1 %1837 }
 0x4b6   : > { %v1906_v47 = vrot.slane %v1838_v44, %v2778_v38  ;;  %v2216_v38 = vld [vmem:[%s550_s28] ss:$0 sm:$0xff] }
 0x4b8   : > { %v1907_v53 = vsel %vm1396_vm7, %v1906_v47, %v1902_v54 }
 0x4b9   : > { %v1841_v59 = vpop.permute.xlu1 %1840  ;;  %v1922_v6 = vsel %vm1471_vm13, %v1907_v53, %v1921_v63 }
 0x4ba   : > { %v1911_v18 = vrot.slane %v1841_v59, %v2775_v37 }
 0x4bc   : > { %v1916_v52 = vsel %vm1396_vm7, %v1915_v0, %v1911_v18 }
 0x4bd   : > { %v1923_v30 = vsel %vm1473_vm14, %v1916_v52, %v1922_v6 }
 0x4be   : > { %2295 = vmatmul.mubr.msk.f32.vlgmr.msra.gmra.mxu1 %vm1476_vm15, %v1923_v30 }
 0x57e   : > { %v1992_v4 = vpop.f32.mrf.mxu1 }
 0x57f   : > { %v1993_v37 = vadd.f32 %v2216_v38, %v1992_v4 }
 0x580   : > { %v2296_v5 = vpop.f32.mrf.mxu1 }
 0x581   : > { %v1996_v29 = vmax.f32 %v1993_v37, 0.0 }
 0x583   : > { %1997 = vst.msk [vmem:[%s558_s15] sm:$0xff] %vm1150_vm6, %v1996_v29 }
 0x584 PF: > { %s21_s21 = sadd.s32 1, %s2417_s21   ;;  %s3013_s17 = smov %s2409_s19 }
 0x585   : > { %p18_p8 = scmp.ge.s32.totalorder %s21_s21, 6   ;;  %s3014_s18 = smov %s2413_s20 }
 0x586   : > { %s3015_s19 = smov %s3018_s22  ;;  %s3016_s20 = smov %s3022_s23 }
 0x587   :  { %20 = sbr.rel (!%p18_p8) target bundleno = 3 (0x3), region = 121 }

// kernel: graph_encoder_gat_forward.4
= control target key start
LH: loop header
LB: loop body
LE: loop exit
PB: predicated region body
PF: predicated region fallthrough
CT: control target
= control target key end

     0   :  { %s2472_s17 = smov 0   ;;  %s2474_s18 = smov 0   ;;  %s2990_s0 = inlined_call_operand.vmem [shape: f32[16,16], index: 0, kind: input, shape index: {}, may-alias: {0,1}]   ;;  %s2991_s1 = inlined_call_operand.vmem [shape: f32[16,16], index: 1, kind: input, shape index: {}, may-alias: {0,1}]   ;;  %s2992_s2 = inlined_call_operand.vmem [shape: f32[16,16], index: 2, kind: input, shape index: {}]   ;;  %s2993_s3 = inlined_call_operand.vmem [shape: f32[16,16,4], index: 3, kind: input, shape index: {}]   ;;  %s2994_s4 = inlined_call_operand.vmem [shape: f32[2,16,8], index: 4, kind: input, shape index: {}]   ;;  %s2995_s5 = inlined_call_operand.vmem [shape: f32[2,1,8], index: 5, kind: input, shape index: {}]   ;;  %s2996_s6 = inlined_call_operand.vmem [shape: f32[2,16,8], index: 6, kind: input, shape index: {}]   ;;  %s2997_s7 = inlined_call_operand.vmem [shape: f32[2,1,8], index: 7, kind: input, shape index: {}]   ;;  %s2998_s8 = inlined_call_operand.vmem [shape: f32[2,4,8], index: 8, kind: input, shape index: {}]   ;;  %s2999_s9 = inlined_call_operand.vmem [shape: f32[2,1,8], index: 9, kind: input, shape index: {}]   ;;  %s3000_s10 = inlined_call_operand.vmem [shape: f32[2,1,8], index: 10, kind: input, shape index: {}]   ;;  %s3001_s11 = inlined_call_operand.vmem [shape: f32[2,16,8], index: 11, kind: output, shape index: {}]  }
   0x1   :  { %3002 = sst [smem:[#allocation2_spill]] %s2994_s4  ;;  %s2476_s19 = smov 0  }
   0x2   :  { %3003 = sst [smem:[#allocation3_spill]] %s2996_s6  ;;  %s2478_s20 = smov 0  }
   0x3   :  { %s2480_s21 = smov 0  }
   0x4 LB: > { %s30_s22 = sadd.s32 1, %s2398_s19  ;;  %s33_s23 = sadd.s32 1, %s2402_s20  ;;  %s2406_s21 = sphi %s2480_s21, %s21_s21   ;;  %s2402_s20 = sphi %s2478_s20, %s3009_s20   ;;  %s2398_s19 = sphi %s2476_s19, %s3008_s19   ;;  %s2394_s18 = sphi %s2474_s18, %s3007_s18   ;;  %s2390_s17 = sphi %s2472_s17, %s3006_s17  }
   0x5   : > { %p31_p0 = scmp.ge.s32.totalorder %s30_s22, 2  ;;  %p2169_p1 = scmp.ge.s32.totalorder %s2406_s21, 1 }
   0x6   : > { %p432_p2 = scmp.lt.s32.totalorder %s2406_s21, 5 }
   0x7   : > { %s3011_s22 = smov (%p31_p0, %s30_s22), 0  ;;  %s3013_s23 = smov (!%p31_p0, %s33_s23), %s2402_s20 }
   0x8   : > { %p433_p3 = pnand %p2169_p1, %p432_p2  ;;  %p35_p4 = scmp.ge.s32.totalorder %s3013_s23, 2 }
   0x9   : > { %p525_p5 = scmp.lt.s32.totalorder (!%p433_p3), %s2390_s17, 1  ;;  %p510_p6 = scmp.lt.s32.totalorder (!%p433_p3), %s2394_s18, 1 }
   0xa   : > { %s3015_s23 = smov (%p35_p4, %s3013_s23), 0  ;;  %436 = sbr.rel (%p433_p3) target bundleno = 1411 (0x583), region = 64 }
   0xb   : > { %s2172_s28 = sshll.u32 (!%p433_p3), %s2394_s18, 3  ;;  %s3004_s4 = sld [smem:[#allocation2_spill]] (!%p433_p3) }
   0xc   : > { %s3005_s6 = sld [smem:[#allocation3_spill]] (!%p433_p3)  ;;  %p519_p7 = scmp.lt.s32.totalorder (!%p433_p3), %s2172_s28, 15 }
   0xf   : > { %v559_v0 = vld [vmem:[%s2990_s0] sm:$0xff]  ;;  %vm570_vm0 = vcmask 130048   ;;  %v955_v1 = vlaneseq  ;;  %v2408_v2 = vmov 0.0   ;;  %vm2409_vm1 = vmmov 0   ;;  %s3017_s17 = smov (!%p525_p5, %s2390_s17), 1  ;;  %v560_v11 = vld [vmem:[%s2990_s0 + $0x8] sm:$0xff] }
  0x10   : > { %2246 = vmatprep.subr.mxu1 %v2408_v2  ;;  %2250 = vmatprep.mubr.msk.f32.mxu1 %vm2409_vm1, %v2408_v2  ;;  %s2518_s26 = scalar_select %p510_p6, %s2394_s18, 1  ;;  %vm801_vm2 = vcmask 1043456   ;;  %vm752_vm3 = vcmask 31744   ;;  %v2410_v42 = vmov 1966171168   ;;  %vm1143_vm5 = vcmask 64512  }
  0x11   : > { %2243 = vmatprep.mubr.msk.f32.mxu0 %vm570_vm0, %v559_v0  ;;  %v2515_v3 = vshrl.u32 %v955_v1, 7  ;;  %s2210_s27 = sshll.u32 %s3017_s17, 4  ;;  %s2179_s24 = sshll.u32 %s3017_s17, 2  ;;  %v953_v43 = vunpack.c.l.s4 %v2410_v42 }
  0x12   : > { %s529_s12 = scalar_lea.vmem %s3004_s4, %s2210_s27  ;;  %s537_s15 = scalar_lea.vmem %s3005_s6, %s2210_s27 }
  0x13   : > { %v2529_v4 = vsub.s32 0, %v2515_v3  ;;  %v562_v5 = vld [vmem:[%s529_s12 + $0x8] sm:$0xff]  ;;  %v561_v7 = vld [vmem:[%s529_s12] sm:$0xff]  ;;  %s2170_s16 = sshll.u32 %s2518_s26, 3  ;;  %s544_s6 = scalar_lea.vmem %s2998_s8, %s2179_s24  ;;  %v2552_v14 = vsub.s32 1, %v2515_v3  ;;  %v2559_v15 = vsub.s32 2, %v2515_v3  ;;  %v954_v44 = vunpack.c.0.s8 %v953_v43 }
  0x14   : > { %v654_v6 = vld [vmem:[%s537_s15 + $0x8] sm:$0xff]  ;;  %2239 = vmatprep.subr.mxu0 %v562_v5  ;;  %v653_v8 = vld [vmem:[%s537_s15] sm:$0xff]  ;;  %s513_s29 = scalar_lea.vmem %s2991_s1, %s2170_s16  ;;  %s517_s13 = scalar_lea.vmem %s2992_s2, %s2170_s16  ;;  %v2583_v24 = vsub.s32 3, %v2515_v3  ;;  %v2596_v30 = vsub.s32 4, %v2515_v3  ;;  %v2608_v35 = vsub.s32 5, %v2515_v3  ;;  %v2619_v39 = vsub.s32 6, %v2515_v3 }
  0x15   : > { %2247 = vmatpush3.msra.mxu1 %v654_v6  ;;  %2240 = vmatpush3.msra.mxu0 %v562_v5  ;;  %v652_v9 = vld [vmem:[%s513_s29] sm:$0xff]  ;;  %s3019_s28 = smov (!%p519_p7, %s2172_s28), 15  ;;  %s540_s25 = scalar_lea.vmem %s2997_s7, %s3017_s17  ;;  %v957_v46 = vsub.s32 %v954_v44, %v2515_v3 }
  0x16   : > { %2248 = vmatprep.subr.mxu1 %v2408_v2  ;;  %v2540_v10 = vld [vmem:[%s517_s13] sm:$0xff]  ;;  %2241 = vmatprep.subr.mxu0 %v561_v7  ;;  %s2209_s4 = sshll.u32 %s3019_s28, 4  ;;  %s532_s13 = scalar_lea.vmem %s2995_s5, %s3017_s17 }
  0x17   : > { %2249 = vmatpush3.msra.mxu1 %v653_v8  ;;  %v751_v12 = vld [vmem:[%s544_s6] sm:$0xf]  ;;  %v1197_v13 = vrot.slane %v2540_v10, %v2529_v4  ;;  %2242 = vmatpush3.msra.mxu0 %v561_v7  ;;  %s2565_s24 = scalar_lea.vmem %s2993_s3, %s2209_s4  ;;  %v1208_v19 = vrot.slane %v2540_v10, %v2552_v14  ;;  %v1219_v23 = vrot.slane %v2540_v10, %v2559_v15  ;;  %s547_s14 = scalar_lea.vmem %s2999_s9, %s3017_s17 }
  0x18   : > { %2251 = vmatmul.mubr.msk.f32.vlgmr.msra.gmra.mxu1 %vm570_vm0, %v652_v9  ;;  %2244 = vmatmul.mubr.msk.f32.vlgmr.msra.gmra.mxu0 %vm570_vm0, %v560_v11  ;;  %v745_v16 = vld [vmem:[%s2565_s24 + $0x50] sm:$0xff]  ;;  %v735_v17 = vld [vmem:[%s2565_s24] sm:$0xff]  ;;  %v746_v18 = vld [vmem:[%s2565_s24 + $0x58] sm:$0xff]  ;;  %v1230_v29 = vrot.slane %v2540_v10, %v2583_v24  ;;  %v1241_v34 = vrot.slane %v2540_v10, %v2596_v30  ;;  %v1252_v38 = vrot.slane %v2540_v10, %v2608_v35  ;;  %s2180_s15 = sshll.u32 %s3017_s17, 1 }
  0x19   : > { %2253 = vmatprep.subr.msk.mxu0 %vm801_vm2, %v751_v12  ;;  %2286 = vmatprep.subr.msk.mxu1 %vm801_vm2, %v751_v12  ;;  %v736_v20 = vld [vmem:[%s2565_s24 + $0x8] sm:$0xff]  ;;  %v747_v21 = vld [vmem:[%s2565_s24 + $0x60] sm:$0xff]  ;;  %v737_v22 = vld [vmem:[%s2565_s24 + $0x10] sm:$0xff]  ;;  %v1263_v41 = vrot.slane %v2540_v10, %v2619_v39  ;;  %s556_s4 = sadd.s32 %s2180_s15, %s2518_s26 }
  0x1a   : > { %2254 = vmatpush3.msk.msra.mxu0 %vm801_vm2, %v751_v12  ;;  %2287 = vmatpush3.msk.msra.mxu1 %vm801_vm2, %v751_v12  ;;  %v748_v25 = vld [vmem:[%s2565_s24 + $0x68] sm:$0xff]  ;;  %v738_v26 = vld [vmem:[%s2565_s24 + $0x18] sm:$0xff]  ;;  %v749_v27 = vld [vmem:[%s2565_s24 + $0x70] sm:$0xff]  ;;  %s2181_s28 = sshll.u32 %s556_s4, 3 }
  0x1b   : > { %1203 = vbcast.lane.b32.xlu1 %v1197_v13, 264  ;;  %1199 = vbcast.lane.b32.xlu0 %v1197_v13, 256  ;;  %v739_v28 = vld [vmem:[%s2565_s24 + $0x20] sm:$0xff]  ;;  %v750_v31 = vld [vmem:[%s2565_s24 + $0x78] sm:$0xff]  ;;  %v740_v32 = vld [vmem:[%s2565_s24 + $0x28] sm:$0xff]  ;;  %s558_s29 = scalar_lea.vmem %s3001_s11, %s2181_s28 }
  0x1c   : > { %2279 = vmatprep.subr.mxu1 %v2408_v2  ;;  %2270 = vmatprep.mubr.msk.f32.mxu1 %vm752_vm3, %v745_v16  ;;  %v741_v33 = vld [vmem:[%s2565_s24 + $0x30] sm:$0xff]  ;;  %v742_v36 = vld [vmem:[%s2565_s24 + $0x38] sm:$0xff]  ;;  %v743_v37 = vld [vmem:[%s2565_s24 + $0x40] sm:$0xff] }
  0x1d   : > { %2255 = vmatprep.mubr.msk.f32.mxu0 %vm752_vm3, %v735_v17  ;;  %2271 = vmatmul.mubr.msk.f32.vlgmr.msra.gmra.mxu1 %vm752_vm3, %v746_v18  ;;  %v744_v40 = vld [vmem:[%s2565_s24 + $0x48] sm:$0xff]  ;;  %v2185_v45 = vld [vmem:[%s540_s25] ss:$0 sm:$0xff]  ;;  %s550_s24 = scalar_lea.vmem %s3000_s10, %s3017_s17 }
  0x1e   : > { %2256 = vmatmul.mubr.msk.f32.vlgmr.msra.gmra.mxu0 %vm752_vm3, %v736_v20  ;;  %2273 = vmatprep.mubr.msk.f32.mxu1 %vm752_vm3, %v747_v21  ;;  %v2182_v47 = vld [vmem:[%s532_s13] ss:$0 sm:$0xff] }
  0x1f   : > { %2258 = vmatprep.mubr.msk.f32.mxu0 %vm752_vm3, %v737_v22  ;;  %1210 = vbcast.lane.b32.xlu1 %v1208_v19, 256 }
  0x20   : > { %1221 = vbcast.lane.b32.xlu0 %v1219_v23, 256 }
  0x21   : > { %2274 = vmatmul.mubr.msk.f32.gmra.mxu1 %vm752_vm3, %v748_v25 }
  0x22   : > { %2259 = vmatmul.mubr.msk.f32.gmra.mxu0 %vm752_vm3, %v738_v26  ;;  %2276 = vmatprep.mubr.msk.f32.mxu1 %vm752_vm3, %v749_v27 }
  0x23   : > { %2261 = vmatprep.mubr.msk.f32.mxu0 %vm752_vm3, %v739_v28  ;;  %1214 = vbcast.lane.b32.xlu1 %v1208_v19, 264 }
  0x24   : > { %1232 = vbcast.lane.b32.xlu0 %v1230_v29, 256 }
  0x25   : > { %2277 = vmatmul.mubr.msk.f32.gmra.mxu1 %vm752_vm3, %v750_v31 }
  0x26   : > { %2262 = vmatmul.mubr.msk.f32.gmra.mxu0 %vm752_vm3, %v740_v32  ;;  %2283 = vmatprep.mubr.msk.f32.mxu1 %vm2409_vm1, %v2408_v2 }
  0x27   : > { %2264 = vmatprep.mubr.msk.f32.mxu0 %vm752_vm3, %v741_v33  ;;  %1225 = vbcast.lane.b32.xlu1 %v1219_v23, 264 }
  0x28   : > { %1243 = vbcast.lane.b32.xlu0 %v1241_v34, 256 }
  0x2a   : > { %2265 = vmatmul.mubr.msk.f32.gmra.mxu0 %vm752_vm3, %v742_v36 }
  0x2b   : > { %2267 = vmatprep.mubr.msk.f32.mxu0 %vm752_vm3, %v743_v37  ;;  %1236 = vbcast.lane.b32.xlu1 %v1230_v29, 264 }
  0x2c   : > { %1254 = vbcast.lane.b32.xlu0 %v1252_v38, 256 }
  0x2e   : > { %2268 = vmatmul.mubr.msk.f32.gmra.mxu0 %vm752_vm3, %v744_v40 }
  0x2f   : > { %1247 = vbcast.lane.b32.xlu1 %v1241_v34, 264 }
  0x30   : > { %1265 = vbcast.lane.b32.xlu0 %v1263_v41, 256 }
  0x33   : > { %1258 = vbcast.lane.b32.xlu1 %v1252_v38, 264 }
  0x37   : > { %1269 = vbcast.lane.b32.xlu1 %v1263_v41, 264 }
  0xd8   : > { %v731_v48 = vpop.f32.mrf.mxu1  ;;  %v2245_v50 = vpop.f32.mrf.mxu0 }
  0xd9   : > { %v732_v49 = vadd.f32 %v2185_v45, %v731_v48  ;;  %v2635_v51 = vadd.f32 %v2245_v50, %v2182_v47  ;;  %v2662_v50 = vld [vmem:[%s547_s14] ss:$0 sm:$0xff] }
  0xda   : > { %v2252_v52 = vpop.f32.mrf.mxu1  ;;  %v643_v55 = vpop.f32.mrf.mxu0 }
  0xdb   : > { %v951_v53 = vcombine.high %v732_v49, %v732_v49  ;;  %v958_v54 = vrot.slane %v732_v49, %v957_v46  ;;  %v2637_v56 = vadd.f32 %v2182_v47, %v643_v55  ;;  %2280 = vmatpush3.msra.mxu1 %v2635_v51 }
  0xdc   : > { %2281 = vmatprep.subr.mxu1 %v2408_v2 }
  0xdd   : > { %v965_v57 = vrot.slane %v951_v53, %v957_v46  ;;  %v966_v58 = vcombine.high %v958_v54, %v958_v54  ;;  %v974_v59 = vrot.slane %v958_v54, %v957_v46  ;;  %v2272_v60 = vpop.f32.mrf.mxu1  ;;  %2282 = vmatpush3.msra.mxu1 %v2637_v56 }
  0xde   : > { %v2257_v61 = vpop.f32.mrf.mxu0 }
  0xdf   : > { %v967_v62 = vcombine.high %v965_v57, %v965_v57  ;;  %v1003_v63 = vrot.slane %v974_v59, %v2529_v4  ;;  %v2643_v0 = vrot.slane %v965_v57, %v957_v46  ;;  %v988_v5 = vrot.slane %v966_v58, %v957_v46  ;;  %v921_v6 = vpop.f32.mrf.mxu1 }
  0xe0   : > { %v871_v7 = vpop.f32.mrf.mxu0  ;;  %v996_v33 = vcombine.high %v974_v59, %v974_v59 }
  0xe1   : > { %v995_v8 = vrot.slane %v967_v62, %v957_v46  ;;  %v1041_v9 = vadd.f32 %v2257_v61, %v1003_v63  ;;  %v1040_v11 = vadd.f32 %v1003_v63, %v871_v7  ;;  %v2275_v12 = vpop.f32.mrf.mxu1  ;;  %v997_v13 = vcombine.high %v2643_v0, %v2643_v0 }
  0xe2   : > { %v2260_v2 = vpop.f32.mrf.mxu0  ;;  %v1007_v16 = vrot.slane %v988_v5, %v2529_v4  ;;  %v998_v38 = vcombine.high %v988_v5, %v988_v5  ;;  %v1011_v48 = vrot.slane %v996_v33, %v2529_v4 }
  0xe3   : > { %v1023_v17 = vrot.slane %v995_v8, %v2529_v4  ;;  %v931_v19 = vpop.f32.mrf.mxu1  ;;  %v1057_v21 = vadd.f32 %v1041_v9, %v2635_v51  ;;  %v999_v22 = vcombine.high %v995_v8, %v995_v8  ;;  %v1056_v23 = vadd.f32 %v1040_v11, %v2637_v56 }
  0xe4   : > { %v1043_v18 = vadd.f32 %v2260_v2, %v1007_v16  ;;  %v881_v20 = vpop.f32.mrf.mxu0  ;;  %v1027_v25 = vrot.slane %v997_v13, %v2529_v4  ;;  %v1015_v55 = vrot.slane %v998_v38, %v2529_v4 }
  0xe5   : > { %v1042_v27 = vadd.f32 %v1007_v16, %v881_v20  ;;  %v2278_v28 = vpop.f32.mrf.mxu1  ;;  %v1051_v31 = vadd.f32 %v2272_v60, %v1023_v17  ;;  %v1050_v32 = vadd.f32 %v1023_v17, %v921_v6  ;;  %v1031_v37 = vrot.slane %v999_v22, %v2529_v4 }
  0xe6   : > { %v1059_v26 = vadd.f32 %v1043_v18, %v2635_v51  ;;  %v2263_v29 = vpop.f32.mrf.mxu0  ;;  %v1089_v40 = vmul.f32 0.2, %v1057_v21  ;;  %v1088_v41 = vmul.f32 0.2, %v1056_v23  ;;  %v1052_v43 = vadd.f32 %v1027_v25, %v931_v19 }
  0xe7   : > { %v1058_v36 = vadd.f32 %v1042_v27, %v2637_v56  ;;  %v941_v44 = vpop.f32.mrf.mxu1  ;;  %v1067_v45 = vadd.f32 %v1051_v31, %v2635_v51  ;;  %v1066_v46 = vadd.f32 %v1050_v32, %v2637_v56  ;;  %v1053_v47 = vadd.f32 %v2275_v12, %v1027_v25 }
  0xe8   : > { %v891_v34 = vpop.f32.mrf.mxu0  ;;  %v1091_v42 = vmul.f32 0.2, %v1059_v26  ;;  %vm1072_vm4 = vcmp.gt.f32.partialorder %v1056_v23, 0.0  ;;  %vm1075_vm6 = vcmp.gt.f32.partialorder %v1059_v26, 0.0  ;;  %vm1073_vm7 = vcmp.gt.f32.partialorder %v1057_v21, 0.0 }
  0xe9   : > { %v1090_v52 = vmul.f32 0.2, %v1058_v36  ;;  %v1045_v53 = vadd.f32 %v2263_v29, %v1011_v48  ;;  %v1054_v54 = vadd.f32 %v1031_v37, %v941_v44  ;;  %v1068_v57 = vadd.f32 %v1052_v43, %v2637_v56 }
  0xea   : > { %v2266_v49 = vpop.f32.mrf.mxu0  ;;  %v1104_v58 = vsel %vm1072_vm4, %v1056_v23, %v1088_v41  ;;  %v1107_v59 = vsel %vm1075_vm6, %v1059_v26, %v1091_v42  ;;  %v1105_v60 = vsel %vm1073_vm7, %v1057_v21, %v1089_v40  ;;  %v1099_v61 = vmul.f32 0.2, %v1067_v45 }
  0xeb   : > { %v1098_v62 = vmul.f32 0.2, %v1066_v46  ;;  %v1069_v63 = vadd.f32 %v1053_v47, %v2635_v51  ;;  %v1127_v6 = vmul.f32 %v2662_v50, %v1104_v58  ;;  %v1055_v7 = vadd.f32 %v2278_v28, %v1031_v37 }
  0xec   : > { %v901_v5 = vpop.f32.mrf.mxu0  ;;  %v1044_v8 = vadd.f32 %v1011_v48, %v891_v34  ;;  %v1130_v9 = vmul.f32 %v2662_v50, %v1107_v59  ;;  %vm1074_vm8 = vcmp.gt.f32.partialorder %v1058_v36, 0.0  ;;  %v1070_v11 = vadd.f32 %v1054_v54, %v2637_v56 }
  0xed   : > { %v1144_v12 = vsel %vm1143_vm5, %v1127_v6, 0.0  ;;  %v1128_v13 = vmul.f32 %v2662_v50, %v1105_v60  ;;  %v1106_v2 = vsel %vm1074_vm8, %v1058_v36, %v1090_v52  ;;  %v1100_v16 = vmul.f32 0.2, %v1068_v57 }
  0xee   : > { %v1061_v17 = vadd.f32 %v1045_v53, %v2635_v51  ;;  %1145 = vadd.xlane.f32.xlu0 %v1144_v12  ;;  %v1153_v18 = vsel %vm1143_vm5, %v1130_v9, 0.0  ;;  %v1129_v19 = vmul.f32 %v2662_v50, %v1106_v2  ;;  %v1101_v20 = vmul.f32 0.2, %v1069_v63  ;;  %v2269_v21 = vpop.f32.mrf.mxu0 }
  0xef   : > { %1154 = vadd.xlane.f32.xlu1 %v1153_v18  ;;  %vm1082_vm9 = vcmp.gt.f32.partialorder %v1066_v46, 0.0  ;;  %vm1083_vm10 = vcmp.gt.f32.partialorder %v1067_v45, 0.0  ;;  %vm1084_vm11 = vcmp.gt.f32.partialorder %v1068_v57, 0.0  ;;  %v1060_v22 = vadd.f32 %v1044_v8, %v2637_v56 }
  0xf0   : > { %v1047_v23 = vadd.f32 %v2266_v49, %v1015_v55  ;;  %v1114_v25 = vsel %vm1082_vm9, %v1066_v46, %v1098_v62  ;;  %v1115_v26 = vsel %vm1083_vm10, %v1067_v45, %v1099_v61  ;;  %v1102_v27 = vmul.f32 0.2, %v1070_v11  ;;  %v911_v38 = vpop.f32.mrf.mxu0 }
  0xf1   : > { %v1046_v28 = vadd.f32 %v1015_v55, %v901_v5  ;;  %v1147_v29 = vsel %vm1143_vm5, %v1128_v13, 0.0  ;;  %v1137_v31 = vmul.f32 %v2662_v50, %v1114_v25  ;;  %v1150_v32 = vsel %vm1143_vm5, %v1129_v19, 0.0 }
  0xf2   : > { %1148 = vadd.xlane.f32.xlu0 %v1147_v29  ;;  %v1138_v33 = vmul.f32 %v2662_v50, %v1115_v26  ;;  %v1116_v34 = vsel %vm1084_vm11, %v1068_v57, %v1100_v16  ;;  %vm1085_vm12 = vcmp.gt.f32.partialorder %v1069_v63, 0.0  ;;  %v1071_v36 = vadd.f32 %v1055_v7, %v2635_v51 }
  0xf3   : > { %v1093_v37 = vmul.f32 0.2, %v1061_v17  ;;  %1151 = vadd.xlane.f32.xlu1 %v1150_v32  ;;  %v1117_v40 = vsel %vm1085_vm12, %v1069_v63, %v1101_v20  ;;  %vm1086_vm13 = vcmp.gt.f32.partialorder %v1070_v11, 0.0  ;;  %v1063_v41 = vadd.f32 %v1047_v23, %v2635_v51  ;;  %v1204_v32 = vpop.permute.xlu1 %1203 }
  0xf4   : > { %v1019_v42 = vrot.slane %v2643_v0, %v2529_v4  ;;  %vm1077_vm14 = vcmp.gt.f32.partialorder %v1061_v17, 0.0  ;;  %v1092_v43 = vmul.f32 0.2, %v1060_v22  ;;  %v1062_v44 = vadd.f32 %v1046_v28, %v2637_v56 }
  0xf5   : > { %v1174_v45 = vsel %vm1143_vm5, %v1137_v31, 0.0  ;;  %v1139_v46 = vmul.f32 %v2662_v50, %v1116_v34  ;;  %v1177_v48 = vsel %vm1143_vm5, %v1138_v33, 0.0  ;;  %v1140_v49 = vmul.f32 %v2662_v50, %v1117_v40  ;;  %v1200_v34 = vpop.permute.xlu0 %1199 }
  0xf6   : > { %v1048_v47 = vadd.f32 %v1019_v42, %v911_v38  ;;  %1175 = vadd.xlane.f32.xlu0 %v1174_v45  ;;  %v1118_v52 = vsel %vm1086_vm13, %v1070_v11, %v1102_v27  ;;  %v1103_v53 = vmul.f32 0.2, %v1071_v36  ;;  %v1049_v54 = vadd.f32 %v2269_v21, %v1019_v42 }
  0xf7   : > { %1178 = vadd.xlane.f32.xlu1 %v1177_v48  ;;  %v1109_v55 = vsel %vm1077_vm14, %v1061_v17, %v1093_v37  ;;  %vm1076_vm15 = vcmp.gt.f32.partialorder %v1060_v22, 0.0  ;;  %vm1087_vm1 = vcmp.gt.f32.partialorder %v1071_v36, 0.0  ;;  %v1095_v0 = vmul.f32 0.2, %v1063_v41  ;;  %v1211_v33 = vpop.permute.xlu1 %1210 }
  0xf8   : > { %v1094_v57 = vmul.f32 0.2, %v1062_v44  ;;  %v1180_v58 = vsel %vm1143_vm5, %v1139_v46, 0.0  ;;  %v1141_v59 = vmul.f32 %v2662_v50, %v1118_v52  ;;  %v1064_v60 = vadd.f32 %v1048_v47, %v2637_v56 }
  0xf9   : > { %v1183_v61 = vsel %vm1143_vm5, %v1140_v49, 0.0  ;;  %v1132_v62 = vmul.f32 %v2662_v50, %v1109_v55  ;;  %v1108_v63 = vsel %vm1076_vm15, %v1060_v22, %v1092_v43  ;;  %v1065_v5 = vadd.f32 %v1049_v54, %v2635_v51 }
  0xfa   : > { %1181 = vadd.xlane.f32.xlu0 %v1180_v58  ;;  %v1119_v6 = vsel %vm1087_vm1, %v1071_v36, %v1103_v53  ;;  %vm1078_vm2 = vcmp.gt.f32.partialorder %v1062_v44, 0.0  ;;  %vm1079_vm3 = vcmp.gt.f32.partialorder %v1063_v41, 0.0  ;;  %v2411_v7 = vmov 0  }
  0xfb   : > { %1184 = vadd.xlane.f32.xlu1 %v1183_v61  ;;  %2332 = vset.pattern.permute.xlu0 %v2411_v7  ;;  %v1186_v8 = vsel %vm1143_vm5, %v1141_v59, 0.0  ;;  %v1131_v9 = vmul.f32 %v2662_v50, %v1108_v63  ;;  %v1096_v56 = vmul.f32 0.2, %v1064_v60  ;;  %v1159_v11 = vsel %vm1143_vm5, %v1132_v62, 0.0  ;;  %v1215_v36 = vpop.permute.xlu1 %1214 }
  0xfc   : > { %2333 = vset.pattern.permute.xlu1 %v2411_v7  ;;  %v1142_v12 = vmul.f32 %v2662_v50, %v1119_v6  ;;  %v1110_v13 = vsel %vm1078_vm2, %v1062_v44, %v1094_v57  ;;  %v1097_v2 = vmul.f32 0.2, %v1065_v5  ;;  %v1111_v51 = vsel %vm1079_vm3, %v1063_v41, %v1095_v0 }
  0xfd   : > { %vm1080_vm4 = vcmp.gt.f32.partialorder %v1064_v60, 0.0  ;;  %vm1081_vm6 = vcmp.gt.f32.partialorder %v1065_v5, 0.0  ;;  %v1156_v16 = vsel %vm1143_vm5, %v1131_v9, 0.0  ;;  %v1133_v17 = vmul.f32 %v2662_v50, %v1110_v13 }
  0xfe   : > { %1187 = vadd.xlane.f32.xlu0 %v1186_v8  ;;  %v1189_v18 = vsel %vm1143_vm5, %v1142_v12, 0.0  ;;  %v1134_v19 = vmul.f32 %v2662_v50, %v1111_v51  ;;  %v1112_v20 = vsel %vm1080_vm4, %v1064_v60, %v1096_v56  ;;  %v1113_v21 = vsel %vm1081_vm6, %v1065_v5, %v1097_v2 }
  0xff   : > { %1160 = vadd.xlane.f32.xlu1 %v1159_v11  ;;  %v1162_v22 = vsel %vm1143_vm5, %v1133_v17, 0.0  ;;  %v1135_v23 = vmul.f32 %v2662_v50, %v1112_v20  ;;  %v1136_v26 = vmul.f32 %v2662_v50, %v1113_v21  ;;  %v2710_v29 = vsub.s32 7, %v2515_v3  ;;  %v1222_v50 = vpop.permute.xlu0 %1221  ;;  %v1226_v37 = vpop.permute.xlu1 %1225 }
 0x100   : > { %v1165_v25 = vsel %vm1143_vm5, %v1134_v19, 0.0  ;;  %vm1389_vm7 = vcmask 130112   ;;  %vm1454_vm8 = vcmask 1041409   ;;  %vm1456_vm9 = vcmask 1042434  }
 0x101   : > { %v1168_v27 = vsel %vm1143_vm5, %v1135_v23, 0.0  ;;  %v1171_v28 = vsel %vm1143_vm5, %v1136_v26, 0.0  ;;  %v1274_v31 = vrot.slane %v2540_v10, %v2710_v29  ;;  %vm1458_vm10 = vcmask 1043459  }
 0x102   : > { %1157 = vadd.xlane.f32.xlu0 %v1156_v16  ;;  %vm1460_vm11 = vcmask 1044484   ;;  %vm1462_vm12 = vcmask 1045509   ;;  %vm1464_vm13 = vcmask 1046534   ;;  %vm1466_vm14 = vcmask 1047559  }
 0x103   : > { %1190 = vadd.xlane.f32.xlu1 %v1189_v18  ;;  %v1233_v38 = vpop.permute.xlu0 %1232  ;;  %v1237_v40 = vpop.permute.xlu1 %1236 }
 0x106   : > { %1163 = vadd.xlane.f32.xlu0 %v1162_v22 }
 0x107   : > { %1166 = vadd.xlane.f32.xlu1 %v1165_v25  ;;  %v1244_v41 = vpop.permute.xlu0 %1243  ;;  %v1248_v42 = vpop.permute.xlu1 %1247 }
 0x10a   : > { %1169 = vadd.xlane.f32.xlu0 %v1168_v27 }
 0x10b   : > { %1172 = vadd.xlane.f32.xlu1 %v1171_v28  ;;  %v1255_v43 = vpop.permute.xlu0 %1254  ;;  %v1259_v44 = vpop.permute.xlu1 %1258 }
 0x10f   : > { %v1266_v45 = vpop.permute.xlu0 %1265  ;;  %v1270_v46 = vpop.permute.xlu1 %1269 }
 0x11c   : > { %1280 = vbcast.lane.b32.xlu1 %v1274_v31, 264 }
 0x120   : > { %1276 = vbcast.lane.b32.xlu0 %v1274_v31, 256 }
 0x177   : > { %v1146_v47 = vpop.xlane.xlu0 %1145 }
 0x178   : > { %v2714_v48 = vadd.f32 %v1200_v34, %v1146_v47  ;;  %v1155_v10 = vpop.xlane.xlu1 %1154 }
 0x179   : > { %v2717_v52 = vadd.f32 %v1215_v36, %v1155_v10 }
 0x17a   : > { %1331 = vperm.xlu0 %2332, %v2714_v48  }
 0x17b   : > { %v1149_v49 = vpop.xlane.xlu0 %1148 }
 0x17c   : > { %v2719_v53 = vadd.f32 %v1204_v32, %v1149_v49  ;;  %v1152_v54 = vpop.xlane.xlu1 %1151  ;;  %v1379_v32 = vand.u32 127, %v955_v1 }
 0x17d   : > { %v2723_v0 = vadd.f32 %v1211_v33, %v1152_v54 }
 0x17e   : > { %1334 = vperm.xlu1 %2333, %v2719_v53   ;;  %1340 = vperm.xlu0 %2332, %v2717_v52   ;;  %v1384_v36 = vadd.s32 4294967288, %v1379_v32 }
 0x17f   : > { %v1176_v55 = vpop.xlane.xlu0 %1175 }
 0x180   : > { %v1179_v57 = vpop.xlane.xlu1 %1178  ;;  %v2729_v60 = vadd.f32 %v1255_v43, %v1176_v55 }
 0x181   : > { %v2725_v58 = vadd.f32 %v1259_v44, %v1179_v57 }
 0x182   : > { %1337 = vperm.xlu1 %2333, %v2723_v0  }
 0x183   : > { %v1182_v59 = vpop.xlane.xlu0 %1181  ;;  %1364 = vperm.xlu0 %2332, %v2725_v58  }
 0x184   : > { %v1185_v61 = vpop.xlane.xlu1 %1184  ;;  %v2735_v5 = vadd.f32 %v1266_v45, %v1182_v59 }
 0x185   : > { %v2731_v62 = vadd.f32 %v1270_v46, %v1185_v61 }
 0x186   : > { %1361 = vperm.xlu1 %2333, %v2729_v60  }
 0x187   : > { %v1188_v63 = vpop.xlane.xlu0 %1187  ;;  %1370 = vperm.xlu0 %2332, %v2731_v62  }
 0x188   : > { %v1161_v6 = vpop.xlane.xlu1 %1160 }
 0x189   : > { %v2737_v7 = vadd.f32 %v1226_v37, %v1161_v6  ;;  %v2764_v37 = vsub.s32 %v1379_v32, %v2515_v3 }
 0x18a   : > { %1367 = vperm.xlu1 %2333, %v2735_v5  }
 0x18b   : > { %v1158_v8 = vpop.xlane.xlu0 %1157  ;;  %1346 = vperm.xlu0 %2332, %v2737_v7  }
 0x18c   : > { %v2741_v9 = vadd.f32 %v1222_v50, %v1158_v8  ;;  %v1191_v56 = vpop.xlane.xlu1 %1190 }
 0x18e   : > { %1343 = vperm.xlu1 %2333, %v2741_v9  }
 0x18f   : > { %v1164_v11 = vpop.xlane.xlu0 %1163 }
 0x190   : > { %v2744_v12 = vadd.f32 %v1233_v38, %v1164_v11  ;;  %v1167_v13 = vpop.xlane.xlu1 %1166  ;;  %v2767_v38 = vsub.s32 %v1384_v36, %v2515_v3 }
 0x191   : > { %v2746_v2 = vadd.f32 %v1237_v40, %v1167_v13 }
 0x192   : > { %1349 = vperm.xlu1 %2333, %v2744_v12  }
 0x193   : > { %v1170_v51 = vpop.xlane.xlu0 %1169  ;;  %1352 = vperm.xlu0 %2332, %v2746_v2  }
 0x194   : > { %v2750_v16 = vadd.f32 %v1244_v41, %v1170_v51  ;;  %v1173_v17 = vpop.xlane.xlu1 %1172 }
 0x195   : > { %v2752_v18 = vadd.f32 %v1248_v42, %v1173_v17 }
 0x196   : > { %1355 = vperm.xlu1 %2333, %v2750_v16  }
 0x197   : > { %v1277_v19 = vpop.permute.xlu0 %1276  ;;  %1358 = vperm.xlu0 %2332, %v2752_v18  }
 0x198   : > { %v2756_v20 = vadd.f32 %v1277_v19, %v1188_v63  ;;  %v1281_v21 = vpop.permute.xlu1 %1280 }
 0x199   : > { %v2758_v22 = vadd.f32 %v1281_v21, %v1191_v56 }
 0x19a   : > { %1373 = vperm.xlu1 %2333, %v2756_v20  }
 0x19b   : > { %1376 = vperm.xlu0 %2332, %v2758_v22  }
 0x1f5   : > { %v1332_v23 = vpop.permute.xlu0 %1331 }
 0x1f6   : > { %v1383_v10 = vrot.slane %v1332_v23, %v2764_v37 }
 0x1f9   : > { %v1335_v25 = vpop.permute.xlu1 %1334  ;;  %v1341_v26 = vpop.permute.xlu0 %1340 }
 0x1fa   : > { %v1388_v44 = vrot.slane %v1335_v25, %v2767_v38  ;;  %v1398_v1 = vrot.slane %v1341_v26, %v2767_v38 }
 0x1fc   : > { %v1390_v57 = vsel %vm1389_vm7, %v1388_v44, %v1383_v10 }
 0x1fd   : > { %v1338_v27 = vpop.permute.xlu1 %1337 }
 0x1fe   : > { %v1365_v28 = vpop.permute.xlu0 %1364  ;;  %v1394_v41 = vrot.slane %v1338_v27, %v2764_v37 }
 0x1ff   : > { %v1434_v13 = vrot.slane %v1365_v28, %v2767_v38 }
 0x200   : > { %v1399_v3 = vsel %vm1389_vm7, %v1398_v1, %v1394_v41 }
 0x201   : > { %v1362_v31 = vpop.permute.xlu1 %1361  ;;  %v1455_v6 = vsel %vm1454_vm8, %v1399_v3, %v1390_v57 }
 0x202   : > { %v1371_v33 = vpop.permute.xlu0 %1370  ;;  %v1430_v59 = vrot.slane %v1362_v31, %v2764_v37 }
 0x203   : > { %v1443_v17 = vrot.slane %v1371_v33, %v2767_v38 }
 0x204   : > { %v1435_v25 = vsel %vm1389_vm7, %v1434_v13, %v1430_v59 }
 0x205   : > { %v1368_v34 = vpop.permute.xlu1 %1367 }
 0x206   : > { %v1347_v40 = vpop.permute.xlu0 %1346  ;;  %v1439_v8 = vrot.slane %v1368_v34, %v2764_v37 }
 0x207   : > { %v1407_v46 = vrot.slane %v1347_v40, %v2767_v38 }
 0x208   : > { %v1444_v31 = vsel %vm1389_vm7, %v1443_v17, %v1439_v8 }
 0x209   : > { %v1344_v50 = vpop.permute.xlu1 %1343 }
 0x20a   : > { %v1403_v42 = vrot.slane %v1344_v50, %v2764_v37 }
 0x20c   : > { %v1408_v54 = vsel %vm1389_vm7, %v1407_v46, %v1403_v42 }
 0x20d   : > { %v1350_v43 = vpop.permute.xlu1 %1349  ;;  %v1457_v51 = vsel %vm1456_vm9, %v1408_v54, %v1455_v6 }
 0x20e   : > { %v1353_v45 = vpop.permute.xlu0 %1352  ;;  %v1412_v49 = vrot.slane %v1350_v43, %v2764_v37 }
 0x20f   : > { %v1416_v47 = vrot.slane %v1353_v45, %v2767_v38 }
 0x211   : > { %v1356_v55 = vpop.permute.xlu1 %1355  ;;  %v1417_v61 = vsel %vm1389_vm7, %v1416_v47, %v1412_v49 }
 0x212   : > { %v1359_v63 = vpop.permute.xlu0 %1358  ;;  %v1421_v56 = vrot.slane %v1356_v55, %v2764_v37  ;;  %v1459_v19 = vsel %vm1458_vm10, %v1417_v61, %v1457_v51 }
 0x213   : > { %v1425_v11 = vrot.slane %v1359_v63, %v2767_v38 }
 0x215   : > { %v1426_v21 = vsel %vm1389_vm7, %v1425_v11, %v1421_v56  ;;  %v1374_v23 = vpop.permute.xlu1 %1373 }
 0x216   : > { %v1461_v26 = vsel %vm1460_vm11, %v1426_v21, %v1459_v19  ;;  %v1377_v27 = vpop.permute.xlu0 %1376  ;;  %v1448_v28 = vrot.slane %v1374_v23, %v2764_v37 }
 0x217   : > { %v1452_v32 = vrot.slane %v1377_v27, %v2767_v38  ;;  %v1463_v33 = vsel %vm1462_vm12, %v1435_v25, %v1461_v26 }
 0x218   : > { %v1465_v34 = vsel %vm1464_vm13, %v1444_v31, %v1463_v33 }
 0x219   : > { %v1453_v36 = vsel %vm1389_vm7, %v1452_v32, %v1448_v28 }
 0x21a   : > { %v1467_v50 = vsel %vm1466_vm14, %v1453_v36, %v1465_v34 }
 0x21b   : > { %v1469_v40 = vsel %vm570_vm0, %v1467_v50, -inf }
 0x21c   : > { %1470 = vmax.xlane.f32.xlu1 %v1469_v40 }
 0x2a5   : > { %v1471_v41 = vpop.xlane.xlu1 %1470 }
 0x2a6   : > { %v1476_v42 = vrot.slane %v1471_v41, %v2529_v4  ;;  %v1480_v44 = vrot.slane %v1471_v41, %v2552_v14  ;;  %v1492_v45 = vrot.slane %v1471_v41, %v2596_v30  ;;  %v2809_v49 = vrot.slane %v1471_v41, %v2710_v29 }
 0x2a7   : > { %v1484_v54 = vrot.slane %v1471_v41, %v2559_v15 }
 0x2a8   : > { %v1513_v43 = vsub.f32 %v2714_v48, %v1476_v42  ;;  %v1514_v1 = vsub.f32 %v2719_v53, %v1476_v42  ;;  %v1515_v47 = vsub.f32 %v2723_v0, %v1480_v44  ;;  %v1522_v3 = vsub.f32 %v2752_v18, %v1492_v45 }
 0x2a9   : > { %v1516_v48 = vsub.f32 %v2717_v52, %v1480_v44  ;;  %v1528_v53 = vsub.f32 %v2758_v22, %v2809_v49  ;;  %v1517_v59 = vsub.f32 %v2741_v9, %v1484_v54  ;;  %v1488_v18 = vrot.slane %v1471_v41, %v2583_v24 }
 0x2aa   : > { %v1529_v46 = vmul.f32 1.442695, %v1513_v43  ;;  %v1531_v10 = vmul.f32 1.442695, %v1514_v1  ;;  %v1533_v55 = vmul.f32 1.442695, %v1515_v47  ;;  %v1518_v63 = vsub.f32 %v2737_v7, %v1484_v54 }
 0x2ab   : > { %v1547_v57 = vmul.f32 1.442695, %v1522_v3  ;;  %v1535_v0 = vmul.f32 1.442695, %v1516_v48  ;;  %v1559_v61 = vmul.f32 1.442695, %v1528_v53  ;;  %v1519_v52 = vsub.f32 %v2744_v12, %v1488_v18 }
 0x2ac   : > { %2334 = vpow2.f32 %v1529_v46  ;;  %v1537_v6 = vmul.f32 1.442695, %v1517_v59  ;;  %v1539_v22 = vmul.f32 1.442695, %v1518_v63  ;;  %v1520_v56 = vsub.f32 %v2746_v2, %v1488_v18 }
 0x2ad   : > { %2336 = vpow2.f32 %v1531_v10  ;;  %v1541_v11 = vmul.f32 1.442695, %v1519_v52  ;;  %v1496_v12 = vrot.slane %v1471_v41, %v2608_v35  ;;  %v1521_v51 = vsub.f32 %v2750_v16, %v1492_v45 }
 0x2ae   : > { %2338 = vpow2.f32 %v1533_v55  ;;  %v1543_v17 = vmul.f32 1.442695, %v1520_v56  ;;  %v1500_v16 = vrot.slane %v1471_v41, %v2619_v39 }
 0x2af   : > { %2340 = vpow2.f32 %v1547_v57  ;;  %v1523_v21 = vsub.f32 %v2729_v60, %v1496_v12  ;;  %v1545_v23 = vmul.f32 1.442695, %v1521_v51  ;;  %v1524_v26 = vsub.f32 %v2725_v58, %v1496_v12 }
 0x2b0   : > { %2342 = vpow2.f32 %v1535_v0  ;;  %v1525_v60 = vsub.f32 %v2735_v5, %v1500_v16  ;;  %v1526_v33 = vsub.f32 %v2731_v62, %v1500_v16  ;;  %v1527_v58 = vsub.f32 %v2756_v20, %v2809_v49 }
 0x2b1   : > { %2344 = vpow2.f32 %v1559_v61  ;;  %v1549_v27 = vmul.f32 1.442695, %v1523_v21  ;;  %v1551_v28 = vmul.f32 1.442695, %v1524_v26 }
 0x2b2   : > { %2346 = vpow2.f32 %v1537_v6  ;;  %v1553_v34 = vmul.f32 1.442695, %v1525_v60  ;;  %v1555_v50 = vmul.f32 1.442695, %v1526_v33  ;;  %v1557_v40 = vmul.f32 1.442695, %v1527_v58 }
 0x2b3   : > { %2348 = vpow2.f32 %v1539_v22 }
 0x2b4   : > { %2350 = vpow2.f32 %v1541_v11 }
 0x2b5   : > { %2352 = vpow2.f32 %v1543_v17 }
 0x2b6   : > { %2354 = vpow2.f32 %v1545_v23 }
 0x2b7   : > { %2356 = vpow2.f32 %v1549_v27 }
 0x2b8   : > { %2358 = vpow2.f32 %v1551_v28 }
 0x2b9   : > { %v2818_v8 = vpop.eup %2334  ;;  %2360 = vpow2.f32 %v1553_v34 }
 0x2ba   : > { %1578 = vperm.xlu0 %2332, %v2818_v8   ;;  %v2822_v9 = vpop.eup %2336  ;;  %2362 = vpow2.f32 %v1555_v50 }
 0x2bb   : > { %v2826_v7 = vpop.eup %2338  ;;  %2364 = vpow2.f32 %v1557_v40 }
 0x2bc   : > { %v2828_v13 = vpop.eup %2340 }
 0x2bd   : > { %1605 = vperm.xlu1 %2333, %v2828_v13   ;;  %v2834_v19 = vpop.eup %2342 }
 0x2be   : > { %1581 = vperm.xlu0 %2332, %v2822_v9   ;;  %v2837_v2 = vpop.eup %2344 }
 0x2bf   : > { %v2840_v25 = vpop.eup %2346 }
 0x2c0   : > { %v2846_v31 = vpop.eup %2348 }
 0x2c1   : > { %1623 = vperm.xlu1 %2333, %v2837_v2   ;;  %v2850_v32 = vpop.eup %2350 }
 0x2c2   : > { %1584 = vperm.xlu0 %2332, %v2826_v7   ;;  %v2854_v36 = vpop.eup %2352 }
 0x2c3   : > { %v2859_v5 = vpop.eup %2354 }
 0x2c4   : > { %v2862_v41 = vpop.eup %2356 }
 0x2c5   : > { %v2865_v62 = vpop.eup %2358 }
 0x2c6   : > { %1587 = vperm.xlu0 %2332, %v2834_v19   ;;  %v2868_v42 = vpop.eup %2360 }
 0x2c7   : > { %v2871_v20 = vpop.eup %2362 }
 0x2c8   : > { %v2874_v43 = vpop.eup %2364 }
 0x2ca   : > { %1590 = vperm.xlu0 %2332, %v2840_v25  }
 0x2ce   : > { %1593 = vperm.xlu0 %2332, %v2846_v31  }
 0x2d2   : > { %1596 = vperm.xlu0 %2332, %v2850_v32  }
 0x2d6   : > { %1599 = vperm.xlu0 %2332, %v2854_v36  }
 0x2da   : > { %1602 = vperm.xlu0 %2332, %v2859_v5  }
 0x2de   : > { %1608 = vperm.xlu0 %2332, %v2862_v41  }
 0x2e2   : > { %1611 = vperm.xlu0 %2332, %v2865_v62  }
 0x2e6   : > { %1614 = vperm.xlu0 %2332, %v2868_v42  }
 0x2ea   : > { %1617 = vperm.xlu0 %2332, %v2871_v20  }
 0x2ee   : > { %1620 = vperm.xlu0 %2332, %v2874_v43  }
 0x335   : > { %v1579_v44 = vpop.permute.xlu0 %1578 }
 0x336   : > { %v1628_v22 = vrot.slane %v1579_v44, %v2764_v37 }
 0x338   : > { %v1606_v53 = vpop.permute.xlu1 %1605 }
 0x339   : > { %v1582_v1 = vpop.permute.xlu0 %1581  ;;  %v1668_v51 = vrot.slane %v1606_v53, %v2767_v38 }
 0x33a   : > { %v1632_v61 = vrot.slane %v1582_v1, %v2767_v38 }
 0x33c   : > { %v1633_v23 = vsel %vm1389_vm7, %v1632_v61, %v1628_v22  ;;  %v1624_v60 = vpop.permute.xlu1 %1623 }
 0x33d   : > { %v1585_v45 = vpop.permute.xlu0 %1584 }
 0x33e   : > { %v1637_v18 = vrot.slane %v1585_v45, %v2764_v37  ;;  %v1695_v45 = vrot.slane %v1624_v60, %v2767_v38 }
 0x341   : > { %v1588_v46 = vpop.permute.xlu0 %1587 }
 0x342   : > { %v1641_v57 = vrot.slane %v1588_v46, %v2767_v38 }
 0x344   : > { %v1642_v56 = vsel %vm1389_vm7, %v1641_v57, %v1637_v18 }
 0x345   : > { %v1591_v47 = vpop.permute.xlu0 %1590  ;;  %v1697_v28 = vsel %vm1454_vm8, %v1642_v56, %v1633_v23 }
 0x346   : > { %v1646_v6 = vrot.slane %v1591_v47, %v2764_v37 }
 0x349   : > { %v1594_v10 = vpop.permute.xlu0 %1593 }
 0x34a   : > { %v1650_v59 = vrot.slane %v1594_v10, %v2767_v38 }
 0x34c   : > { %v1651_v17 = vsel %vm1389_vm7, %v1650_v59, %v1646_v6 }
 0x34d   : > { %v1597_v3 = vpop.permute.xlu0 %1596  ;;  %v1698_v58 = vsel %vm1456_vm9, %v1651_v17, %v1697_v28 }
 0x34e   : > { %v1655_v11 = vrot.slane %v1597_v3, %v2764_v37 }
 0x351   : > { %v1600_v49 = vpop.permute.xlu0 %1599 }
 0x352   : > { %v1659_v63 = vrot.slane %v1600_v49, %v2767_v38 }
 0x354   : > { %v1660_v16 = vsel %vm1389_vm7, %v1659_v63, %v1655_v11 }
 0x355   : > { %v1603_v54 = vpop.permute.xlu0 %1602  ;;  %v1699_v40 = vsel %vm1458_vm10, %v1660_v16, %v1698_v58 }
 0x356   : > { %v1664_v52 = vrot.slane %v1603_v54, %v2764_v37 }
 0x358   : > { %v1669_v33 = vsel %vm1389_vm7, %v1668_v51, %v1664_v52 }
 0x359   : > { %v1609_v48 = vpop.permute.xlu0 %1608  ;;  %v1700_v46 = vsel %vm1460_vm11, %v1669_v33, %v1699_v40 }
 0x35a   : > { %v1673_v26 = vrot.slane %v1609_v48, %v2764_v37 }
 0x35d   : > { %v1612_v55 = vpop.permute.xlu0 %1611 }
 0x35e   : > { %v1677_v12 = vrot.slane %v1612_v55, %v2767_v38 }
 0x360   : > { %v1678_v50 = vsel %vm1389_vm7, %v1677_v12, %v1673_v26 }
 0x361   : > { %v1615_v0 = vpop.permute.xlu0 %1614  ;;  %v1701_v10 = vsel %vm1462_vm12, %v1678_v50, %v1700_v46 }
 0x362   : > { %v1682_v34 = vrot.slane %v1615_v0, %v2764_v37 }
 0x365   : > { %v1618_v21 = vpop.permute.xlu0 %1617 }
 0x366   : > { %v1686_v27 = vrot.slane %v1618_v21, %v2767_v38 }
 0x368   : > { %v1687_v44 = vsel %vm1389_vm7, %v1686_v27, %v1682_v34 }
 0x369   : > { %v1621_v1 = vpop.permute.xlu0 %1620  ;;  %v1702_v49 = vsel %vm1464_vm13, %v1687_v44, %v1701_v10 }
 0x36a   : > { %v1691_v47 = vrot.slane %v1621_v1, %v2764_v37 }
 0x36c   : > { %v1696_v3 = vsel %vm1389_vm7, %v1695_v45, %v1691_v47 }
 0x36d   : > { %v1703_v54 = vsel %vm1466_vm14, %v1696_v3, %v1702_v49 }
 0x36e   : > { %v1705_v48 = vsel %vm570_vm0, %v1703_v54, 0.0 }
 0x36f   : > { %1706 = vadd.xlane.f32.xlu0 %v1705_v48 }
 0x3f8   : > { %v1707_v55 = vpop.xlane.xlu0 %1706 }
 0x3f9   : > { %2366 = vrcp.f32 %v1707_v55 }
 0x406   : > { %v2367_v57 = vpop.eup %2366 }
 0x407   : > { %v1729_v53 = vrot.slane %v2367_v57, %v2596_v30  ;;  %v1713_v59 = vrot.slane %v2367_v57, %v2529_v4  ;;  %v1741_v18 = vrot.slane %v2367_v57, %v2710_v29  ;;  %v1717_v52 = vrot.slane %v2367_v57, %v2552_v14 }
 0x409   : > { %v1758_v0 = vmul.f32 %v2859_v5, %v1729_v53  ;;  %v1750_v61 = vmul.f32 %v2818_v8, %v1713_v59  ;;  %v1765_v63 = vmul.f32 %v2837_v2, %v1741_v18  ;;  %v1751_v6 = vmul.f32 %v2822_v9, %v1713_v59 }
 0x40a   : > { %v1752_v30 = vmul.f32 %v2826_v7, %v1717_v52  ;;  %v1753_v4 = vmul.f32 %v2834_v19, %v1717_v52  ;;  %v1721_v5 = vrot.slane %v2367_v57, %v2559_v15  ;;  %v1725_v2 = vrot.slane %v2367_v57, %v2583_v24 }
 0x40b   : > { %1814 = vperm.xlu0 %2332, %v1758_v0   ;;  %1790 = vperm.xlu1 %2333, %v1750_v61   ;;  %v1759_v7 = vmul.f32 %v2828_v13, %v1729_v53  ;;  %v1733_v19 = vrot.slane %v2367_v57, %v2608_v35 }
 0x40c   : > { %v1754_v29 = vmul.f32 %v2840_v25, %v1721_v5  ;;  %v1755_v8 = vmul.f32 %v2846_v31, %v1721_v5  ;;  %v1756_v14 = vmul.f32 %v2850_v32, %v1725_v2  ;;  %v1757_v9 = vmul.f32 %v2854_v36, %v1725_v2 }
 0x40d   : > { %v1760_v15 = vmul.f32 %v2862_v41, %v1733_v19  ;;  %v1761_v25 = vmul.f32 %v2865_v62, %v1733_v19  ;;  %v1737_v31 = vrot.slane %v2367_v57, %v2619_v39  ;;  %v1764_v36 = vmul.f32 %v2874_v43, %v1741_v18 }
 0x40f   : > { %1835 = vperm.xlu0 %2332, %v1765_v63   ;;  %1793 = vperm.xlu1 %2333, %v1751_v6   ;;  %v1762_v24 = vmul.f32 %v2868_v42, %v1737_v31  ;;  %v1763_v32 = vmul.f32 %v2871_v20, %v1737_v31 }
 0x413   : > { %1796 = vperm.xlu1 %2333, %v1752_v30  }
 0x417   : > { %1799 = vperm.xlu1 %2333, %v1753_v4  }
 0x41b   : > { %1802 = vperm.xlu1 %2333, %v1754_v29  }
 0x41f   : > { %1805 = vperm.xlu1 %2333, %v1755_v8  }
 0x423   : > { %1808 = vperm.xlu1 %2333, %v1756_v14  }
 0x427   : > { %1811 = vperm.xlu1 %2333, %v1757_v9  }
 0x42b   : > { %1817 = vperm.xlu1 %2333, %v1759_v7  }
 0x42f   : > { %1820 = vperm.xlu1 %2333, %v1760_v15  }
 0x433   : > { %1823 = vperm.xlu1 %2333, %v1761_v25  }
 0x437   : > { %1826 = vperm.xlu1 %2333, %v1762_v24  }
 0x43b   : > { %1829 = vperm.xlu1 %2333, %v1763_v32  }
 0x43f   : > { %1832 = vperm.xlu1 %2333, %v1764_v36  }
 0x486   : > { %v1791_v13 = vpop.permute.xlu1 %1790  ;;  %v1815_v21 = vpop.permute.xlu0 %1814 }
 0x487   : > { %v1840_v28 = vrot.slane %v1791_v13, %v2764_v37  ;;  %v1876_v50 = vrot.slane %v1815_v21, %v2764_v37 }
 0x48a   : > { %v1794_v35 = vpop.permute.xlu1 %1793  ;;  %v1836_v10 = vpop.permute.xlu0 %1835 }
 0x48b   : > { %v1844_v43 = vrot.slane %v1794_v35, %v2767_v38  ;;  %v1907_v0 = vrot.slane %v1836_v10, %v2767_v38 }
 0x48d   : > { %v1845_v1 = vsel %vm1389_vm7, %v1844_v43, %v1840_v28 }
 0x48e   : > { %v1797_v22 = vpop.permute.xlu1 %1796 }
 0x48f   : > { %v1849_v16 = vrot.slane %v1797_v22, %v2764_v37 }
 0x492   : > { %v1800_v56 = vpop.permute.xlu1 %1799 }
 0x493   : > { %v1853_v42 = vrot.slane %v1800_v56, %v2767_v38 }
 0x495   : > { %v1854_v33 = vsel %vm1389_vm7, %v1853_v42, %v1849_v16 }
 0x496   : > { %v1803_v41 = vpop.permute.xlu1 %1802  ;;  %v1909_v3 = vsel %vm1454_vm8, %v1854_v33, %v1845_v1 }
 0x497   : > { %v1858_v27 = vrot.slane %v1803_v41, %v2764_v37 }
 0x49a   : > { %v1806_v11 = vpop.permute.xlu1 %1805 }
 0x49b   : > { %v1862_v20 = vrot.slane %v1806_v11, %v2767_v38 }
 0x49d   : > { %v1863_v40 = vsel %vm1389_vm7, %v1862_v20, %v1858_v27 }
 0x49e   : > { %v1809_v12 = vpop.permute.xlu1 %1808  ;;  %v1910_v48 = vsel %vm1456_vm9, %v1863_v40, %v1909_v3 }
 0x49f   : > { %v1867_v34 = vrot.slane %v1809_v12, %v2764_v37 }
 0x4a2   : > { %v1812_v62 = vpop.permute.xlu1 %1811 }
 0x4a3   : > { %v1871_v26 = vrot.slane %v1812_v62, %v2767_v38 }
 0x4a5   : > { %v1872_v45 = vsel %vm1389_vm7, %v1871_v26, %v1867_v34 }
 0x4a6   : > { %v1818_v51 = vpop.permute.xlu1 %1817  ;;  %v1911_v57 = vsel %vm1458_vm10, %v1872_v45, %v1910_v48 }
 0x4a7   : > { %v1880_v60 = vrot.slane %v1818_v51, %v2767_v38 }
 0x4a9   : > { %v1881_v49 = vsel %vm1389_vm7, %v1880_v60, %v1876_v50 }
 0x4aa   : > { %v1821_v39 = vpop.permute.xlu1 %1820  ;;  %v1912_v61 = vsel %vm1460_vm11, %v1881_v49, %v1911_v57 }
 0x4ab   : > { %v1885_v46 = vrot.slane %v1821_v39, %v2764_v37 }
 0x4ae   : > { %v1824_v17 = vpop.permute.xlu1 %1823 }
 0x4af   : > { %v1889_v58 = vrot.slane %v1824_v17, %v2767_v38 }
 0x4b1   : > { %v1890_v55 = vsel %vm1389_vm7, %v1889_v58, %v1885_v46 }
 0x4b2   : > { %v1827_v23 = vpop.permute.xlu1 %1826  ;;  %v1913_v63 = vsel %vm1462_vm12, %v1890_v55, %v1912_v61 }
 0x4b3   : > { %v1894_v54 = vrot.slane %v1827_v23, %v2764_v37 }
 0x4b6   : > { %v1830_v44 = vpop.permute.xlu1 %1829 }
 0x4b7   : > { %v1898_v47 = vrot.slane %v1830_v44, %v2767_v38  ;;  %v2205_v38 = vld [vmem:[%s550_s24] ss:$0 sm:$0xff] }
 0x4b9   : > { %v1899_v53 = vsel %vm1389_vm7, %v1898_v47, %v1894_v54 }
 0x4ba   : > { %v1833_v59 = vpop.permute.xlu1 %1832  ;;  %v1914_v6 = vsel %vm1464_vm13, %v1899_v53, %v1913_v63 }
 0x4bb   : > { %v1903_v18 = vrot.slane %v1833_v59, %v2764_v37 }
 0x4bd   : > { %v1908_v52 = vsel %vm1389_vm7, %v1907_v0, %v1903_v18 }
 0x4be   : > { %v1915_v30 = vsel %vm1466_vm14, %v1908_v52, %v1914_v6 }
 0x4bf   : > { %2284 = vmatmul.mubr.msk.f32.vlgmr.msra.gmra.mxu1 %vm570_vm0, %v1915_v30 }
 0x57f   : > { %v1984_v37 = vpop.f32.mrf.mxu1 }
 0x580   : > { %v1985_v4 = vadd.f32 %v2205_v38, %v1984_v37 }
 0x581   : > { %v2285_v5 = vpop.f32.mrf.mxu1 }
 0x582   : > { %1988 = vst.msk [vmem:[%s558_s29] sm:$0xff] %vm1143_vm5, %v1985_v4 }
 0x583 PF: > { %s21_s21 = sadd.s32 1, %s2406_s21   ;;  %s3006_s17 = smov %s2398_s19 }
 0x584   : > { %p18_p8 = scmp.ge.s32.totalorder %s21_s21, 6   ;;  %s3007_s18 = smov %s2402_s20 }
 0x585   : > { %s3008_s19 = smov %s3011_s22  ;;  %s3009_s20 = smov %s3015_s23 }
 0x586   :  { %20 = sbr.rel (!%p18_p8) target bundleno = 4 (0x4), region = 121 }

</bundles_post_ra>
